<compile_context>
chip_gen: v7x
topology: tpu7x:2x2x1
jax: 0.10.0
libtpu: 0.0.40
codegen_flags: <defaults>
</compile_context>

<pallas_src>
import functools

import numpy as np
import jax
import jax.numpy as jnp
from jax import lax
from jax.experimental import pallas as pl
from jax.experimental.pallas import tpu as pltpu

EXPANSION = 4
BN_EPS = 1e-5
LANE = 128


def _clip_bottleneck_kernel(x_ref, w1_ref, b1_ref, w2_ref, b2_ref,
                            w3_ref, b3_ref, wd_ref, bd_ref,
                            o_ref, hp_scr, pool_scr,
                            *, H, W, stride, has_downsample, per_tap):
    s = stride
    Ho, Wo = H // s, W // s
    Cin = x_ref.shape[-1]          # lane-padded input channels
    Pp = w1_ref.shape[-1]          # lane-padded planes
    C4 = w3_ref.shape[-1]          # lane-padded planes * 4

    def sum_pool(flat_f32, C):
        # AvgPool2d(s) minus the 1/(s*s) factor (folded into the next conv's
        # weights).  (H*W, C) f32 -> (Ho*Wo, C) f32, no pooling matmul.
        rows = flat_f32.reshape(Ho, s, W, C).sum(axis=1)       # pool H (VPU)
        pool_scr[:, :C] = rows.reshape(Ho * W, C)
        acc = pool_scr[pl.ds(0, Ho * Wo, stride=s), :C]        # pool W via
        for dx in range(1, s):                                  # strided reads
            acc = acc + pool_scr[pl.ds(dx, Ho * Wo, stride=s), :C]
        return acc

    x = x_ref[0]                                   # (H, W, Cin) bf16
    x2d = x.reshape(H * W, Cin)

    # ---- conv1 (1x1, BN scale folded) + bias + relu ----
    h = jnp.dot(x2d, w1_ref[...], preferred_element_type=jnp.float32)
    h = jnp.maximum(h + b1_ref[...], 0.0)          # (H*W, Pp) f32

    # ---- conv2 (3x3, pad=1, BN scale folded) + bias + relu ----
    # Re-zero only the 1-wide borders every step (cheap); scratches are
    # per-core, so a one-time pid==0 init would be wrong under a parallel
    # batch axis on multi-TensorCore chips.
    zrow = jnp.zeros((1, W + 2, Pp), jnp.bfloat16)
    zcol = jnp.zeros((H + 2, 1, Pp), jnp.bfloat16)
    hp_scr[0:1, :, :] = zrow
    hp_scr[H + 1:H + 2, :, :] = zrow
    hp_scr[:, 0:1, :] = zcol
    hp_scr[:, W + 1:W + 2, :] = zcol
    hp_scr[1:H + 1, 1:W + 1, :] = h.reshape(H, W, Pp).astype(jnp.bfloat16)

    acc2 = jnp.zeros((H * W, Pp), jnp.float32)
    if per_tap:
        # v5e: 128-deep MXU -> K=Pp already fills it; no im2col buffer at all.
        for ky in range(3):
            for kx in range(3):
                tap = hp_scr[ky:ky + H, kx:kx + W, :].reshape(H * W, Pp)
                acc2 = acc2 + jnp.dot(tap, w2_ref[ky, kx * Pp:(kx + 1) * Pp, :],
                                      preferred_element_type=jnp.float32)
    else:
        # v6e/v7x: 3 accumulated K=3*Pp chunks fill the 256-deep MXU while the
        # materialized im2col chunk stays 3x smaller than a K=9*Pp buffer.
        for ky in range(3):
            cols = jnp.concatenate(
                [hp_scr[ky:ky + H, kx:kx + W, :].reshape(H * W, Pp)
                 for kx in range(3)], axis=1)                 # (H*W, 3Pp) bf16
            acc2 = acc2 + jnp.dot(cols, w2_ref[ky],
                                  preferred_element_type=jnp.float32)
    h2 = jnp.maximum(acc2 + b2_ref[...], 0.0)                 # (H*W, Pp) f32

    # ---- avgpool(stride) (sum only; 1/(s*s) folded into w3) ----
    if s > 1:
        h2 = sum_pool(h2, Pp)                                 # (Ho*Wo, Pp)

    # ---- conv3 (1x1, BN scale + pool scale folded) + bias ----
    out = jnp.dot(h2.astype(jnp.bfloat16), w3_ref[...],
                  preferred_element_type=jnp.float32) + b3_ref[...]

    # ---- identity / downsample path ----
    if has_downsample:
        idn = sum_pool(x2d.astype(jnp.float32), Cin) if s > 1 else x2d.astype(jnp.float32)
        idn = jnp.dot(idn.astype(jnp.bfloat16), wd_ref[...],
                      preferred_element_type=jnp.float32) + bd_ref[...]
    else:
        idn = x2d.astype(jnp.float32)

    out = jnp.maximum(out + idn, 0.0)
    o_ref[...] = out.reshape(1, Ho, Wo, C4).astype(o_ref.dtype)


# ---------------- wrapper ----------------
def _round_up(n, m=LANE):
    return ((n + m - 1) // m) * m


def _pad2(m, rows, cols):
    return jnp.pad(m, ((0, rows - m.shape[0]), (0, cols - m.shape[1])))


def _fold_bn(bn):
    gamma, beta, mean, var = bn
    scale = gamma / jnp.sqrt(var + BN_EPS)
    bias = beta - mean * scale
    return scale, bias


def _pad_bias(b, cpad):
    return jnp.pad(b[None, :].astype(jnp.float32), ((0, 0), (0, cpad - b.shape[0])))


def _prefer_per_tap_conv2():
    # v5e's MXU is 128x128, so K=Pp already fills it; skip the K=3P chunks.
    try:
        kind = jax.devices()[0].device_kind.lower()
    except Exception:
        return False
    return ("v5 lite" in kind) or ("v5e" in kind) or ("v5lite" in kind)


def clip_bottleneck_pallas_nhwc(x_nhwc, params, stride, *, per_tap=None):
    N, H, W, Cin = x_nhwc.shape
    P = params["w1"].shape[0]
    C4 = P * EXPANSION
    assert H % stride == 0 and W % stride == 0, "AvgPool2d(stride) assumes divisibility"
    Ho, Wo = H // stride, W // stride
    has_downsample = (stride > 1) or (Cin != C4)
    if per_tap is None:
        per_tap = _prefer_per_tap_conv2()

    # Lane-pad every channel dim to a multiple of 128 (lane-dense loads/stores).
    Cinp, Pp, C4p = _round_up(Cin), _round_up(P), _round_up(C4)

    # bf16 input DMA: halves input bytes; all matmul operands are bf16 anyway.
    x = jnp.pad(x_nhwc, ((0, 0), (0, 0), (0, 0), (0, Cinp - Cin))).astype(jnp.bfloat16)

    inv_ss = 1.0 / float(stride * stride)

    # Fold BN scales into the conv weights in f32, then cast to bf16.
    s1, bias1 = _fold_bn(params["bn1"])
    s2, bias2 = _fold_bn(params["bn2"])
    s3, bias3 = _fold_bn(params["bn3"])

    w1 = _pad2(params["w1"][:, :, 0, 0].T * s1[None, :], Cinp, Pp).astype(jnp.bfloat16)
    b1 = _pad_bias(bias1, Pp)

    w2 = jnp.stack(
        [jnp.concatenate(
            [_pad2(params["w2"][:, :, ky, kx].T * s2[None, :], Pp, Pp)
             for kx in range(3)], axis=0)
         for ky in range(3)], axis=0).astype(jnp.bfloat16)       # (3, 3Pp, Pp)
    b2 = _pad_bias(bias2, Pp)

    # 1/(s*s) of the main-path avgpool folded into conv3.
    w3 = _pad2(params["w3"][:, :, 0, 0].T * s3[None, :] * inv_ss,
               Pp, C4p).astype(jnp.bfloat16)
    b3 = _pad_bias(bias3, C4p)

    if has_downsample:
        sd, biasd = _fold_bn(params["bnd"])
        # 1/(s*s) of the identity-path avgpool folded into the downsample conv.
        wd = _pad2(params["wd"][:, :, 0, 0].T * sd[None, :] * inv_ss,
                   Cinp, C4p).astype(jnp.bfloat16)
        bd = _pad_bias(biasd, C4p)
    else:
        wd = jnp.zeros((8, LANE), jnp.bfloat16)      # dummies, never read
        bd = jnp.zeros((1, LANE), jnp.float32)

    # Scratches: zero-bordered conv2 activation + ONE shared pool buffer
    # (main and identity paths reuse it sequentially -> peak = max, not sum).
    hp_scr = pltpu.VMEM((H + 2, W + 2, Pp), jnp.bfloat16)
    if stride > 1:
        Cmax = max(Pp, Cinp)
        pool_scr = pltpu.VMEM((Ho * W, Cmax), jnp.float32)
    else:
        Cmax = 0
        pool_scr = pltpu.VMEM((8, LANE), jnp.float32)

    def full(a):
        nd = a.ndim
        return pl.BlockSpec(a.shape, lambda b, _nd=nd: (0,) * _nd)

    kernel = functools.partial(_clip_bottleneck_kernel, H=H, W=W, stride=stride,
                               has_downsample=has_downsample, per_tap=per_tap)

    HW, HoWo = H * W, Ho * Wo
    flops = 2 * N * (HW * Cinp * Pp + HW * 9 * Pp * Pp + HoWo * Pp * C4p
                     + (HoWo * Cinp * C4p if has_downsample else 0))
    w_bytes = 2 * (w1.size + w2.size + w3.size + wd.size) \
        + 4 * (b1.size + b2.size + b3.size + bd.size)
    bytes_accessed = int(x.size * 2 + N * HoWo * C4p * 4 + w_bytes)

    vmem_need = (2 * HW * Cinp * 2                 # double-buffered bf16 input blocks
                 + 2 * HoWo * C4p * 4              # double-buffered f32 output blocks
                 + 2 * w_bytes                     # weights / biases (default buffering)
                 + (H + 2) * (W + 2) * Pp * 2      # padded conv2 activation scratch
                 + HW * Pp * 4                     # h (f32)
                 + (0 if per_tap else HW * 3 * Pp * 2)   # one K=3P im2col chunk (bf16)
                 + 2 * HW * Pp * 4                 # conv2 accumulator + h2 (f32)
                 + 2 * HoWo * C4p * 4              # out + identity (f32)
                 + (Ho * W * Cmax * 4 if stride > 1 else 0)  # shared pool scratch
                 + (8 << 20))                      # headroom
    # Generation-aware limit: ~80% of the physical per-core VMEM.
    try:
        phys_vmem = int(pltpu.get_tpu_info().vmem_capacity_bytes)
    except Exception:
        phys_vmem = 128 << 20
    vmem_cap = (phys_vmem * 4) // 5
    vmem_limit = int(min(max(vmem_need, 16 << 20), vmem_cap))

    out_nhwc = pl.pallas_call(
        kernel,
        out_shape=jax.ShapeDtypeStruct((N, Ho, Wo, C4p), jnp.float32),
        grid=(N,),
        in_specs=[pl.BlockSpec((1, H, W, Cinp), lambda b: (b, 0, 0, 0)),
                  full(w1), full(b1), full(w2), full(b2),
                  full(w3), full(b3), full(wd), full(bd)],
        out_specs=pl.BlockSpec((1, Ho, Wo, C4p), lambda b: (b, 0, 0, 0)),
        scratch_shapes=[hp_scr, pool_scr],
        compiler_params=pltpu.CompilerParams(
            dimension_semantics=("parallel",),
            vmem_limit_bytes=vmem_limit),
        cost_estimate=pl.CostEstimate(flops=int(flops), transcendentals=0,
                                      bytes_accessed=bytes_accessed),
    )(x, w1, b1, w2, b2, w3, b3, wd, bd)

    return out_nhwc[..., :C4]


def clip_bottleneck_pallas(x_nchw, params, stride):
    # Thin NCHW adapter for torch-layout parity.  In an NHWC model, call
    # clip_bottleneck_pallas_nhwc directly and skip these two HBM transposes.
    x = jnp.transpose(x_nchw, (0, 2, 3, 1))
    out = clip_bottleneck_pallas_nhwc(x, params, stride)
    return jnp.transpose(out, (0, 3, 1, 2))


# ---------------- deterministic parameter construction (torch layouts) ----------------
def make_params(key, inplanes, planes):
    P4 = planes * EXPANSION
    keys = jax.random.split(key, 8)

    def bn_params(k, c):
        k1, k2, k3, k4 = jax.random.split(k, 4)
        gamma = jax.random.uniform(k1, (c,), jnp.float32, 0.5, 1.5)
        beta = 0.1 * jax.random.normal(k2, (c,), jnp.float32)
        mean = 0.1 * jax.random.normal(k3, (c,), jnp.float32)
        var = jax.random.uniform(k4, (c,), jnp.float32, 0.5, 1.5)
        return gamma, beta, mean, var

    return {
        "w1": 0.2 * jax.random.normal(keys[0], (planes, inplanes, 1, 1), jnp.float32),
        "w2": 0.1 * jax.random.normal(keys[1], (planes, planes, 3, 3), jnp.float32),
        "w3": 0.2 * jax.random.normal(keys[2], (P4, planes, 1, 1), jnp.float32),
        "wd": 0.2 * jax.random.normal(keys[3], (P4, inplanes, 1, 1), jnp.float32),
        "bn1": bn_params(keys[4], planes),
        "bn2": bn_params(keys[5], planes),
        "bn3": bn_params(keys[6], P4),
        "bnd": bn_params(keys[7], P4),
    }


# ---------------- pure-JAX reference (NCHW, lax convolutions, f32) ----------------
def clip_bottleneck_ref(x, params, stride):
    def bn(y, p):
        g, b, m, v = p
        sh = (1, -1, 1, 1)
        return (y - m.reshape(sh)) / jnp.sqrt(v.reshape(sh) + BN_EPS) * g.reshape(sh) + b.reshape(sh)

    def conv(y, w, pad):
        return lax.conv_general_dilated(y, w, (1, 1), pad,
                                        dimension_numbers=("NCHW", "OIHW", "NCHW"))

    def avgpool(y, s):
        if s == 1:
            return y
        N, C, H, W = y.shape
        return y.reshape(N, C, H // s, s, W // s, s).mean(axis=(3, 5))

    P4 = params["w3"].shape[0]
    out = jax.nn.relu(bn(conv(x, params["w1"], "VALID"), params["bn1"]))
    out = jax.nn.relu(bn(conv(out, params["w2"], [(1, 1), (1, 1)]), params["bn2"]))
    out = avgpool(out, stride)
    out = bn(conv(out, params["w3"], "VALID"), params["bn3"])
    identity = x
    if stride > 1 or x.shape[1] != P4:
        identity = bn(conv(avgpool(x, stride), params["wd"], "VALID"), params["bnd"])
    return jax.nn.relu(out + identity)


if __name__ == "__main__":
    key = jax.random.PRNGKey(0)
    kx, kp = jax.random.split(key)

    inplanes, planes, stride = 4, 8, 2        # output channels = planes * 4 = 32
    x = jax.random.normal(kx, (2, inplanes, 16, 16), jnp.float32)
    params = make_params(kp, inplanes, planes)

    out = clip_bottleneck_pallas(x, params, stride)
    out = jax.block_until_ready(out)

    assert out.shape == (2, planes * EXPANSION, 8, 8), out.shape
    ref = clip_bottleneck_ref(x, params, stride)
    # bf16 MXU operands / bf16 input DMA (f32 accumulation) vs f32 reference.
    np.testing.assert_allclose(np.asarray(out), np.asarray(ref), rtol=3e-2, atol=3e-2)

    print("KERNEL_OK")
</pallas_src>

<mosaic_0001>
module attributes {stable_mosaic.version = 11 : i64} {
  func.func @_clip_bottleneck_kernel(%arg0: i32, %arg1: memref<1x16x16x128xbf16, #tpu.memory_space<vmem>>, %arg2: memref<128x128xbf16, #tpu.memory_space<vmem>>, %arg3: memref<1x128xf32, #tpu.memory_space<vmem>>, %arg4: memref<3x384x128xbf16, #tpu.memory_space<vmem>>, %arg5: memref<1x128xf32, #tpu.memory_space<vmem>>, %arg6: memref<128x128xbf16, #tpu.memory_space<vmem>>, %arg7: memref<1x128xf32, #tpu.memory_space<vmem>>, %arg8: memref<128x128xbf16, #tpu.memory_space<vmem>>, %arg9: memref<1x128xf32, #tpu.memory_space<vmem>>, %arg10: memref<1x8x8x128xf32, #tpu.memory_space<vmem>>, %arg11: memref<18x18x128xbf16, #tpu.memory_space<vmem>>, %arg12: memref<128x128xf32, #tpu.memory_space<vmem>>) attributes {dimension_semantics = [#tpu.dimension_semantics<parallel>], iteration_bounds = array<i64: 2>, scalar_prefetch = 0 : i64, scratch_operands = 2 : i64, tpu.core_type = #tpu.core_type<tc>, window_params = [{transform_indices = @transform_0, window_bounds = array<i64: 1, 16, 16, 128>}, {pipeline_mode = #tpu.pipeline_mode<synchronous>, transform_indices = @transform_1, window_bounds = array<i64: 128, 128>}, {pipeline_mode = #tpu.pipeline_mode<synchronous>, transform_indices = @transform_2, window_bounds = array<i64: 1, 128>}, {pipeline_mode = #tpu.pipeline_mode<synchronous>, transform_indices = @transform_3, window_bounds = array<i64: 3, 384, 128>}, {pipeline_mode = #tpu.pipeline_mode<synchronous>, transform_indices = @transform_4, window_bounds = array<i64: 1, 128>}, {pipeline_mode = #tpu.pipeline_mode<synchronous>, transform_indices = @transform_5, window_bounds = array<i64: 128, 128>}, {pipeline_mode = #tpu.pipeline_mode<synchronous>, transform_indices = @transform_6, window_bounds = array<i64: 1, 128>}, {pipeline_mode = #tpu.pipeline_mode<synchronous>, transform_indices = @transform_7, window_bounds = array<i64: 128, 128>}, {pipeline_mode = #tpu.pipeline_mode<synchronous>, transform_indices = @transform_8, window_bounds = array<i64: 1, 128>}, {transform_indices = @transform_9, window_bounds = array<i64: 1, 8, 8, 128>}]} {
    %c0 = arith.constant 0 : index
    %c0_0 = arith.constant 0 : index
    %c0_1 = arith.constant 0 : index
    %c0_2 = arith.constant 0 : index
    %0 = vector.load %arg1[%c0, %c0_0, %c0_1, %c0_2] : memref<1x16x16x128xbf16, #tpu.memory_space<vmem>>, vector<1x16x16x128xbf16>
    %1 = vector.shape_cast %0 : vector<1x16x16x128xbf16> to vector<16x16x128xbf16>
    %2 = vector.shape_cast %1 : vector<16x16x128xbf16> to vector<256x128xbf16>
    %c0_3 = arith.constant 0 : index
    %c0_4 = arith.constant 0 : index
    %3 = vector.load %arg2[%c0_3, %c0_4] : memref<128x128xbf16, #tpu.memory_space<vmem>>, vector<128x128xbf16>
    %cst = arith.constant dense<0.000000e+00> : vector<256x128xf32>
    %4 = tpu.matmul %2, %3, %cst {dimension_numbers = #tpu.dot_dimension_numbers<[1], [0], [0], [1], [0, 0, 1, 1], [], []>} : vector<256x128xbf16>, vector<128x128xbf16>, vector<256x128xf32> -> vector<256x128xf32>
    %c0_5 = arith.constant 0 : index
    %c0_6 = arith.constant 0 : index
    %5 = vector.load %arg3[%c0_5, %c0_6] : memref<1x128xf32, #tpu.memory_space<vmem>>, vector<1x128xf32>
    %6 = vector.broadcast %5 : vector<1x128xf32> to vector<256x128xf32>
    %7 = arith.addf %4, %6 : vector<256x128xf32>
    %cst_7 = arith.constant 0.000000e+00 : f32
    %8 = vector.broadcast %cst_7 : f32 to vector<256x128xf32>
    %9 = arith.maximumf %7, %8 : vector<256x128xf32>
    %cst_8 = arith.constant 0.000000e+00 : bf16
    %10 = vector.broadcast %cst_8 : bf16 to vector<1x18x128xbf16>
    %cst_9 = arith.constant 0.000000e+00 : bf16
    %11 = vector.broadcast %cst_9 : bf16 to vector<18x1x128xbf16>
    %c0_10 = arith.constant 0 : index
    %c0_11 = arith.constant 0 : index
    %c0_12 = arith.constant 0 : index
    %12 = vector.load %arg11[%c0_10, %c0_11, %c0_12] : memref<18x18x128xbf16, #tpu.memory_space<vmem>>, vector<1x18x128xbf16>
    tpu.vector_store %arg11[%c0_10, %c0_11, %c0_12], %10 {strides = array<i32>} : memref<18x18x128xbf16, #tpu.memory_space<vmem>>, vector<1x18x128xbf16>,
    %c17 = arith.constant 17 : index
    %c0_13 = arith.constant 0 : index
    %c0_14 = arith.constant 0 : index
    %13 = vector.load %arg11[%c17, %c0_13, %c0_14] : memref<18x18x128xbf16, #tpu.memory_space<vmem>>, vector<1x18x128xbf16>
    tpu.vector_store %arg11[%c17, %c0_13, %c0_14], %10 {strides = array<i32>} : memref<18x18x128xbf16, #tpu.memory_space<vmem>>, vector<1x18x128xbf16>,
    %c0_15 = arith.constant 0 : index
    %c0_16 = arith.constant 0 : index
    %c0_17 = arith.constant 0 : index
    %14 = vector.load %arg11[%c0_15, %c0_16, %c0_17] : memref<18x18x128xbf16, #tpu.memory_space<vmem>>, vector<18x1x128xbf16>
    tpu.vector_store %arg11[%c0_15, %c0_16, %c0_17], %11 {strides = array<i32>} : memref<18x18x128xbf16, #tpu.memory_space<vmem>>, vector<18x1x128xbf16>,
    %c0_18 = arith.constant 0 : index
    %c17_19 = arith.constant 17 : index
    %c0_20 = arith.constant 0 : index
    %15 = vector.load %arg11[%c0_18, %c17_19, %c0_20] : memref<18x18x128xbf16, #tpu.memory_space<vmem>>, vector<18x1x128xbf16>
    tpu.vector_store %arg11[%c0_18, %c17_19, %c0_20], %11 {strides = array<i32>} : memref<18x18x128xbf16, #tpu.memory_space<vmem>>, vector<18x1x128xbf16>,
    %16 = vector.shape_cast %9 : vector<256x128xf32> to vector<16x16x128xf32>
    %17 = arith.truncf %16 : vector<16x16x128xf32> to vector<16x16x128xbf16>
    %c1 = arith.constant 1 : index
    %c1_21 = arith.constant 1 : index
    %c0_22 = arith.constant 0 : index
    %18 = vector.load %arg11[%c1, %c1_21, %c0_22] : memref<18x18x128xbf16, #tpu.memory_space<vmem>>, vector<16x16x128xbf16>
    tpu.vector_store %arg11[%c1, %c1_21, %c0_22], %17 {strides = array<i32>} : memref<18x18x128xbf16, #tpu.memory_space<vmem>>, vector<16x16x128xbf16>,
    %cst_23 = arith.constant 0.000000e+00 : f32
    %19 = vector.broadcast %cst_23 : f32 to vector<256x128xf32>
    %c0_24 = arith.constant 0 : index
    %c0_25 = arith.constant 0 : index
    %c0_26 = arith.constant 0 : index
    %20 = vector.load %arg11[%c0_24, %c0_25, %c0_26] : memref<18x18x128xbf16, #tpu.memory_space<vmem>>, vector<16x16x128xbf16>
    %21 = vector.shape_cast %20 : vector<16x16x128xbf16> to vector<256x128xbf16>
    %c0_27 = arith.constant 0 : index
    %c1_28 = arith.constant 1 : index
    %c0_29 = arith.constant 0 : index
    %22 = vector.load %arg11[%c0_27, %c1_28, %c0_29] : memref<18x18x128xbf16, #tpu.memory_space<vmem>>, vector<16x16x128xbf16>
    %23 = vector.shape_cast %22 : vector<16x16x128xbf16> to vector<256x128xbf16>
    %c0_30 = arith.constant 0 : index
    %c2 = arith.constant 2 : index
    %c0_31 = arith.constant 0 : index
    %24 = vector.load %arg11[%c0_30, %c2, %c0_31] : memref<18x18x128xbf16, #tpu.memory_space<vmem>>, vector<16x16x128xbf16>
    %25 = vector.shape_cast %24 : vector<16x16x128xbf16> to vector<256x128xbf16>
    %26 = tpu.concatenate %21, %23, %25 in 1 : vector<256x128xbf16>, vector<256x128xbf16>, vector<256x128xbf16> -> vector<256x384xbf16>
    %c0_32 = arith.constant 0 : index
    %c0_33 = arith.constant 0 : index
    %c0_34 = arith.constant 0 : index
    %27 = vector.load %arg4[%c0_32, %c0_33, %c0_34] : memref<3x384x128xbf16, #tpu.memory_space<vmem>>, vector<1x384x128xbf16>
    %28 = vector.shape_cast %27 : vector<1x384x128xbf16> to vector<384x128xbf16>
    %cst_35 = arith.constant dense<0.000000e+00> : vector<256x128xf32>
    %29 = tpu.matmul %26, %28, %cst_35 {dimension_numbers = #tpu.dot_dimension_numbers<[1], [0], [0], [1], [0, 0, 1, 1], [], []>} : vector<256x384xbf16>, vector<384x128xbf16>, vector<256x128xf32> -> vector<256x128xf32>
    %30 = arith.addf %19, %29 : vector<256x128xf32>
    %c1_36 = arith.constant 1 : index
    %c0_37 = arith.constant 0 : index
    %c0_38 = arith.constant 0 : index
    %31 = vector.load %arg11[%c1_36, %c0_37, %c0_38] : memref<18x18x128xbf16, #tpu.memory_space<vmem>>, vector<16x16x128xbf16>
    %32 = vector.shape_cast %31 : vector<16x16x128xbf16> to vector<256x128xbf16>
    %c1_39 = arith.constant 1 : index
    %c1_40 = arith.constant 1 : index
    %c0_41 = arith.constant 0 : index
    %33 = vector.load %arg11[%c1_39, %c1_40, %c0_41] : memref<18x18x128xbf16, #tpu.memory_space<vmem>>, vector<16x16x128xbf16>
    %34 = vector.shape_cast %33 : vector<16x16x128xbf16> to vector<256x128xbf16>
    %c1_42 = arith.constant 1 : index
    %c2_43 = arith.constant 2 : index
    %c0_44 = arith.constant 0 : index
    %35 = vector.load %arg11[%c1_42, %c2_43, %c0_44] : memref<18x18x128xbf16, #tpu.memory_space<vmem>>, vector<16x16x128xbf16>
    %36 = vector.shape_cast %35 : vector<16x16x128xbf16> to vector<256x128xbf16>
    %37 = tpu.concatenate %32, %34, %36 in 1 : vector<256x128xbf16>, vector<256x128xbf16>, vector<256x128xbf16> -> vector<256x384xbf16>
    %c1_45 = arith.constant 1 : index
    %c0_46 = arith.constant 0 : index
    %c0_47 = arith.constant 0 : index
    %38 = vector.load %arg4[%c1_45, %c0_46, %c0_47] : memref<3x384x128xbf16, #tpu.memory_space<vmem>>, vector<1x384x128xbf16>
    %39 = vector.shape_cast %38 : vector<1x384x128xbf16> to vector<384x128xbf16>
    %cst_48 = arith.constant dense<0.000000e+00> : vector<256x128xf32>
    %40 = tpu.matmul %37, %39, %cst_48 {dimension_numbers = #tpu.dot_dimension_numbers<[1], [0], [0], [1], [0, 0, 1, 1], [], []>} : vector<256x384xbf16>, vector<384x128xbf16>, vector<256x128xf32> -> vector<256x128xf32>
    %41 = arith.addf %30, %40 : vector<256x128xf32>
    %c2_49 = arith.constant 2 : index
    %c0_50 = arith.constant 0 : index
    %c0_51 = arith.constant 0 : index
    %42 = vector.load %arg11[%c2_49, %c0_50, %c0_51] : memref<18x18x128xbf16, #tpu.memory_space<vmem>>, vector<16x16x128xbf16>
    %43 = vector.shape_cast %42 : vector<16x16x128xbf16> to vector<256x128xbf16>
    %c2_52 = arith.constant 2 : index
    %c1_53 = arith.constant 1 : index
    %c0_54 = arith.constant 0 : index
    %44 = vector.load %arg11[%c2_52, %c1_53, %c0_54] : memref<18x18x128xbf16, #tpu.memory_space<vmem>>, vector<16x16x128xbf16>
    %45 = vector.shape_cast %44 : vector<16x16x128xbf16> to vector<256x128xbf16>
    %c2_55 = arith.constant 2 : index
    %c2_56 = arith.constant 2 : index
    %c0_57 = arith.constant 0 : index
    %46 = vector.load %arg11[%c2_55, %c2_56, %c0_57] : memref<18x18x128xbf16, #tpu.memory_space<vmem>>, vector<16x16x128xbf16>
    %47 = vector.shape_cast %46 : vector<16x16x128xbf16> to vector<256x128xbf16>
    %48 = tpu.concatenate %43, %45, %47 in 1 : vector<256x128xbf16>, vector<256x128xbf16>, vector<256x128xbf16> -> vector<256x384xbf16>
    %c2_58 = arith.constant 2 : index
    %c0_59 = arith.constant 0 : index
    %c0_60 = arith.constant 0 : index
    %49 = vector.load %arg4[%c2_58, %c0_59, %c0_60] : memref<3x384x128xbf16, #tpu.memory_space<vmem>>, vector<1x384x128xbf16>
    %50 = vector.shape_cast %49 : vector<1x384x128xbf16> to vector<384x128xbf16>
    %cst_61 = arith.constant dense<0.000000e+00> : vector<256x128xf32>
    %51 = tpu.matmul %48, %50, %cst_61 {dimension_numbers = #tpu.dot_dimension_numbers<[1], [0], [0], [1], [0, 0, 1, 1], [], []>} : vector<256x384xbf16>, vector<384x128xbf16>, vector<256x128xf32> -> vector<256x128xf32>
    %52 = arith.addf %41, %51 : vector<256x128xf32>
    %c0_62 = arith.constant 0 : index
    %c0_63 = arith.constant 0 : index
    %53 = vector.load %arg5[%c0_62, %c0_63] : memref<1x128xf32, #tpu.memory_space<vmem>>, vector<1x128xf32>
    %54 = vector.broadcast %53 : vector<1x128xf32> to vector<256x128xf32>
    %55 = arith.addf %52, %54 : vector<256x128xf32>
    %cst_64 = arith.constant 0.000000e+00 : f32
    %56 = vector.broadcast %cst_64 : f32 to vector<256x128xf32>
    %57 = arith.maximumf %55, %56 : vector<256x128xf32>
    %58 = vector.shape_cast %57 : vector<256x128xf32> to vector<8x2x16x128xf32>
    %cst_65 = arith.constant dense<0.000000e+00> : vector<8x16x128xf32>
    %59 = vector.multi_reduction <add>, %58, %cst_65 [1] : vector<8x2x16x128xf32> to vector<8x16x128xf32>
    %60 = vector.shape_cast %59 : vector<8x16x128xf32> to vector<128x128xf32>
    %c0_66 = arith.constant 0 : index
    %c0_67 = arith.constant 0 : index
    %61 = vector.load %arg12[%c0_66, %c0_67] : memref<128x128xf32, #tpu.memory_space<vmem>>, vector<128x128xf32>
    tpu.vector_store %arg12[%c0_66, %c0_67], %60 {strides = array<i32>} : memref<128x128xf32, #tpu.memory_space<vmem>>, vector<128x128xf32>,
    %c0_68 = arith.constant 0 : index
    %c0_69 = arith.constant 0 : index
    %62 = tpu.strided_load %arg12[%c0_68, %c0_69] {strides = array<i32: 2, 1>} : memref<128x128xf32, #tpu.memory_space<vmem>>, vector<64x128xf32>
    %c1_70 = arith.constant 1 : index
    %c0_71 = arith.constant 0 : index
    %63 = tpu.strided_load %arg12[%c1_70, %c0_71] {strides = array<i32: 2, 1>} : memref<128x128xf32, #tpu.memory_space<vmem>>, vector<64x128xf32>
    %64 = arith.addf %62, %63 : vector<64x128xf32>
    %65 = arith.truncf %64 : vector<64x128xf32> to vector<64x128xbf16>
    %c0_72 = arith.constant 0 : index
    %c0_73 = arith.constant 0 : index
    %66 = vector.load %arg6[%c0_72, %c0_73] : memref<128x128xbf16, #tpu.memory_space<vmem>>, vector<128x128xbf16>
    %cst_74 = arith.constant dense<0.000000e+00> : vector<64x128xf32>
    %67 = tpu.matmul %65, %66, %cst_74 {dimension_numbers = #tpu.dot_dimension_numbers<[1], [0], [0], [1], [0, 0, 1, 1], [], []>} : vector<64x128xbf16>, vector<128x128xbf16>, vector<64x128xf32> -> vector<64x128xf32>
    %c0_75 = arith.constant 0 : index
    %c0_76 = arith.constant 0 : index
    %68 = vector.load %arg7[%c0_75, %c0_76] : memref<1x128xf32, #tpu.memory_space<vmem>>, vector<1x128xf32>
    %69 = vector.broadcast %68 : vector<1x128xf32> to vector<64x128xf32>
    %70 = arith.addf %67, %69 : vector<64x128xf32>
    %71 = arith.extf %2 : vector<256x128xbf16> to vector<256x128xf32>
    %72 = vector.shape_cast %71 : vector<256x128xf32> to vector<8x2x16x128xf32>
    %cst_77 = arith.constant dense<0.000000e+00> : vector<8x16x128xf32>
    %73 = vector.multi_reduction <add>, %72, %cst_77 [1] : vector<8x2x16x128xf32> to vector<8x16x128xf32>
    %74 = vector.shape_cast %73 : vector<8x16x128xf32> to vector<128x128xf32>
    %c0_78 = arith.constant 0 : index
    %c0_79 = arith.constant 0 : index
    %75 = vector.load %arg12[%c0_78, %c0_79] : memref<128x128xf32, #tpu.memory_space<vmem>>, vector<128x128xf32>
    tpu.vector_store %arg12[%c0_78, %c0_79], %74 {strides = array<i32>} : memref<128x128xf32, #tpu.memory_space<vmem>>, vector<128x128xf32>,
    %c0_80 = arith.constant 0 : index
    %c0_81 = arith.constant 0 : index
    %76 = tpu.strided_load %arg12[%c0_80, %c0_81] {strides = array<i32: 2, 1>} : memref<128x128xf32, #tpu.memory_space<vmem>>, vector<64x128xf32>
    %c1_82 = arith.constant 1 : index
    %c0_83 = arith.constant 0 : index
    %77 = tpu.strided_load %arg12[%c1_82, %c0_83] {strides = array<i32: 2, 1>} : memref<128x128xf32, #tpu.memory_space<vmem>>, vector<64x128xf32>
    %78 = arith.addf %76, %77 : vector<64x128xf32>
    %79 = arith.truncf %78 : vector<64x128xf32> to vector<64x128xbf16>
    %c0_84 = arith.constant 0 : index
    %c0_85 = arith.constant 0 : index
    %80 = vector.load %arg8[%c0_84, %c0_85] : memref<128x128xbf16, #tpu.memory_space<vmem>>, vector<128x128xbf16>
    %cst_86 = arith.constant dense<0.000000e+00> : vector<64x128xf32>
    %81 = tpu.matmul %79, %80, %cst_86 {dimension_numbers = #tpu.dot_dimension_numbers<[1], [0], [0], [1], [0, 0, 1, 1], [], []>} : vector<64x128xbf16>, vector<128x128xbf16>, vector<64x128xf32> -> vector<64x128xf32>
    %c0_87 = arith.constant 0 : index
    %c0_88 = arith.constant 0 : index
    %82 = vector.load %arg9[%c0_87, %c0_88] : memref<1x128xf32, #tpu.memory_space<vmem>>, vector<1x128xf32>
    %83 = vector.broadcast %82 : vector<1x128xf32> to vector<64x128xf32>
    %84 = arith.addf %81, %83 : vector<64x128xf32>
    %85 = arith.addf %70, %84 : vector<64x128xf32>
    %cst_89 = arith.constant 0.000000e+00 : f32
    %86 = vector.broadcast %cst_89 : f32 to vector<64x128xf32>
    %87 = arith.maximumf %85, %86 : vector<64x128xf32>
    %88 = vector.shape_cast %87 : vector<64x128xf32> to vector<1x8x8x128xf32>
    %c0_90 = arith.constant 0 : index
    %c0_91 = arith.constant 0 : index
    %c0_92 = arith.constant 0 : index
    %c0_93 = arith.constant 0 : index
    %89 = vector.load %arg10[%c0_90, %c0_91, %c0_92, %c0_93] : memref<1x8x8x128xf32, #tpu.memory_space<vmem>>, vector<1x8x8x128xf32>
    tpu.vector_store %arg10[%c0_90, %c0_91, %c0_92, %c0_93], %88 {strides = array<i32>} : memref<1x8x8x128xf32, #tpu.memory_space<vmem>>, vector<1x8x8x128xf32>,
    return
  }
  func.func @transform_0(%arg0: i32) -> (i32, i32, i32, i32) {
    %c0_i32 = arith.constant 0 : i32
    %c0_i32_0 = arith.constant 0 : i32
    %c0_i32_1 = arith.constant 0 : i32
    %c0_i32_2 = arith.constant 0 : i32
    return %arg0, %c0_i32, %c0_i32_0, %c0_i32_1 : i32, i32, i32, i32
  }
  func.func @transform_1(%arg0: i32) -> (i32, i32) {
    %c0_i32 = arith.constant 0 : i32
    %c0_i32_0 = arith.constant 0 : i32
    %c0_i32_1 = arith.constant 0 : i32
    return %c0_i32, %c0_i32_0 : i32, i32
  }
  func.func @transform_2(%arg0: i32) -> (i32, i32) {
    %c0_i32 = arith.constant 0 : i32
    %c0_i32_0 = arith.constant 0 : i32
    %c0_i32_1 = arith.constant 0 : i32
    return %c0_i32, %c0_i32_0 : i32, i32
  }
  func.func @transform_3(%arg0: i32) -> (i32, i32, i32) {
    %c0_i32 = arith.constant 0 : i32
    %c0_i32_0 = arith.constant 0 : i32
    %c0_i32_1 = arith.constant 0 : i32
    %c0_i32_2 = arith.constant 0 : i32
    return %c0_i32, %c0_i32_0, %c0_i32_1 : i32, i32, i32
  }
  func.func @transform_4(%arg0: i32) -> (i32, i32) {
    %c0_i32 = arith.constant 0 : i32
    %c0_i32_0 = arith.constant 0 : i32
    %c0_i32_1 = arith.constant 0 : i32
    return %c0_i32, %c0_i32_0 : i32, i32
  }
  func.func @transform_5(%arg0: i32) -> (i32, i32) {
    %c0_i32 = arith.constant 0 : i32
    %c0_i32_0 = arith.constant 0 : i32
    %c0_i32_1 = arith.constant 0 : i32
    return %c0_i32, %c0_i32_0 : i32, i32
  }
  func.func @transform_6(%arg0: i32) -> (i32, i32) {
    %c0_i32 = arith.constant 0 : i32
    %c0_i32_0 = arith.constant 0 : i32
    %c0_i32_1 = arith.constant 0 : i32
    return %c0_i32, %c0_i32_0 : i32, i32
  }
  func.func @transform_7(%arg0: i32) -> (i32, i32) {
    %c0_i32 = arith.constant 0 : i32
    %c0_i32_0 = arith.constant 0 : i32
    %c0_i32_1 = arith.constant 0 : i32
    return %c0_i32, %c0_i32_0 : i32, i32
  }
  func.func @transform_8(%arg0: i32) -> (i32, i32) {
    %c0_i32 = arith.constant 0 : i32
    %c0_i32_0 = arith.constant 0 : i32
    %c0_i32_1 = arith.constant 0 : i32
    return %c0_i32, %c0_i32_0 : i32, i32
  }
  func.func @transform_9(%arg0: i32) -> (i32, i32, i32, i32) {
    %c0_i32 = arith.constant 0 : i32
    %c0_i32_0 = arith.constant 0 : i32
    %c0_i32_1 = arith.constant 0 : i32
    %c0_i32_2 = arith.constant 0 : i32
    return %arg0, %c0_i32, %c0_i32_0, %c0_i32_1 : i32, i32, i32, i32
  }
}

</mosaic_0001>

<bundles_post_ra>
// kernel: tpu_custom_call.1
= control target key start
LH: loop header
LB: loop body
LE: loop exit
PB: predicated region body
PF: predicated region fallthrough
CT: control target
= control target key end

     0   :  { %s10202_s0 = inlined_call_operand.hbm [shape: bf16[2,16,16,128], index: 0, kind: input, shape index: {}]   ;;  %s10203_s1 = inlined_call_operand.hbm [shape: bf16[128,128], index: 1, kind: input, shape index: {}]   ;;  %s10204_s2 = inlined_call_operand.vmem [shape: f32[1,128], index: 2, kind: input, shape index: {}]   ;;  %s10205_s3 = inlined_call_operand.hbm [shape: bf16[3,384,128], index: 3, kind: input, shape index: {}]   ;;  %s10206_s4 = inlined_call_operand.vmem [shape: f32[1,128], index: 4, kind: input, shape index: {}]   ;;  %s10207_s5 = inlined_call_operand.hbm [shape: bf16[128,128], index: 5, kind: input, shape index: {}]   ;;  %s10208_s6 = inlined_call_operand.vmem [shape: f32[1,128], index: 6, kind: input, shape index: {}]   ;;  %s10209_s7 = inlined_call_operand.hbm [shape: bf16[128,128], index: 7, kind: input, shape index: {}]   ;;  %s10210_s8 = inlined_call_operand.vmem [shape: f32[1,128], index: 8, kind: input, shape index: {}]   ;;  %s10211_s9 = inlined_call_operand.hbm [shape: f32[2,8,8,128], index: 9, kind: output, shape index: {}]  }
   0x1   :  { %10218 = sst [smem:[#allocation35_spill]] %s10211_s9 }
   0x2   :  { %14 = vsyncpa [#allocation5], 0 }
   0x3   :  { %16 = vsyncpa [#allocation5 + $0x1], 0 }
   0x4   :  { %17 = vsyncpa [#allocation8], 0 }
   0x5   :  { %18 = vsyncpa [#allocation11], 0 }
   0x6   :  { %19 = vsyncpa [#allocation6], 0 }
   0x7   :  { %21 = vsyncpa [#allocation6 + $0x1], 0  ;;  %s7987_s30 = smov 0   ;;  %s7989_s10 = smov 0  }
   0x8   :  { %s7991_s11 = smov 0   ;;  %s7993_s12 = smov 0  }
   0x9 LB: > { %10219 = sst [smem:[#allocation18_spill]] %s7912_s30  ;;  %s8008_s13 = sadd.s32 4294967295, %s7924_s12   ;;  %s7924_s12 = sphi %s7993_s12, %s10288_s12   ;;  %s7920_s11 = sphi %s7991_s11, %s10287_s11   ;;  %s7916_s10 = sphi %s7989_s10, %s10286_s10   ;;  %s7912_s30 = sphi %s7987_s30, %s10285_s30  }
   0xa   : > { %s6145_s14 = sadd.s32 4294967294, %s7924_s12   ;;  %p47_p0 = scmp.ne.s32.totalorder %s7916_s10, %s7912_s30 }
   0xb   : > { %p10212_p1 = scmp.eq.s32.totalorder %s8008_s13, 0  ;;  %p245_p3 = scmp.eq.s32.totalorder %s6145_s14, 1 }
   0xc   : > { %p6146_p5 = scmp.ge.s32.totalorder %s7924_s12, 1  ;;  %p252_p7 = scmp.lt.s32.totalorder %s7924_s12, 3 }
   0xd   : > { %p8017_p4 = por %p10212_p1, %p47_p0  ;;  %p8022_p6 = por %p245_p3, %p47_p0 }
   0xe   : > { %p8027_p8 = pnand %p6146_p5, %p252_p7  ;;  %s7926_s18 = smov [#allocation7]  }
   0xf   : > { %s10220_s15 = scalar_select %p8017_p4, 1, 0 }
  0x10   : > { %s10221_s16 = scalar_select %p8022_p6, 1, 0 }
  0x11   : > { %s10223_s17 = scalar_select %p8027_p8, 1, 0 }
  0x12   : > { %10222 = sst [smem:[#allocation19_spill]] %s10221_s16  ;;  %s264_s19 = sshll.u32 %s7926_s18, 4  ;;  %s8031_s19 = int_to_ptr.vmem [resolvable:$true] %s264_s19 }
  0x13   : > { %p7457_p9 = pneg %p8027_p8  ;;  %s7927_s21 = smov [#allocation10]  }
  0x14   : > { %s296_s22 = sshll.u32 %s7927_s21, 4  ;;  %s7928_s23 = smov [#allocation9]   ;;  %s8042_s22 = int_to_ptr.vmem [resolvable:$true] %s296_s22 }
  0x15   : > { %p8038_p11 = pnand %p7457_p9, %p10212_p1  ;;  %s8044_s24 = sshll.u32 %s7928_s23, 4  ;;  %s281_s24 = int_to_ptr.vmem [resolvable:$true] %s8044_s24 }
  0x16   : > { %s7708_s27 = scalar_lea.hbm %s10203_s1, 1024 }
  0x17   : > { %p7709_p12 = scmp.ne.s32.totalorder %s10203_s1, %s7708_s27  ;;  %p8054_p13 = pneg %p8038_p11 }
  0x18   : > { %p7715_p5 = scmp.lt.u32.totalorder %s7708_s27, %s10203_s1 }
  0x19   : > { %p7711_p0 = pnand %p8054_p13, %p7709_p12 }
  0x1b   : > { %p7712_p3 = pneg %p7711_p0 }
  0x1d   : > { %p7717_p7 = pnand %p7715_p5, %p7712_p3 }
  0x1f   : > { %7720 = shalt.err (!%p7717_p7)
}
  0x20   : > { %s7721_s23 = scalar_lea.vmem %s8031_s19, 1024  ;;  %p7729_p2 = scmp.lt.s32.totalorder %s8031_s19, %s8031_s19 }
  0x21   : > { %p7722_p9 = scmp.ne.s32.totalorder %s8031_s19, %s7721_s23  ;;  %p7730_p6 = scmp.lt.s32.totalorder %s7721_s23, %s7721_s23 }
  0x23   : > { %p7724_p10 = pnand %p7722_p9, %p8054_p13  ;;  %p7731_p12 = por %p7730_p6, %p7729_p2 }
  0x25   : > { %p7725_p1 = pneg %p7724_p10 }
  0x27   : > { %p7732_p0 = pnand %p7731_p12, %p7725_p1 }
  0x29   : > { %7735 = shalt.err (!%p7732_p0)
}
  0x2a   : > { %s7929_s25 = smov 64   ;;  %s7930_s26 = smov 4  }
  0x2b   : > { %7460 = dma.hbm_to_vmem [thread:$0]  (!%p8038_p11), %s10203_s1, 1024, %s8031_s19, [#allocation8], %s7929_s25, %s7929_s25, %s7930_s26  }
  0x2c   : > { %s7736_s21 = scalar_lea.hbm %s10207_s5, 1024 }
  0x2d   : > { %p7737_p1 = scmp.ne.s32.totalorder %s10207_s5, %s7736_s21  ;;  %p7743_p10 = scmp.lt.u32.totalorder %s7736_s21, %s10207_s5 }
  0x2f   : > { %p7739_p2 = pnand %p7737_p1, %p8054_p13 }
  0x31   : > { %p7740_p6 = pneg %p7739_p2 }
  0x33   : > { %p7745_p3 = pnand %p7743_p10, %p7740_p6 }
  0x35   : > { %7748 = shalt.err (!%p7745_p3)
}
  0x36   : > { %s7749_s19 = scalar_lea.vmem %s8042_s22, 1024  ;;  %p7757_p12 = scmp.lt.s32.totalorder %s8042_s22, %s8042_s22 }
  0x37   : > { %p7750_p5 = scmp.ne.s32.totalorder %s8042_s22, %s7749_s19  ;;  %p7758_p0 = scmp.lt.s32.totalorder %s7749_s19, %s7749_s19 }
  0x39   : > { %p7752_p7 = pnand %p7750_p5, %p8054_p13  ;;  %p7759_p1 = por %p7758_p0, %p7757_p12 }
  0x3b   : > { %p7753_p9 = pneg %p7752_p7 }
  0x3d   : > { %p7760_p2 = pnand %p7759_p1, %p7753_p9 }
  0x3f   : > { %7763 = shalt.err (!%p7760_p2)
}
  0x40   : > { %7466 = dma.hbm_to_vmem [thread:$0]  (!%p8038_p11), %s10207_s5, 1024, %s8042_s22, [#allocation11], %s7929_s25, %s7929_s25, %s7930_s26  }
  0x41   : > { %s7764_s28 = scalar_lea.hbm %s10205_s3, 9216 }
  0x42   : > { %p7765_p6 = scmp.ne.s32.totalorder %s10205_s3, %s7764_s28  ;;  %p7771_p5 = scmp.lt.u32.totalorder %s7764_s28, %s10205_s3 }
  0x44   : > { %p7767_p10 = pnand %p7765_p6, %p8054_p13 }
  0x46   : > { %p7768_p3 = pneg %p7767_p10 }
  0x48   : > { %p7773_p7 = pnand %p7771_p5, %p7768_p3 }
  0x4a   : > { %7776 = shalt.err (!%p7773_p7)
}
  0x4b   : > { %s7777_s19 = scalar_lea.vmem %s281_s24, 9216  ;;  %p7785_p1 = scmp.lt.s32.totalorder %s281_s24, %s281_s24 }
  0x4c   : > { %p7778_p9 = scmp.ne.s32.totalorder %s281_s24, %s7777_s19  ;;  %p7786_p2 = scmp.lt.s32.totalorder %s7777_s19, %s7777_s19 }
  0x4e   : > { %p7780_p12 = pnand %p7778_p9, %p8054_p13  ;;  %p7787_p4 = por %p7786_p2, %p7785_p1 }
  0x50   : > { %p7781_p0 = pneg %p7780_p12 }
  0x52   : > { %p7788_p8 = pnand %p7787_p4, %p7781_p0 }
  0x54   : > { %7791 = shalt.err (!%p7788_p8)
}
  0x55   : > { %7463 = dma.hbm_to_vmem [thread:$0]  (!%p8038_p11), %s10205_s3, 9216, %s281_s24, [#allocation8], %s7929_s25, %s7929_s25, %s7930_s26  }
  0x56   : > { %s7931_s30 = smov [#allocation12]   ;;  %s7792_s29 = scalar_lea.hbm %s10209_s7, 1024 }
  0x57   : > { %s312_s16 = sshll.u32 %s7931_s30, 4  ;;  %p7793_p4 = scmp.ne.s32.totalorder %s10209_s7, %s7792_s29  ;;  %s313_s16 = int_to_ptr.vmem [resolvable:$true] %s312_s16 }
  0x58   : > { %p7799_p10 = scmp.lt.u32.totalorder %s7792_s29, %s10209_s7 }
  0x59   : > { %p7795_p8 = pnand %p7793_p4, %p8054_p13 }
  0x5b   : > { %p7796_p6 = pneg %p7795_p8 }
  0x5d   : > { %p7801_p3 = pnand %p7799_p10, %p7796_p6 }
  0x5f   : > { %7804 = shalt.err (!%p7801_p3)
}
  0x60   : > { %s7805_s24 = scalar_lea.vmem %s313_s16, 1024  ;;  %p7813_p12 = scmp.lt.s32.totalorder %s313_s16, %s313_s16 }
  0x61   : > { %p7806_p5 = scmp.ne.s32.totalorder %s313_s16, %s7805_s24  ;;  %p7814_p0 = scmp.lt.s32.totalorder %s7805_s24, %s7805_s24 }
  0x63   : > { %p7808_p7 = pnand %p7806_p5, %p8054_p13  ;;  %p7815_p1 = por %p7814_p0, %p7813_p12 }
  0x65   : > { %p7809_p9 = pneg %p7808_p7 }
  0x67   : > { %p7816_p2 = pnand %p7815_p1, %p7809_p9 }
  0x69   : > { %7819 = shalt.err (!%p7816_p2)
}
  0x6a   : > { %7469 = dma.hbm_to_vmem [thread:$0]  (!%p8038_p11), %s10209_s7, 1024, %s313_s16, [#allocation11], %s7929_s25, %s7929_s25, %s7930_s26  }
  0x6b   : > { %s8148_s14 = sadd.s32 1, %s7924_s12   ;;  %s34_s20 = sadd.s32 1, %s7920_s11 }
  0x6c   : > { %s31_s30 = ssub.s32 %s7924_s12, %s8148_s14  ;;  %p41_p13 = scmp.ne.s32.totalorder %s7920_s11, %s7916_s10 }
  0x6d   : > { %p32_p4 = scmp.eq.s32.totalorder %s31_s30, 0  ;;  %p42_p8 = scmp.eq.s32.totalorder %s7924_s12, 0 }
  0x6e   : > { %p10226_p6 = scmp.eq.s32.totalorder %s8008_s13, 1  ;;  %p7482_p3 = scmp.lt.s32.totalorder %s7924_s12, 2 }
  0x6f   : > { %s8164_s28 = scalar_select %p32_p4, %s7920_s11, %s34_s20  }
  0x70   : > { %p8158_p10 = por %p10226_p6, %p41_p13  ;;  %p43_p5 = por %p42_p8, %p41_p13 }
  0x71   : > { %s329_s29 = sand.u32 1, %s7920_s11   ;;  %s6507_s16 = sshll.u32 %s7924_s12, 11 }
  0x72   : > { %s6152_s18 = sshll.u32 %s329_s29, 7  ;;  %s8171_s19 = scalar_lea.hbm %s10202_s0, %s6507_s16 }
  0x73   : > { %s333_s24 = scalar_lea.vmem [#allocation4], %s6152_s18  ;;  %p8175_p11 = pnand %p7482_p3, %p43_p5 }
  0x74   : > { %s340_s22 = sshll.u32 %s333_s24, 4  ;;  %s8179_s20 = scalar_lea.sflag [#allocation5], %s329_s29  ;;  %s8173_s22 = int_to_ptr.vmem [resolvable:$true] %s340_s22 }
  0x75   : > { %s7820_s30 = scalar_lea.hbm %s8171_s19, 2048  ;;  %p7822_p9 = pneg %p8175_p11 }
  0x76   : > { %p7821_p7 = scmp.ne.s32.totalorder %s8171_s19, %s7820_s30  ;;  %s7825_s21 = scalar_lea.hbm %s10202_s0, 4096 }
  0x77   : > { %p7826_p1 = scmp.lt.u32.totalorder %s8171_s19, %s10202_s0  ;;  %p7827_p2 = scmp.lt.u32.totalorder %s7825_s21, %s7820_s30 }
  0x78   : > { %p7823_p12 = pnand %p7822_p9, %p7821_p7  ;;  %p7829_p4 = scmp.lt.u32.totalorder %s7820_s30, %s8171_s19 }
  0x79   : > { %p7828_p13 = por %p7827_p2, %p7826_p1 }
  0x7a   : > { %p7824_p0 = pneg %p7823_p12 }
  0x7b   : > { %p7830_p8 = por %p7829_p4, %p7828_p13 }
  0x7d   : > { %p7831_p6 = pnand %p7830_p8, %p7824_p0 }
  0x7f   : > { %7834 = shalt.err (!%p7831_p6)
}
  0x80   : > { %s7835_s29 = scalar_lea.vmem %s8173_s22, 2048  ;;  %s7932_s18 = smov [#allocation4]  }
  0x81   : > { %p7836_p3 = scmp.ne.s32.totalorder %s8173_s22, %s7835_s29  ;;  %s7840_s16 = sshll.u32 %s7932_s18, 4  ;;  %s7841_s16 = int_to_ptr.vmem [resolvable:$false] %s7840_s16 }
  0x82   : > { %s7842_s23 = scalar_lea.vmem %s7841_s16, 4096  ;;  %p7843_p12 = scmp.lt.s32.totalorder %s8173_s22, %s7841_s16 }
  0x83   : > { %p7838_p5 = pnand %p7836_p3, %p7822_p9  ;;  %p7844_p1 = scmp.lt.s32.totalorder %s7842_s23, %s7835_s29 }
  0x85   : > { %p7839_p7 = pneg %p7838_p5  ;;  %p7845_p2 = por %p7844_p1, %p7843_p12 }
  0x87   : > { %p7846_p13 = pnand %p7845_p2, %p7839_p7 }
  0x89   : > { %7849 = shalt.err (!%p7846_p13)
}
  0x8a   : > { %7473 = dma.hbm_to_vmem [thread:$0]  (!%p8175_p11), %s8171_s19, 2048, %s8173_s22, %s8179_s20, %s7929_s25, %s7929_s25, %s7930_s26  }
  0x8b   : > { %p10229_p9 = scmp.ne.s32.totalorder %s10223_s17, 0 }
  0x8d   : > { %352 = sbr.rel (%p10229_p9) target bundleno = 1293 (0x50d), region = 56 }
  0x94   : > { %s8213_s30 = sand.u32 1, %s7916_s10   ;;  %p10230_p0 = scmp.ne.s32.totalorder %s10220_s15, 0 }
  0x95   : > { %s6156_s21 = sshll.u32 %s8213_s30, 7  ;;  %s355_s24 = scalar_lea.sflag [#allocation5], %s8213_s30 }
  0x96   : > { %s8217_s29 = scalar_lea.vmem [#allocation4], %s6156_s21 }
  0x97   : > { %7895 = dma.done.wait (%p10230_p0), %s355_s24, 2048  }
  0x98   : > { %7897 = vsyncadd (%p10230_p0), %s355_s24, 4294965248  ;;  %p10231_p11 = scmp.eq.s32.totalorder %s8008_s13, 0 }
  0x9a   : > { %7899 = dma.done.wait (%p10231_p11), [#allocation8], 10240   ;;  %p10232_p4 = pmov %p10231_p11 }
  0x9c   : > { %7901 = vsyncadd (%p10232_p4), [#allocation8], 4294957056  ;;  %p10233_p8 = pmov %p10232_p4 }
  0x9d   : > { %p10234_p6 = pmov %p10232_p4 }
  0x9e   : > { %7903 = dma.done.wait (%p10233_p8), [#allocation11], 2048  }
  0x9f   : > { %7905 = vsyncadd (%p10234_p6), [#allocation11], 4294965248  ;;  %v7529_v0 = vld [vmem:[#allocation7] sm:$0xff]   ;;  %v7530_v1 = vld [vmem:[#allocation7 + $0x8] sm:$0xff]   ;;  %vm809_vm0 = vcmask 1040384   ;;  %vm1341_vm5 = vcmask 1043456  }
  0xa0   : > { %6997 = vmatprep.subr.bf16.mxu0 %v7529_v0  ;;  %v7531_v2 = vld [vmem:[#allocation7 + $0x10] sm:$0xff]   ;;  %v7532_v3 = vld [vmem:[#allocation7 + $0x18] sm:$0xff]   ;;  %v410_v4 = vld [vmem:[%s8217_s29] sm:$0xff]   ;;  %vm810_vm1 = vsmask.f32 256  ;;  %vm1954_vm9 = vcmask 1042432  }
  0xa1   : > { %6998 = vmatpush3.bf16.msra.mxu0 %v7529_v0  ;;  %v8233_v5 = vld [vmem:[%s8217_s29 + $0x8] sm:$0xff]   ;;  %v5768_v6 = vunpack.c.l.bf16 %v410_v4  ;;  %v5769_v7 = vunpack.c.h.bf16 %v410_v4  ;;  %v8237_v9 = vld [vmem:[%s8217_s29 + $0x10] sm:$0xff]   ;;  %v8242_v12 = vld [vmem:[%s8217_s29 + $0x18] sm:$0xff]   ;;  %7013 = vmatprep.mubr.bf16.mxu0 %v410_v4  ;;  %vm866_vm3 = vsmask.f32 7938  ;;  %vm1955_vm10 = vcmask 1046532  }
  0xa2   : > { %6999 = vmatprep.subr.bf16.mxu0 %v7530_v1  ;;  %v5770_v8 = vunpack.c.l.bf16 %v8233_v5  ;;  %v5771_v10 = vunpack.c.h.bf16 %v8233_v5  ;;  %v5772_v11 = vunpack.c.l.bf16 %v8237_v9  ;;  %v7533_v13 = vld [vmem:[#allocation7 + $0x20] sm:$0xff]   ;;  %v5773_v15 = vunpack.c.h.bf16 %v8237_v9  ;;  %v8256_v21 = vld [vmem:[%s8217_s29 + $0x28] sm:$0xff]   ;;  %v8259_v22 = vld [vmem:[%s8217_s29 + $0x30] sm:$0xff]   ;;  %s6161_s23 = sshll.u32 %s8213_s30, 6  ;;  %s10280_s25 = sld [smem:[#allocation35_spill]] }
  0xa3   : > { %v5774_v16 = vunpack.c.l.bf16 %v8242_v12  ;;  %v8249_v17 = vld [vmem:[%s8217_s29 + $0x20] sm:$0xff]   ;;  %v5775_v19 = vunpack.c.h.bf16 %v8242_v12  ;;  %v8262_v23 = vld [vmem:[%s8217_s29 + $0x38] sm:$0xff]   ;;  %v5778_v26 = vunpack.c.l.bf16 %v8256_v21  ;;  %v7534_v28 = vld [vmem:[#allocation7 + $0x28] sm:$0xff]   ;;  %v5779_v30 = vunpack.c.h.bf16 %v8256_v21  ;;  %s408_s21 = scalar_lea.vmem [#allocation13], %s6161_s23  ;;  %s7934_s22 = smov [#allocation13]  }
  0xa4   : > { %v8244_v14 = vadd.f32 %v5770_v8, %v5768_v6  ;;  %v8251_v18 = vadd.f32 %v5771_v10, %v5769_v7  ;;  %v5776_v20 = vunpack.c.l.bf16 %v8249_v17  ;;  %v5777_v25 = vunpack.c.h.bf16 %v8249_v17  ;;  %v8269_v27 = vld [vmem:[%s8217_s29 + $0x40] sm:$0xff]   ;;  %v428_v32 = vld [vmem:[%s8217_s29 + $0x48] sm:$0xff]   ;;  %v430_v36 = vld [vmem:[%s8217_s29 + $0x50] sm:$0xff]   ;;  %s6034_s24 = sshll.u32 %s408_s21, 4  ;;  %s7854_s9 = sshll.u32 %s7934_s22, 4  ;;  %s10153_s24 = int_to_ptr.vmem [resolvable:$true] %s6034_s24  ;;  %s7855_s9 = int_to_ptr.vmem [resolvable:$false] %s7854_s9 }
  0xa5   : > { %7000 = vmatpush3.bf16.msra.mxu0 %v7530_v1  ;;  %v8264_v24 = vadd.f32 %v5774_v16, %v5772_v11  ;;  %v8271_v29 = vadd.f32 %v5775_v19, %v5773_v15  ;;  %v5780_v31 = vunpack.c.l.bf16 %v8259_v22  ;;  %v5781_v34 = vunpack.c.h.bf16 %v8259_v22  ;;  %v432_v40 = vld [vmem:[%s8217_s29 + $0x58] sm:$0xff]   ;;  %v434_v44 = vld [vmem:[%s8217_s29 + $0x60] sm:$0xff]   ;;  %v7535_v45 = vld [vmem:[#allocation7 + $0x30] sm:$0xff]   ;;  %s7850_s19 = scalar_lea.vmem %s10153_s24, 1024  ;;  %s7856_s20 = scalar_lea.vmem %s7855_s9, 2048 }
  0xa6   : > { %7001 = vmatprep.subr.bf16.mxu0 %v7531_v2  ;;  %10235 = vst [vmem:[#allocation20_spill] sm:$0xff] %v8251_v18  ;;  %v8276_v33 = vadd.f32 %v5778_v26, %v5776_v20  ;;  %v5782_v35 = vunpack.c.l.bf16 %v8262_v23  ;;  %v8281_v37 = vadd.f32 %v5779_v30, %v5777_v25  ;;  %v5783_v38 = vunpack.c.h.bf16 %v8262_v23  ;;  %v436_v49 = vld [vmem:[%s8217_s29 + $0x68] sm:$0xff]   ;;  %v438_v53 = vld [vmem:[%s8217_s29 + $0x70] sm:$0xff]   ;;  %v440_v57 = vld [vmem:[%s8217_s29 + $0x78] sm:$0xff]   ;;  %s6540_s29 = sshll.u32 %s8008_s13, 10  ;;  %s6021_s13 = scalar_lea.sflag [#allocation6], %s8213_s30 }
  0xa7   : > { %10236 = vst [vmem:[#allocation21_spill] sm:$0xff] %v8264_v24  ;;  %10237 = vst [vmem:[#allocation22_spill] sm:$0xff] %v8271_v29  ;;  %v5784_v39 = vunpack.c.l.bf16 %v8269_v27  ;;  %v5785_v42 = vunpack.c.h.bf16 %v8269_v27  ;;  %v5786_v43 = vunpack.c.l.bf16 %v428_v32  ;;  %v5787_v47 = vunpack.c.h.bf16 %v428_v32  ;;  %v7536_v61 = vld [vmem:[#allocation7 + $0x38] sm:$0xff]   ;;  %v7553_v10 = vld [vmem:[#allocation9 + $0x140] sm:$0xff]   ;;  %p7851_p3 = scmp.ne.s32.totalorder %s10153_s24, %s7850_s19  ;;  %p7857_p12 = scmp.lt.s32.totalorder %s10153_s24, %s7855_s9 }
  0xa8   : > { %10238 = vst [vmem:[#allocation23_spill] sm:$0xff] %v8276_v33  ;;  %10239 = vst [vmem:[#allocation24_spill] sm:$0xff] %v8281_v37  ;;  %v8286_v41 = vadd.f32 %v5782_v35, %v5780_v31  ;;  %v8290_v46 = vadd.f32 %v5783_v38, %v5781_v34  ;;  %v5788_v48 = vunpack.c.l.bf16 %v430_v36  ;;  %v5789_v51 = vunpack.c.h.bf16 %v430_v36  ;;  %v7554_v11 = vld [vmem:[#allocation9 + $0x148] sm:$0xff]   ;;  %v815_v15 = vld [vmem:[#allocation2 + $0xc] sm:$0x1]  ;;  %s10158_s26 = scalar_lea.hbm %s10280_s25, %s6540_s29  ;;  %p7858_p1 = scmp.lt.s32.totalorder %s7856_s20, %s7850_s19 }
  0xa9   : > { %7002 = vmatpush3.bf16.msra.mxu0 %v7531_v2  ;;  %v8293_v50 = vadd.f32 %v5786_v43, %v5784_v39  ;;  %v5790_v52 = vunpack.c.l.bf16 %v432_v40  ;;  %v8296_v54 = vadd.f32 %v5787_v47, %v5785_v42  ;;  %v5791_v55 = vunpack.c.h.bf16 %v432_v40  ;;  %vm8320_vm2 = vmand %vm809_vm0, %vm810_vm1  ;;  %v7555_v16 = vld [vmem:[#allocation9 + $0x100] sm:$0xff]   ;;  %v874_v19 = vld [vmem:[#allocation2 + $0x20] sm:$0x1]  ;;  %p7852_p5 = pnand %p7851_p3, %p8158_p10 }
  0xaa   : > { %7003 = vmatprep.subr.bf16.mxu0 %v7532_v3  ;;  %10240 = vst [vmem:[#allocation25_spill] sm:$0xff] %v8286_v41  ;;  %10241 = vst [vmem:[#allocation26_spill] sm:$0xff] %v8290_v46  ;;  %v5792_v56 = vunpack.c.l.bf16 %v434_v44  ;;  %v5793_v59 = vunpack.c.h.bf16 %v434_v44  ;;  %v5794_v60 = vunpack.c.l.bf16 %v436_v49  ;;  %v5795_v63 = vunpack.c.h.bf16 %v436_v49  ;;  %v7556_v20 = vld [vmem:[#allocation9 + $0xc0] sm:$0xff]   ;;  %6565 = vmatprep.subr.bf16.mxu1 %v7555_v16  ;;  %v7557_v25 = vld [vmem:[#allocation9 + $0x108] sm:$0xff]   ;;  %p7859_p2 = por %p7858_p1, %p7857_p12 }
  0xab   : > { %10242 = vst [vmem:[#allocation27_spill] sm:$0xff] %v8293_v50  ;;  %10243 = vst [vmem:[#allocation28_spill] sm:$0xff] %v8296_v54  ;;  %v8299_v58 = vadd.f32 %v5790_v52, %v5788_v48  ;;  %v8301_v62 = vadd.f32 %v5791_v55, %v5789_v51  ;;  %v5796_v0 = vunpack.c.l.bf16 %v438_v53  ;;  %v5797_v2 = vunpack.c.h.bf16 %v438_v53  ;;  %6566 = vmatpush3.bf16.msra.mxu1 %v7556_v20  ;;  %v7558_v26 = vld [vmem:[#allocation9 + $0x150] sm:$0xff]   ;;  %v821_v31 = vld [vmem:[#allocation2 + $0x24] sm:$0x1]  ;;  %p7853_p7 = pneg %p7852_p5 }
  0xac   : > { %v8303_v1 = vadd.f32 %v5794_v60, %v5792_v56  ;;  %v8305_v4 = vadd.f32 %v5795_v63, %v5793_v59  ;;  %v5799_v6 = vunpack.c.h.bf16 %v440_v57  ;;  %vm8327_vm4 = vmand %vm809_vm0, %vm866_vm3  ;;  %6567 = vmatprep.subr.bf16.mxu1 %v7557_v25  ;;  %v7560_v34 = vld [vmem:[#allocation9 + $0x110] sm:$0xff]   ;;  %v7562_v35 = vld [vmem:[#allocation9 + $0x158] sm:$0xff]   ;;  %vm1018_vm6 = vsmask.f32 4368 }
  0xad   : > { %7004 = vmatpush3.bf16.msra.mxu0 %v7532_v3  ;;  %10244 = vst [vmem:[#allocation29_spill] sm:$0xff] %v8299_v58  ;;  %10245 = vst [vmem:[#allocation30_spill] sm:$0xff] %v8301_v62  ;;  %v5798_v3 = vunpack.c.l.bf16 %v440_v57  ;;  %v7563_v38 = vld [vmem:[#allocation9 + $0x118] sm:$0xff]   ;;  %v7565_v39 = vld [vmem:[#allocation9 + $0x160] sm:$0xff]   ;;  %vm1503_vm12 = vsmask.f32 3328  ;;  %p7860_p13 = pnand %p7859_p2, %p7853_p7 }
  0xae   : > { %7005 = vmatprep.subr.bf16.mxu0 %v7533_v13  ;;  %10246 = vst [vmem:[#allocation31_spill] sm:$0xff] %v8303_v1  ;;  %10247 = vst [vmem:[#allocation32_spill] sm:$0xff] %v8305_v4  ;;  %v8309_v8 = vadd.f32 %v5799_v6, %v5797_v2  ;;  %v7564_v42 = vld [vmem:[#allocation9 + $0xd8] sm:$0xff]   ;;  %v880_v43 = vld [vmem:[#allocation2 + $0x38] sm:$0x1] }
  0xaf   : > { %v8307_v7 = vadd.f32 %v5798_v3, %v5796_v0  ;;  %v7566_v47 = vld [vmem:[#allocation9 + $0x120] sm:$0xff]   ;;  %v7568_v48 = vld [vmem:[#allocation9 + $0x168] sm:$0xff]   ;;  %v7571_v52 = vld [vmem:[#allocation9 + $0x170] sm:$0xff]   ;;  %vm1504_vm13 = vsmask.f32 7440 }
  0xb0   : > { %10249 = vst [vmem:[#allocation34_spill] sm:$0xff] %v8309_v8  ;;  %v7569_v51 = vld [vmem:[#allocation9 + $0x128] sm:$0xff]   ;;  %v827_v55 = vld [vmem:[#allocation2 + $0x3c] sm:$0x1]  ;;  %v886_v60 = vld [vmem:[#allocation2 + $0x50] sm:$0x1] }
  0xb1   : > { %7006 = vmatpush3.bf16.msra.mxu0 %v7533_v13  ;;  %10248 = vst [vmem:[#allocation33_spill] sm:$0xff] %v8307_v7  ;;  %v883_v56 = vld [vmem:[#allocation2 + $0x44] sm:$0x1]  ;;  %v828_v59 = vsel %vm8320_vm2, 0, %v827_v55  ;;  %v7572_v2 = vld [vmem:[#allocation9 + $0x130] sm:$0xff]   ;;  %v7574_v3 = vld [vmem:[#allocation9 + $0x178] sm:$0xff]  }
  0xb2   : > { %7007 = vmatprep.subr.bf16.mxu0 %v7534_v28  ;;  %829 = vst [vmem:[#allocation2 + $0x3c] sm:$0x1] %v828_v59  ;;  %v884_v63 = vsel %vm8327_vm4, 0, %v883_v56  ;;  %v7570_v0 = vld [vmem:[#allocation9 + $0xe8] sm:$0xff]   ;;  %v7573_v6 = vld [vmem:[#allocation9 + $0xf0] sm:$0xff]   ;;  %vm8404_vm7 = vmand %vm1341_vm5, %vm866_vm3 }
  0xb3   : > { %885 = vst [vmem:[#allocation2 + $0x44] sm:$0x1] %v884_v63  ;;  %v839_v25 = vld [vmem:[#allocation2 + $0x6c] sm:$0x1]  ;;  %v860_v55 = vld [vmem:[#allocation2 + $0xc0] sm:$0x1]  ;;  %vm8411_vm8 = vmor %vm810_vm1, %vm1018_vm6 }
  0xb4   : > { %v861_v56 = vsel %vm8320_vm2, 0, %v860_v55  ;;  %v913_v63 = vld [vmem:[#allocation2 + $0xbc] sm:$0x1]  ;;  %vm8493_vm11 = vmor %vm1954_vm9, %vm1955_vm10 }
  0xb5   : > { %7008 = vmatpush3.bf16.msra.mxu0 %v7534_v28  ;;  %v824_v28 = vld [vmem:[#allocation2 + $0x30] sm:$0x1]  ;;  %862 = vst [vmem:[#allocation2 + $0xc0] sm:$0x1] %v861_v56  ;;  %vm8569_vm14 = vmor %vm1503_vm12, %vm1504_vm13 }
  0xb6   : > { %7009 = vmatprep.subr.bf16.mxu0 %v7535_v45  ;;  %v825_v30 = vsel %vm8320_vm2, 0, %v824_v28 }
  0xb7   : > { %826 = vst [vmem:[#allocation2 + $0x30] sm:$0x1] %v825_v30  ;;  %v895_v30 = vld [vmem:[#allocation2 + $0x74] sm:$0x1] }
  0xb9   : > { %7010 = vmatpush3.bf16.msra.mxu0 %v7535_v45  ;;  %v881_v45 = vsel %vm8327_vm4, 0, %v880_v43 }
  0xba   : > { %7011 = vmatprep.subr.bf16.mxu0 %v7536_v61  ;;  %882 = vst [vmem:[#allocation2 + $0x38] sm:$0x1] %v881_v45 }
  0xbd   : > { %7012 = vmatpush3.bf16.msra.mxu0 %v7536_v61  ;;  %v887_v61 = vsel %vm8327_vm4, 0, %v886_v60  ;;  %v916_v60 = vld [vmem:[#allocation2 + $0xc8] sm:$0x1] }
  0xbe   : > { %7045 = vmatprep.subr.bf16.mxu0 %v7553_v10  ;;  %888 = vst [vmem:[#allocation2 + $0x50] sm:$0x1] %v887_v61  ;;  %v917_v61 = vsel %vm8327_vm4, 0, %v916_v60 }
  0xbf   : > { %918 = vst [vmem:[#allocation2 + $0xc8] sm:$0x1] %v917_v61 }
  0xc0   : > { %7014 = vmatmul.mubr.bf16.vlgmr.msra.gmra.mrb[0].mxu0 %v8233_v5 }
  0xc1   : > { %7017 = vmatprep.mubr.bf16.mxu0 %v8237_v9  ;;  %7046 = vmatpush3.bf16.msra.mxu0 %v7553_v10  ;;  %v818_v9 = vld [vmem:[#allocation2 + $0x18] sm:$0x1]  ;;  %v7575_v10 = vld [vmem:[#allocation9 + $0x138] sm:$0xff]  }
  0xc2   : > { %7047 = vmatprep.subr.bf16.mxu0 %v7554_v11 }
  0xc5   : > { %7048 = vmatpush3.bf16.msra.mxu0 %v7554_v11  ;;  %v889_v11 = vld [vmem:[#allocation2 + $0x5c] sm:$0x1] }
  0xc6   : > { %7049 = vmatprep.subr.bf16.mxu0 %v7558_v26 }
  0xc8   : > { %7018 = vmatmul.mubr.bf16.gmra.mrb[4].mxu0 %v8242_v12  ;;  %v819_v12 = vsel %vm8320_vm2, 0, %v818_v9  ;;  %v833_v9 = vld [vmem:[#allocation2 + $0x54] sm:$0x1] }
  0xc9   : > { %7021 = vmatprep.mubr.bf16.mxu0 %v8249_v17  ;;  %820 = vst [vmem:[#allocation2 + $0x18] sm:$0x1] %v819_v12  ;;  %v816_v17 = vsel %vm8320_vm2, 0, %v815_v15  ;;  %7050 = vmatpush3.bf16.msra.mxu0 %v7558_v26  ;;  %v836_v12 = vld [vmem:[#allocation2 + $0x60] sm:$0x1]  ;;  %v834_v16 = vsel %vm8320_vm2, 0, %v833_v9 }
  0xca   : > { %817 = vst [vmem:[#allocation2 + $0xc] sm:$0x1] %v816_v17  ;;  %7051 = vmatprep.subr.bf16.mxu0 %v7562_v35  ;;  %v837_v15 = vsel %vm8320_vm2, 0, %v836_v12  ;;  %835 = vst [vmem:[#allocation2 + $0x54] sm:$0x1] %v834_v16  ;;  %v840_v26 = vsel %vm8320_vm2, 0, %v839_v25 }
  0xcb   : > { %838 = vst [vmem:[#allocation2 + $0x60] sm:$0x1] %v837_v15  ;;  %v892_v17 = vld [vmem:[#allocation2 + $0x68] sm:$0x1]  ;;  %841 = vst [vmem:[#allocation2 + $0x6c] sm:$0x1] %v840_v26 }
  0xcc   : > { %v893_v20 = vsel %vm8327_vm4, 0, %v892_v17 }
  0xcd   : > { %7052 = vmatpush3.bf16.msra.mxu0 %v7562_v35  ;;  %894 = vst [vmem:[#allocation2 + $0x68] sm:$0x1] %v893_v20 }
  0xce   : > { %7053 = vmatprep.subr.bf16.mxu0 %v7565_v39 }
  0xd0   : > { %7022 = vmatmul.mubr.bf16.gmra.mrb[8].mxu0 %v8256_v21  ;;  %v875_v21 = vsel %vm8327_vm4, 0, %v874_v19  ;;  %v890_v19 = vsel %vm8327_vm4, 0, %v889_v11 }
  0xd1   : > { %7025 = vmatprep.mubr.bf16.mxu0 %v8259_v22  ;;  %v871_v22 = vld [vmem:[#allocation2 + $0x14] sm:$0x1]  ;;  %876 = vst [vmem:[#allocation2 + $0x20] sm:$0x1] %v875_v21  ;;  %7054 = vmatpush3.bf16.msra.mxu0 %v7565_v39  ;;  %891 = vst [vmem:[#allocation2 + $0x5c] sm:$0x1] %v890_v19 }
  0xd2   : > { %7055 = vmatprep.subr.bf16.mxu0 %v7568_v48  ;;  %v842_v21 = vld [vmem:[#allocation2 + $0x78] sm:$0x1] }
  0xd3   : > { %v904_v39 = vld [vmem:[#allocation2 + $0x98] sm:$0x1] }
  0xd5   : > { %7056 = vmatpush3.bf16.msra.mxu0 %v7568_v48 }
  0xd6   : > { %7057 = vmatprep.subr.bf16.mxu0 %v7571_v52 }
  0xd8   : > { %7026 = vmatmul.mubr.bf16.gmra.mrb[12].mxu0 %v8262_v23  ;;  %v872_v23 = vsel %vm8327_vm4, 0, %v871_v22  ;;  %v843_v22 = vsel %vm8320_vm2, 0, %v842_v21  ;;  %v1354_v61 = vld [vmem:[#allocation2 + $0x20] sm:$0x1] }
  0xd9   : > { %7029 = vmatprep.mubr.bf16.mxu0 %v8269_v27  ;;  %873 = vst [vmem:[#allocation2 + $0x14] sm:$0x1] %v872_v23  ;;  %v7559_v27 = vld [vmem:[#allocation9 + $0xc8] sm:$0xff]   ;;  %7058 = vmatpush3.bf16.msra.mxu0 %v7571_v52  ;;  %844 = vst [vmem:[#allocation2 + $0x78] sm:$0x1] %v843_v22  ;;  %v7576_v23 = vld [vmem:[#allocation9 + $0xf8] sm:$0xff]  }
  0xda   : > { %6568 = vmatpush3.bf16.msra.mxu1 %v7559_v27  ;;  %7059 = vmatprep.subr.bf16.mxu0 %v7574_v3  ;;  %v898_v27 = vld [vmem:[#allocation2 + $0x80] sm:$0x1]  ;;  %v907_v52 = vld [vmem:[#allocation2 + $0xa4] sm:$0x1] }
  0xdb   : > { %6569 = vmatprep.subr.bf16.mxu1 %v7560_v34  ;;  %v899_v28 = vsel %vm8327_vm4, 0, %v898_v27  ;;  %v848_v34 = vld [vmem:[#allocation2 + $0x90] sm:$0x1] }
  0xdc   : > { %900 = vst [vmem:[#allocation2 + $0x80] sm:$0x1] %v899_v28  ;;  %v849_v35 = vsel %vm8320_vm2, 0, %v848_v34 }
  0xdd   : > { %7060 = vmatpush3.bf16.msra.mxu0 %v7574_v3  ;;  %850 = vst [vmem:[#allocation2 + $0x90] sm:$0x1] %v849_v35 }
  0xe0   : > { %7030 = vmatmul.mubr.bf16.gmra.mrb[16].mxu0 %v428_v32  ;;  %v822_v32 = vsel %vm8320_vm2, 0, %v821_v31  ;;  %v896_v31 = vsel %vm8327_vm4, 0, %v895_v30 }
  0xe1   : > { %7033 = vmatprep.mubr.bf16.mxu0 %v430_v36  ;;  %823 = vst [vmem:[#allocation2 + $0x24] sm:$0x1] %v822_v32  ;;  %v7561_v36 = vld [vmem:[#allocation9 + $0xd0] sm:$0xff]   ;;  %897 = vst [vmem:[#allocation2 + $0x74] sm:$0x1] %v896_v31  ;;  %v7577_v32 = vld [vmem:[#allocation9 + $0x40] sm:$0xff]  }
  0xe2   : > { %6570 = vmatpush3.bf16.msra.mxu1 %v7561_v36  ;;  %6701 = vmatprep.subr.bf16.mxu0 %v7577_v32  ;;  %v845_v36 = vld [vmem:[#allocation2 + $0x84] sm:$0x1] }
  0xe3   : > { %6571 = vmatprep.subr.bf16.mxu1 %v7563_v38  ;;  %v846_v38 = vsel %vm8320_vm2, 0, %v845_v36 }
  0xe4   : > { %847 = vst [vmem:[#allocation2 + $0x84] sm:$0x1] %v846_v38 }
  0xe6   : > { %6572 = vmatpush3.bf16.msra.mxu1 %v7564_v42  ;;  %v901_v42 = vld [vmem:[#allocation2 + $0x8c] sm:$0x1] }
  0xe7   : > { %6573 = vmatprep.subr.bf16.mxu1 %v7566_v47  ;;  %v902_v43 = vsel %vm8327_vm4, 0, %v901_v42  ;;  %v851_v47 = vld [vmem:[#allocation2 + $0x9c] sm:$0x1]  ;;  %v1350_v42 = vld [vmem:[#allocation2 + $0x18] sm:$0xf] }
  0xe8   : > { %7034 = vmatmul.mubr.bf16.gmra.mrb[20].mxu0 %v432_v40  ;;  %v877_v40 = vld [vmem:[#allocation2 + $0x2c] sm:$0x1]  ;;  %903 = vst [vmem:[#allocation2 + $0x8c] sm:$0x1] %v902_v43  ;;  %v852_v48 = vsel %vm8320_vm2, 0, %v851_v47 }
  0xe9   : > { %7037 = vmatprep.mubr.bf16.mxu0 %v434_v44  ;;  %v878_v44 = vsel %vm8327_vm4, 0, %v877_v40  ;;  %v905_v40 = vsel %vm8327_vm4, 0, %v904_v39  ;;  %853 = vst [vmem:[#allocation2 + $0x9c] sm:$0x1] %v852_v48 }
  0xea   : > { %879 = vst [vmem:[#allocation2 + $0x2c] sm:$0x1] %v878_v44  ;;  %906 = vst [vmem:[#allocation2 + $0x98] sm:$0x1] %v905_v40  ;;  %v854_v44 = vld [vmem:[#allocation2 + $0xa8] sm:$0x1] }
  0xeb   : > { %v855_v45 = vsel %vm8320_vm2, 0, %v854_v44 }
  0xec   : > { %856 = vst [vmem:[#allocation2 + $0xa8] sm:$0x1] %v855_v45 }
  0xf0   : > { %7038 = vmatmul.mubr.bf16.gmra.mrb[24].mxu0 %v436_v49  ;;  %v7567_v49 = vld [vmem:[#allocation9 + $0xe0] sm:$0xff]  }
  0xf1   : > { %7041 = vmatprep.mubr.bf16.mxu0 %v438_v53  ;;  %6574 = vmatpush3.bf16.msra.mxu1 %v7567_v49  ;;  %v830_v53 = vld [vmem:[#allocation2 + $0x48] sm:$0x1]  ;;  %v910_v49 = vld [vmem:[#allocation2 + $0xb0] sm:$0x1] }
  0xf2   : > { %6575 = vmatprep.subr.bf16.mxu1 %v7569_v51  ;;  %v911_v51 = vsel %vm8327_vm4, 0, %v910_v49 }
  0xf3   : > { %912 = vst [vmem:[#allocation2 + $0xb0] sm:$0x1] %v911_v51 }
  0xf5   : > { %6576 = vmatpush3.bf16.msra.mxu1 %v7570_v0  ;;  %v914_v0 = vsel %vm8327_vm4, 0, %v913_v63 }
  0xf6   : > { %6577 = vmatprep.subr.bf16.mxu1 %v7572_v2  ;;  %915 = vst [vmem:[#allocation2 + $0xbc] sm:$0x1] %v914_v0  ;;  %v8396_v2 = vld [vmem:[%s10204_s2] ss:$0 sm:$0xff] }
  0xf8   : > { %7042 = vmatmul.mubr.bf16.gmra.mrb[28].mxu0 %v440_v57  ;;  %v831_v57 = vsel %vm8320_vm2, 0, %v830_v53  ;;  %v908_v53 = vsel %vm8327_vm4, 0, %v907_v52  ;;  %v1343_v52 = vld [vmem:[#allocation2 + $0xc] sm:$0xf] }
  0xf9   : > { %832 = vst [vmem:[#allocation2 + $0x48] sm:$0x1] %v831_v57  ;;  %6578 = vmatpush3.bf16.msra.mxu1 %v7573_v6  ;;  %909 = vst [vmem:[#allocation2 + $0xa4] sm:$0x1] %v908_v53  ;;  %v857_v57 = vld [vmem:[#allocation2 + $0xb4] sm:$0x1] }
  0xfa   : > { %6579 = vmatprep.subr.bf16.mxu1 %v7575_v10  ;;  %v858_v59 = vsel %vm8320_vm2, 0, %v857_v57 }
  0xfb   : > { %859 = vst [vmem:[#allocation2 + $0xb4] sm:$0x1] %v858_v59 }
  0xfd   : > { %6580 = vmatpush3.bf16.msra.mxu1 %v7576_v23 }
  0xfe   : > { %7237 = vmatprep.subr.bf16.mxu1 %v7577_v32 }
 0x193   : > { %v7015_v3 = vpop.f32.mrb[0].mxu0 }
 0x194   : > { %v652_v6 = vadd.f32 %v7015_v3, %v8396_v2  ;;  %v643_v10 = vpop.f32.mrb[1].mxu0 }
 0x195   : > { %v644_v9 = vadd.f32 %v8396_v2, %v643_v10  ;;  %v7016_v11 = vpop.f32.mrb[2].mxu0 }
 0x196   : > { %v772_v12 = vmax.f32 %v652_v6, 0.0  ;;  %v655_v15 = vadd.f32 %v7016_v11, %v8396_v2  ;;  %v646_v16 = vpop.f32.mrb[3].mxu0 }
 0x197   : > { %v770_v17 = vmax.f32 %v644_v9, 0.0  ;;  %v647_v19 = vadd.f32 %v8396_v2, %v646_v16  ;;  %v1347_v9 = vld [vmem:[#allocation2 + $0x14] sm:$0x1] }
 0x198   : > { %v6510_v20 = vpack.c.bf16 %v772_v12, %v772_v12  ;;  %v773_v21 = vmax.f32 %v655_v15, 0.0 }
 0x199   : > { %v6508_v22 = vpack.c.bf16 %v770_v17, %v770_v17  ;;  %v771_v23 = vmax.f32 %v647_v19, 0.0 }
 0x19a   : > { %v1038_v25 = vshrl.u32 %v6510_v20, 16  ;;  %v6511_v26 = vpack.c.bf16 %v773_v21, %v773_v21  ;;  %v1041_v27 = vshll.u32 %v6510_v20, 16 }
 0x19b   : > { %v1021_v28 = vshrl.u32 %v6508_v22, 16  ;;  %v1024_v30 = vshll.u32 %v6508_v22, 16  ;;  %v6509_v31 = vpack.c.bf16 %v771_v23, %v771_v23  ;;  %v7019_v32 = vpop.f32.mrb[4].mxu0 }
 0x19c   : > { %v1040_v34 = vrot.slane %v1038_v25, 7  ;;  %v1046_v35 = vshrl.u32 %v6511_v26, 16  ;;  %v1049_v36 = vshll.u32 %v6511_v26, 16  ;;  %v668_v38 = vadd.f32 %v7019_v32, %v8396_v2  ;;  %v659_v39 = vpop.f32.mrb[5].mxu0 }
 0x19d   : > { %v1023_v43 = vrot.slane %v1021_v28, 7  ;;  %v1029_v44 = vshrl.u32 %v6509_v31, 16  ;;  %v1032_v45 = vshll.u32 %v6509_v31, 16  ;;  %v660_v47 = vadd.f32 %v8396_v2, %v659_v39  ;;  %v7020_v48 = vpop.f32.mrb[6].mxu0 }
 0x19e   : > { %v1043_v49 = vor.u32 %v1041_v27, %v1040_v34  ;;  %v1044_v51 = vrot.slane %v1040_v34, 4  ;;  %v1048_v53 = vrot.slane %v1046_v35, 7  ;;  %v776_v55 = vmax.f32 %v668_v38, 0.0  ;;  %v662_v56 = vpop.f32.mrb[7].mxu0 }
 0x19f   : > { %v1026_v57 = vor.u32 %v1024_v30, %v1023_v43  ;;  %v1027_v59 = vrot.slane %v1023_v43, 4  ;;  %v1031_v63 = vrot.slane %v1029_v44, 7  ;;  %v774_v0 = vmax.f32 %v660_v47, 0.0 }
 0x1a0   : > { %v1351_v3 = vsel %vm8404_vm7, %v1043_v49, %v1350_v42  ;;  %v1051_v6 = vor.u32 %v1049_v36, %v1048_v53  ;;  %v1053_v10 = vrot.slane %v1048_v53, 4  ;;  %v6514_v11 = vpack.c.bf16 %v776_v55, %v776_v55  ;;  %v1364_v36 = vld [vmem:[#allocation2 + $0x30] sm:$0xf] }
 0x1a1   : > { %1352 = vst [vmem:[#allocation2 + $0x18] sm:$0xf] %v1351_v3  ;;  %v1344_v12 = vsel %vm8404_vm7, %v1026_v57, %v1343_v52  ;;  %v1034_v15 = vor.u32 %v1032_v45, %v1031_v63  ;;  %v1036_v16 = vrot.slane %v1031_v63, 4  ;;  %v6512_v17 = vpack.c.bf16 %v774_v0, %v774_v0  ;;  %v1357_v45 = vld [vmem:[#allocation2 + $0x24] sm:$0xf] }
 0x1a2   : > { %1345 = vst [vmem:[#allocation2 + $0xc] sm:$0xf] %v1344_v12  ;;  %v1052_v19 = vsel %vm8411_vm8, %v1044_v51, %v1051_v6  ;;  %v1355_v20 = vsel %vm8320_vm2, %v1053_v10, %v1354_v61  ;;  %v1072_v21 = vshrl.u32 %v6514_v11, 16  ;;  %v1075_v22 = vshll.u32 %v6514_v11, 16 }
 0x1a3   : > { %1353 = vst [vmem:[#allocation2 + $0x1c] sm:$0xf] %v1052_v19  ;;  %1356 = vst [vmem:[#allocation2 + $0x20] sm:$0x1] %v1355_v20  ;;  %v1035_v23 = vsel %vm8411_vm8, %v1027_v59, %v1034_v15  ;;  %v1348_v25 = vsel %vm8320_vm2, %v1036_v16, %v1347_v9  ;;  %v1055_v26 = vshrl.u32 %v6512_v17, 16  ;;  %v1058_v27 = vshll.u32 %v6512_v17, 16 }
 0x1a4   : > { %v7023_v28 = vpop.f32.mrb[8].mxu0  ;;  %1346 = vst [vmem:[#allocation2 + $0x10] sm:$0xf] %v1035_v23  ;;  %1349 = vst [vmem:[#allocation2 + $0x14] sm:$0x1] %v1348_v25  ;;  %v8427_v30 = vrot.slane %v1072_v21, 7  ;;  %v671_v31 = vadd.f32 %v7020_v48, %v8396_v2  ;;  %v663_v32 = vadd.f32 %v8396_v2, %v662_v56 }
 0x1a5   : > { %v684_v34 = vadd.f32 %v7023_v28, %v8396_v2  ;;  %v675_v35 = vpop.f32.mrb[9].mxu0  ;;  %v8432_v38 = vrot.slane %v1055_v26, 7  ;;  %v7933_v48 = vmov 0   ;;  %v1368_v16 = vld [vmem:[#allocation2 + $0x38] sm:$0x1] }
 0x1a6   : > { %v676_v39 = vadd.f32 %v8396_v2, %v675_v35  ;;  %v7024_v42 = vpop.f32.mrb[10].mxu0  ;;  %v1077_v43 = vor.u32 %v1075_v22, %v8427_v30  ;;  %v1078_v44 = vrot.slane %v8427_v30, 4  ;;  %v777_v47 = vmax.f32 %v671_v31, 0.0  ;;  %802 = vst [vmem:[#allocation2] sm:$0xf] %v7933_v48 }
 0x1a7   : > { %v775_v49 = vmax.f32 %v663_v32, 0.0  ;;  %v678_v51 = vpop.f32.mrb[11].mxu0  ;;  %803 = vst [vmem:[#allocation2 + $0x4] sm:$0xf] %v7933_v48  ;;  %804 = vst [vmem:[#allocation2 + $0x8] sm:$0x1] %v7933_v48  ;;  %v1060_v52 = vor.u32 %v1058_v27, %v8432_v38  ;;  %v687_v63 = vadd.f32 %v7024_v42, %v8396_v2 }
 0x1a8   : > { %806 = vst [vmem:[#allocation2 + $0xcc] sm:$0xf] %v7933_v48  ;;  %807 = vst [vmem:[#allocation2 + $0xd0] sm:$0xf] %v7933_v48  ;;  %v1061_v53 = vrot.slane %v8432_v38, 4  ;;  %v780_v55 = vmax.f32 %v684_v34, 0.0  ;;  %v1365_v57 = vsel %vm8404_vm7, %v1077_v43, %v1364_v36  ;;  %v6515_v59 = vpack.c.bf16 %v777_v47, %v777_v47 }
 0x1a9   : > { %808 = vst [vmem:[#allocation2 + $0xd4] sm:$0x1] %v7933_v48  ;;  %v778_v56 = vmax.f32 %v676_v39, 0.0  ;;  %v6513_v61 = vpack.c.bf16 %v775_v49, %v775_v49  ;;  %1366 = vst [vmem:[#allocation2 + $0x30] sm:$0xf] %v1365_v57  ;;  %v1358_v0 = vsel %vm8404_vm7, %v1060_v52, %v1357_v45  ;;  %v679_v10 = vadd.f32 %v8396_v2, %v678_v51 }
 0x1aa   : > { %v6518_v3 = vpack.c.bf16 %v780_v55, %v780_v55  ;;  %1359 = vst [vmem:[#allocation2 + $0x24] sm:$0xf] %v1358_v0  ;;  %v1080_v9 = vshrl.u32 %v6515_v59, 16  ;;  %v1083_v11 = vshll.u32 %v6515_v59, 16  ;;  %v1361_v17 = vld [vmem:[#allocation2 + $0x2c] sm:$0x1] }
 0x1ab   : > { %v6516_v6 = vpack.c.bf16 %v778_v56, %v778_v56  ;;  %v1063_v12 = vshrl.u32 %v6513_v61, 16  ;;  %v1066_v15 = vshll.u32 %v6513_v61, 16  ;;  %v7027_v23 = vpop.f32.mrb[12].mxu0  ;;  %v781_v27 = vmax.f32 %v687_v63, 0.0  ;;  %v1378_v32 = vld [vmem:[#allocation2 + $0x48] sm:$0xf] }
 0x1ac   : > { %v1106_v19 = vshrl.u32 %v6518_v3, 16  ;;  %v1109_v20 = vshll.u32 %v6518_v3, 16  ;;  %v1082_v25 = vrot.slane %v1080_v9, 7  ;;  %v779_v28 = vmax.f32 %v679_v10, 0.0  ;;  %v691_v30 = vpop.f32.mrb[13].mxu0 }
 0x1ad   : > { %v1089_v21 = vshrl.u32 %v6516_v6, 16  ;;  %v1092_v22 = vshll.u32 %v6516_v6, 16  ;;  %v1065_v26 = vrot.slane %v1063_v12, 7  ;;  %v700_v35 = vadd.f32 %v7027_v23, %v8396_v2  ;;  %v7028_v38 = vpop.f32.mrb[14].mxu0  ;;  %v1371_v47 = vld [vmem:[#allocation2 + $0x3c] sm:$0xf] }
 0x1ae   : > { %v8445_v31 = vrot.slane %v1106_v19, 7  ;;  %v692_v36 = vadd.f32 %v8396_v2, %v691_v30  ;;  %v1085_v39 = vor.u32 %v1083_v11, %v1082_v25  ;;  %v1087_v42 = vrot.slane %v1082_v25, 4  ;;  %v694_v49 = vpop.f32.mrb[15].mxu0  ;;  %v8469_v11 = vld [vmem:[#allocation2 + $0xc] sm:$0xe] }
 0x1af   : > { %v8447_v34 = vrot.slane %v1089_v21, 7  ;;  %v1068_v43 = vor.u32 %v1066_v15, %v1065_v26  ;;  %v1070_v45 = vrot.slane %v1065_v26, 4  ;;  %v6519_v0 = vpack.c.bf16 %v781_v27, %v781_v27  ;;  %v1375_v30 = vld [vmem:[#allocation2 + $0x44] sm:$0x1]  ;;  %v1891_v29 = vld [vmem:[#allocation2 + $0xc] sm:$0xe] }
 0x1b0   : > { %v1111_v51 = vor.u32 %v1109_v20, %v8445_v31  ;;  %v1112_v48 = vrot.slane %v8445_v31, 4  ;;  %v1086_v56 = vsel %vm8411_vm8, %v1078_v44, %v1085_v39  ;;  %v1369_v57 = vsel %vm8320_vm2, %v1087_v42, %v1368_v16  ;;  %v1382_v20 = vld [vmem:[#allocation2 + $0x50] sm:$0x1] }
 0x1b1   : > { %v1094_v52 = vor.u32 %v1092_v22, %v8447_v34  ;;  %v1095_v55 = vrot.slane %v8447_v34, 4  ;;  %v1069_v59 = vsel %vm8411_vm8, %v1061_v53, %v1068_v43  ;;  %v1362_v61 = vsel %vm8320_vm2, %v1070_v45, %v1361_v17  ;;  %1367 = vst [vmem:[#allocation2 + $0x34] sm:$0xf] %v1086_v56  ;;  %1370 = vst [vmem:[#allocation2 + $0x38] sm:$0x1] %v1369_v57 }
 0x1b2   : > { %1360 = vst [vmem:[#allocation2 + $0x28] sm:$0xf] %v1069_v59  ;;  %1363 = vst [vmem:[#allocation2 + $0x2c] sm:$0x1] %v1362_v61  ;;  %v1379_v63 = vsel %vm8404_vm7, %v1111_v51, %v1378_v32  ;;  %v6517_v3 = vpack.c.bf16 %v779_v28, %v779_v28  ;;  %v784_v53 = vmax.f32 %v700_v35, 0.0  ;;  %v782_v6 = vmax.f32 %v692_v36, 0.0 }
 0x1b3   : > { %v1372_v44 = vsel %vm8404_vm7, %v1094_v52, %v1371_v47  ;;  %1380 = vst [vmem:[#allocation2 + $0x48] sm:$0xf] %v1379_v63  ;;  %v703_v10 = vadd.f32 %v7028_v38, %v8396_v2  ;;  %v695_v9 = vadd.f32 %v8396_v2, %v694_v49  ;;  %v1114_v12 = vshrl.u32 %v6519_v0, 16  ;;  %v7031_v19 = vpop.f32.mrb[16].mxu0 }
 0x1b4   : > { %1373 = vst [vmem:[#allocation2 + $0x3c] sm:$0xf] %v1372_v44  ;;  %v1117_v15 = vshll.u32 %v6519_v0, 16  ;;  %v1097_v16 = vshrl.u32 %v6517_v3, 16  ;;  %v1100_v17 = vshll.u32 %v6517_v3, 16  ;;  %v6522_v21 = vpack.c.bf16 %v784_v53, %v784_v53  ;;  %v707_v26 = vpop.f32.mrb[17].mxu0 }
 0x1b5   : > { %v6520_v22 = vpack.c.bf16 %v782_v6, %v782_v6  ;;  %v785_v23 = vmax.f32 %v703_v10, 0.0  ;;  %v783_v25 = vmax.f32 %v695_v9, 0.0  ;;  %v1116_v27 = vrot.slane %v1114_v12, 7  ;;  %v8473_v34 = vpop.f32.mrb[18].mxu0  ;;  %v1392_v0 = vld [vmem:[#allocation2 + $0x60] sm:$0xf] }
 0x1b6   : > { %v1099_v28 = vrot.slane %v1097_v16, 7  ;;  %v716_v31 = vadd.f32 %v7031_v19, %v8396_v2  ;;  %v6283_v32 = vrot.slane %v8469_v11, 9  ;;  %v1140_v35 = vshrl.u32 %v6522_v21, 16  ;;  %v8475_v42 = vpop.f32.mrb[19].mxu0  ;;  %v1385_v3 = vld [vmem:[#allocation2 + $0x54] sm:$0xf] }
 0x1b7   : > { %v1143_v36 = vshll.u32 %v6522_v21, 16  ;;  %v1123_v38 = vshrl.u32 %v6520_v22, 16  ;;  %v1126_v39 = vshll.u32 %v6520_v22, 16  ;;  %v1119_v43 = vor.u32 %v1117_v15, %v1116_v27  ;;  %v8485_v53 = vld [vmem:[#allocation2 + $0x10] sm:$0xf] }
 0x1b8   : > { %v1121_v45 = vrot.slane %v1116_v27, 4  ;;  %v1102_v47 = vor.u32 %v1100_v17, %v1099_v28  ;;  %v1104_v49 = vrot.slane %v1099_v28, 4  ;;  %v1142_v51 = vrot.slane %v1140_v35, 7  ;;  %v8487_v11 = vld [vmem:[#allocation2 + $0x14] sm:$0x1] }
 0x1b9   : > { %v1125_v52 = vrot.slane %v1123_v38, 7  ;;  %v6523_v56 = vpack.c.bf16 %v785_v23, %v785_v23  ;;  %v6521_v57 = vpack.c.bf16 %v783_v25, %v783_v25  ;;  %v1120_v59 = vsel %vm8411_vm8, %v1112_v48, %v1119_v43  ;;  %v8489_v12 = vld [vmem:[#allocation2 + $0x18] sm:$0xe]  ;;  %v1389_v35 = vld [vmem:[#allocation2 + $0x5c] sm:$0x1] }
 0x1ba   : > { %v1383_v61 = vsel %vm8320_vm2, %v1121_v45, %v1382_v20  ;;  %v1103_v63 = vsel %vm8411_vm8, %v1095_v55, %v1102_v47  ;;  %v1376_v44 = vsel %vm8320_vm2, %v1104_v49, %v1375_v30  ;;  %1381 = vst [vmem:[#allocation2 + $0x4c] sm:$0xf] %v1120_v59  ;;  %v1145_v6 = vor.u32 %v1143_v36, %v1142_v51  ;;  %v1396_v43 = vld [vmem:[#allocation2 + $0x68] sm:$0x1] }
 0x1bb   : > { %1384 = vst [vmem:[#allocation2 + $0x50] sm:$0x1] %v1383_v61  ;;  %1374 = vst [vmem:[#allocation2 + $0x40] sm:$0xf] %v1103_v63  ;;  %v1146_v10 = vrot.slane %v1142_v51, 4  ;;  %v1128_v48 = vor.u32 %v1126_v39, %v1125_v52  ;;  %v1129_v9 = vrot.slane %v1125_v52, 4  ;;  %v708_v38 = vadd.f32 %v8396_v2, %v707_v26 }
 0x1bc   : > { %1377 = vst [vmem:[#allocation2 + $0x44] sm:$0x1] %v1376_v44  ;;  %v1148_v55 = vshrl.u32 %v6523_v56, 16  ;;  %v1151_v15 = vshll.u32 %v6523_v56, 16  ;;  %v1131_v16 = vshrl.u32 %v6521_v57, 16  ;;  %v1134_v17 = vshll.u32 %v6521_v57, 16 }
 0x1bd   : > { %v8497_v20 = vpop.f32.mrb[20].mxu0  ;;  %v1393_v21 = vsel %vm8404_vm7, %v1145_v6, %v1392_v0  ;;  %v1386_v22 = vsel %vm8404_vm7, %v1128_v48, %v1385_v3  ;;  %v788_v23 = vmax.f32 %v716_v31, 0.0  ;;  %v2823_v25 = vrot.slane %v8485_v53, 5  ;;  %v8515_v61 = vld [vmem:[#allocation2 + $0x1c] sm:$0xf] }
 0x1be   : > { %v8504_v27 = vpop.f32.mrb[21].mxu0  ;;  %1394 = vst [vmem:[#allocation2 + $0x60] sm:$0xf] %v1393_v21  ;;  %1387 = vst [vmem:[#allocation2 + $0x54] sm:$0xf] %v1386_v22  ;;  %v1150_v28 = vrot.slane %v1148_v55, 7 }
 0x1bf   : > { %v1133_v30 = vrot.slane %v1131_v16, 7  ;;  %v2826_v36 = vrot.slane %v8487_v11, 5  ;;  %v8508_v39 = vpop.f32.mrb[22].mxu0  ;;  %v6526_v45 = vpack.c.bf16 %v788_v23, %v788_v23  ;;  %v2824_v31 = vsel %vm8493_vm11, %v6283_v32, %v2823_v25  ;;  %v8517_v63 = vld [vmem:[#allocation2 + $0xc] sm:$0xf] }
 0x1c0   : > { %v2825_v47 = vrot.slane %v2823_v25, 4  ;;  %v6284_v49 = vrot.slane %v8489_v12, 9  ;;  %v8513_v51 = vpop.f32.mrb[23].mxu0  ;;  %v1153_v52 = vor.u32 %v1151_v15, %v1150_v28  ;;  %v1155_v56 = vrot.slane %v1150_v28, 4  ;;  %v8521_v32 = vld [vmem:[#allocation2 + $0x20] sm:$0x1] }
 0x1c1   : > { %v1136_v57 = vor.u32 %v1134_v17, %v1133_v30  ;;  %v1138_v59 = vrot.slane %v1133_v30, 4  ;;  %v1174_v26 = vshrl.u32 %v6526_v45, 16  ;;  %v1177_v44 = vshll.u32 %v6526_v45, 16  ;;  %v8592_v4 = vld [vmem:[#allocation2 + $0x28] sm:$0xf] }
 0x1c2   : > { %v2827_v0 = vsel %vm8493_vm11, %v2825_v47, %v2826_v36  ;;  %v786_v3 = vmax.f32 %v708_v38, 0.0  ;;  %v1154_v6 = vsel %vm8411_vm8, %v1146_v10, %v1153_v52  ;;  %v1397_v48 = vsel %vm8320_vm2, %v1155_v56, %v1396_v43  ;;  %v1406_v10 = vld [vmem:[#allocation2 + $0x78] sm:$0xf] }
 0x1c3   : > { %v1137_v12 = vsel %vm8411_vm8, %v1129_v9, %v1136_v57  ;;  %v1390_v55 = vsel %vm8320_vm2, %v1138_v59, %v1389_v35  ;;  %1395 = vst [vmem:[#allocation2 + $0x64] sm:$0xf] %v1154_v6  ;;  %1398 = vst [vmem:[#allocation2 + $0x68] sm:$0x1] %v1397_v48  ;;  %v8531_v15 = vrot.slane %v1174_v26, 7  ;;  %v6331_v16 = vcombine.low %v2824_v31, %v2827_v0  ;;  %v8540_v28 = vpop.f32.mrb[24].mxu0 }
 0x1c4   : > { %1388 = vst [vmem:[#allocation2 + $0x58] sm:$0xf] %v1137_v12  ;;  %1391 = vst [vmem:[#allocation2 + $0x5c] sm:$0x1] %v1390_v55  ;;  %v6524_v17 = vpack.c.bf16 %v786_v3, %v786_v3  ;;  %v2830_v21 = vrot.slane %v8515_v61, 5  ;;  %v2833_v22 = vrot.slane %v8521_v32, 5  ;;  %v719_v23 = vadd.f32 %v8473_v34, %v8396_v2 }
 0x1c5   : > { %v711_v9 = vadd.f32 %v8396_v2, %v8475_v42  ;;  %v2374_v25 = vshrl.u32 %v8517_v63, 16  ;;  %v1179_v30 = vor.u32 %v1177_v44, %v8531_v15  ;;  %7061 = vmatprep.mubr.bf16.mxu0 %v6331_v16  ;;  %v8544_v43 = vpop.f32.mrb[25].mxu0  ;;  %v2377_v59 = vshll.u32 %v8517_v63, 16  ;;  %v1399_v44 = vld [vmem:[#allocation2 + $0x6c] sm:$0xf]  ;;  %v8558_v48 = vld [vmem:[#allocation9] sm:$0xff]  }
 0x1c6   : > { %v1157_v36 = vshrl.u32 %v6524_v17, 16  ;;  %v1160_v38 = vshll.u32 %v6524_v17, 16  ;;  %v2831_v45 = vsel %vm8493_vm11, %v6284_v49, %v2830_v21  ;;  %v2832_v34 = vrot.slane %v2830_v21, 4  ;;  %v8548_v42 = vpop.f32.mrb[26].mxu0  ;;  %v8560_v21 = vld [vmem:[#allocation9 + $0x48] sm:$0xff]  }
 0x1c7   : > { %v789_v31 = vmax.f32 %v719_v23, 0.0  ;;  %v787_v47 = vmax.f32 %v711_v9, 0.0  ;;  %v1407_v52 = vsel %vm8404_vm7, %v1179_v30, %v1406_v10  ;;  %v2376_v57 = vrot.slane %v2374_v25, 4  ;;  %v8553_v26 = vpop.f32.mrb[27].mxu0  ;;  %v8562_v30 = vld [vmem:[#allocation2 + $0x18] sm:$0xf] }
 0x1c8   : > { %v1159_v56 = vrot.slane %v1157_v36, 7  ;;  %1408 = vst [vmem:[#allocation2 + $0x78] sm:$0xf] %v1407_v52  ;;  %v2834_v0 = vsel %vm8493_vm11, %v2832_v34, %v2833_v22  ;;  %v2383_v6 = vshll.u32 %v8485_v53, 16  ;;  %v2379_v17 = vrot.slane %v2377_v59, 5 }
 0x1c9   : > { %v6527_v49 = vpack.c.bf16 %v789_v31, %v789_v31  ;;  %v6525_v3 = vpack.c.bf16 %v787_v47, %v787_v47  ;;  %v6332_v16 = vcombine.low %v2831_v45, %v2834_v0  ;;  %v1410_v36 = vld [vmem:[#allocation2 + $0x80] sm:$0x1]  ;;  %v1403_v34 = vld [vmem:[#allocation2 + $0x74] sm:$0x1]  ;;  %v2393_v59 = vshll.u32 %v8487_v11, 16  ;;  %v8586_v11 = vld [vmem:[#allocation9 + $0x50] sm:$0xff]  }
 0x1ca   : > { %v1162_v12 = vor.u32 %v1160_v38, %v1159_v56  ;;  %v1163_v55 = vrot.slane %v1159_v56, 4  ;;  %v2380_v31 = vor.u32 %v2379_v17, %v2376_v57  ;;  %v2385_v47 = vrot.slane %v2383_v6, 5  ;;  %v8576_v0 = vld [vmem:[#allocation9 + $0x8] sm:$0xff]  }
 0x1cb   : > { %v1182_v10 = vshrl.u32 %v6527_v49, 16  ;;  %v1185_v23 = vshll.u32 %v6527_v49, 16  ;;  %v1165_v9 = vshrl.u32 %v6525_v3, 16  ;;  %v1168_v25 = vshll.u32 %v6525_v3, 16  ;;  %7062 = vmatmul.mubr.bf16.vlgmr.msra.gmra.mrb[32].mxu0 %v6332_v16  ;;  %v8578_v57 = vpop.f32.mrb[28].mxu0 }
 0x1cc   : > { %v1400_v22 = vsel %vm8404_vm7, %v1162_v12, %v1399_v44  ;;  %v2387_v38 = vshrl.u32 %v8485_v53, 16  ;;  %6702 = vmatpush3.bf16.msra.mxu0 %v8558_v48  ;;  %v2381_v49 = vrot.slane %v2380_v31, 4  ;;  %v2398_v6 = vshrl.u32 %v8562_v30, 16  ;;  %v8583_v16 = vpop.f32.mrb[29].mxu0  ;;  %v2759_v44 = vld [vmem:[#allocation2 + $0x24] sm:$0xe] }
 0x1cd   : > { %1401 = vst [vmem:[#allocation2 + $0x6c] sm:$0xf] %v1400_v22  ;;  %v1184_v45 = vrot.slane %v1182_v10, 7  ;;  %v1167_v52 = vrot.slane %v1165_v9, 7  ;;  %v2401_v12 = vshll.u32 %v8562_v30, 16  ;;  %6703 = vmatprep.subr.bf16.mxu0 %v8560_v21  ;;  %v8588_v35 = vpop.f32.mrb[30].mxu0 }
 0x1ce   : > { %v2389_v3 = vrot.slane %v2387_v38, 4  ;;  %v2386_v31 = vsel %vm8569_vm14, %v2381_v49, %v2385_v47  ;;  %v2395_v8 = vrot.slane %v2393_v59, 5  ;;  %v2400_v7 = vrot.slane %v2398_v6, 4  ;;  %v8594_v1 = vpop.f32.mrb[31].mxu0 }
 0x1cf   : > { %v1187_v17 = vor.u32 %v1185_v23, %v1184_v45  ;;  %v1189_v10 = vrot.slane %v1184_v45, 4  ;;  %v1170_v9 = vor.u32 %v1168_v25, %v1167_v52  ;;  %v1172_v22 = vrot.slane %v1167_v52, 4  ;;  %v8607_v52 = vld [vmem:[#allocation9 + $0x10] sm:$0xff]  }
 0x1d0   : > { %v2390_v38 = vor.u32 %v2389_v3, %v2385_v47  ;;  %v10262_v62 = vrot.slane %v8531_v15, 4  ;;  %6704 = vmatpush3.bf16.msra.mxu0 %v8576_v0  ;;  %v2403_v59 = vrot.slane %v2401_v12, 5  ;;  %v732_v49 = vadd.f32 %v8497_v20, %v8396_v2  ;;  %v8617_v3 = vld [vmem:[#allocation2 + $0x2c] sm:$0x1]  ;;  %v8627_v20 = vld [vmem:[#allocation9 + $0x18] sm:$0xff]  }
 0x1d1   : > { %v1411_v25 = vsel %vm8320_vm2, %v1189_v10, %v1410_v36  ;;  %v1171_v45 = vsel %vm8411_vm8, %v1163_v55, %v1170_v9  ;;  %v1404_v47 = vsel %vm8320_vm2, %v1172_v22, %v1403_v34  ;;  %v2411_v36 = vshrl.u32 %v8515_v61, 16  ;;  %6705 = vmatprep.subr.bf16.mxu0 %v8586_v11  ;;  %v8612_v55 = vld [vmem:[#allocation9 + $0x58] sm:$0xff]  }
 0x1d2   : > { %v1188_v23 = vsel %vm8411_vm8, %v10262_v62, %v1187_v17  ;;  %1412 = vst [vmem:[#allocation2 + $0x80] sm:$0x1] %v1411_v25  ;;  %1402 = vst [vmem:[#allocation2 + $0x70] sm:$0xf] %v1171_v45  ;;  %v2391_v15 = vrot.slane %v2390_v38, 4  ;;  %v2407_v62 = vshll.u32 %v8515_v61, 16  ;;  %v2404_v10 = vor.u32 %v2403_v59, %v2400_v7 }
 0x1d3   : > { %1409 = vst [vmem:[#allocation2 + $0x7c] sm:$0xf] %v1188_v23  ;;  %1405 = vst [vmem:[#allocation2 + $0x74] sm:$0x1] %v1404_v47  ;;  %v2417_v34 = vshll.u32 %v8521_v32, 16  ;;  %v6285_v6 = vrot.slane %v2759_v44, 9  ;;  %v724_v59 = vadd.f32 %v8396_v2, %v8504_v27 }
 0x1d4   : > { %v2837_v17 = vrot.slane %v8592_v4, 5  ;;  %v2396_v12 = vsel %vm8569_vm14, %v2391_v15, %v2395_v8  ;;  %v2409_v9 = vrot.slane %v2407_v62, 5  ;;  %v2413_v22 = vrot.slane %v2411_v36, 4  ;;  %v2760_v38 = vld [vmem:[#allocation2 + $0x30] sm:$0xe]  ;;  %6706 = vmatpush3.bf16.msra.mxu0 %v8607_v52 }
 0x1d5   : > { %v6315_v23 = vcombine.low %v2386_v31, %v2396_v12  ;;  %v2419_v25 = vrot.slane %v2417_v34, 5  ;;  %v792_v45 = vmax.f32 %v732_v49, 0.0  ;;  %v8624_v47 = vld [vmem:[#allocation2 + $0x38] sm:$0x1]  ;;  %v2405_v44 = vrot.slane %v2404_v10, 4  ;;  %6707 = vmatprep.subr.bf16.mxu0 %v8612_v55 }
 0x1d6   : > { %v2838_v32 = vsel %vm8493_vm11, %v6285_v6, %v2837_v17  ;;  %v2414_v58 = vor.u32 %v2413_v22, %v2409_v9  ;;  %v2839_v54 = vrot.slane %v2837_v17, 4  ;;  %v2840_v7 = vrot.slane %v8617_v3, 5  ;;  %v8630_v8 = vld [vmem:[#allocation2 + $0x34] sm:$0xf]  ;;  %v8633_v31 = vld [vmem:[#allocation9 + $0x60] sm:$0xff]  }
 0x1d7   : > { %3366 = vmatprep.mubr.bf16.mxu1 %v6315_v23  ;;  %v6530_v15 = vpack.c.bf16 %v792_v45, %v792_v45  ;;  %v6286_v62 = vrot.slane %v2760_v38, 9  ;;  %v2844_v36 = vrot.slane %v8630_v8, 5  ;;  %v10263_v34 = vcombine.low %v8517_v63, %v8485_v53  ;;  %v8647_v23 = vld [vmem:[#allocation2 + $0x24] sm:$0xf] }
 0x1d8   : > { %v2410_v49 = vsel %vm8569_vm14, %v2405_v44, %v2409_v9  ;;  %v2415_v6 = vrot.slane %v2414_v58, 4  ;;  %v2841_v17 = vsel %vm8493_vm11, %v2839_v54, %v2840_v7  ;;  %v2847_v12 = vrot.slane %v8624_v47, 5  ;;  %6708 = vmatpush3.bf16.msra.mxu0 %v8627_v20  ;;  %v8664_v44 = vld [vmem:[#allocation9 + $0x68] sm:$0xff]   ;;  %v1420_v7 = vld [vmem:[#allocation2 + $0x90] sm:$0xf] }
 0x1d9   : > { %3367 = vmatmul.mubr.bf16.vlgmr.msra.gmra.mrb[0].mxu1 %v10263_v34  ;;  %v1208_v10 = vshrl.u32 %v6530_v15, 16  ;;  %v1211_v27 = vshll.u32 %v6530_v15, 16  ;;  %v6333_v22 = vcombine.low %v2838_v32, %v2841_v17  ;;  %v790_v38 = vmax.f32 %v724_v59, 0.0  ;;  %6709 = vmatprep.subr.bf16.mxu0 %v8633_v31 }
 0x1da   : > { %7245 = vmatpush3.bf16.msra.mxu1 %v8558_v48  ;;  %v2420_v53 = vsel %vm8569_vm14, %v2415_v6, %v2419_v25  ;;  %v2845_v58 = vsel %vm8493_vm11, %v6286_v62, %v2844_v36  ;;  %v2846_v63 = vrot.slane %v2844_v36, 4  ;;  %v735_v54 = vadd.f32 %v8508_v39, %v8396_v2  ;;  %v8658_v48 = vld [vmem:[#allocation9 + $0x20] sm:$0xff]  }
 0x1db   : > { %7238 = vmatprep.subr.bf16.mxu1 %v8560_v21  ;;  %v6316_v9 = vcombine.low %v2410_v49, %v2420_v53  ;;  %v8660_v45 = vrot.slane %v1208_v10, 7  ;;  %7065 = vmatprep.mubr.bf16.mxu0 %v6333_v22  ;;  %v6528_v32 = vpack.c.bf16 %v790_v38, %v790_v38  ;;  %v727_v25 = vadd.f32 %v8396_v2, %v8513_v51  ;;  %v1413_v38 = vld [vmem:[#allocation2 + $0x84] sm:$0xf] }
 0x1dc   : > { %v2848_v39 = vsel %vm8493_vm11, %v2846_v63, %v2847_v12  ;;  %v793_v15 = vmax.f32 %v735_v54, 0.0  ;;  %v6300_v21 = vcombine.low %v8562_v30, %v8515_v61  ;;  %v2422_v59 = vshrl.u32 %v8647_v23, 16  ;;  %6710 = vmatpush3.bf16.msra.mxu0 %v8658_v48  ;;  %v8676_v61 = vld [vmem:[#allocation9 + $0x28] sm:$0xff]  }
 0x1dd   : > { %3374 = vmatprep.mubr.bf16.mxu1 %v6316_v9  ;;  %v1213_v62 = vor.u32 %v1211_v27, %v8660_v45  ;;  %v1214_v36 = vrot.slane %v8660_v45, 4  ;;  %v1191_v34 = vshrl.u32 %v6528_v32, 16  ;;  %v1194_v49 = vshll.u32 %v6528_v32, 16  ;;  %6711 = vmatprep.subr.bf16.mxu0 %v8664_v44 }
 0x1de   : > { %7246 = vmatpush3.bf16.msra.mxu1 %v8576_v0  ;;  %v6334_v51 = vcombine.low %v2845_v58, %v2848_v39  ;;  %v6531_v6 = vpack.c.bf16 %v793_v15, %v793_v15  ;;  %v791_v17 = vmax.f32 %v727_v25, 0.0  ;;  %v2424_v10 = vrot.slane %v2422_v59, 4  ;;  %v8685_v0 = vld [vmem:[#allocation9 + $0x70] sm:$0xff]  }
 0x1df   : > { %7239 = vmatprep.subr.bf16.mxu1 %v8586_v11  ;;  %v1421_v30 = vsel %vm8404_vm7, %v1213_v62, %v1420_v7  ;;  %v8680_v12 = vrot.slane %v1191_v34, 7  ;;  %v2425_v27 = vshll.u32 %v8647_v23, 16  ;;  %v2431_v22 = vshll.u32 %v8592_v4, 16  ;;  %v8691_v25 = vld [vmem:[#allocation9 + $0x30] sm:$0xff]   ;;  %v2761_v62 = vld [vmem:[#allocation2 + $0x3c] sm:$0xe] }
 0x1e0   : > { %1422 = vst [vmem:[#allocation2 + $0x90] sm:$0xf] %v1421_v30  ;;  %7066 = vmatmul.mubr.bf16.gmra.mrb[36].mxu0 %v6334_v51  ;;  %v1216_v11 = vshrl.u32 %v6531_v6, 16  ;;  %v1219_v53 = vshll.u32 %v6531_v6, 16  ;;  %v6529_v58 = vpack.c.bf16 %v791_v17, %v791_v17  ;;  %v2435_v63 = vshrl.u32 %v8592_v4, 16  ;;  %v8701_v6 = vld [vmem:[#allocation9 + $0x78] sm:$0xff]  }
 0x1e1   : > { %3375 = vmatmul.mubr.bf16.gmra.mrb[4].mxu1 %v6300_v21  ;;  %v1196_v54 = vor.u32 %v1194_v49, %v8680_v12  ;;  %v1197_v9 = vrot.slane %v8680_v12, 4  ;;  %v2427_v45 = vrot.slane %v2425_v27, 5  ;;  %v2433_v32 = vrot.slane %v2431_v22, 5  ;;  %6712 = vmatpush3.bf16.msra.mxu0 %v8676_v61  ;;  %v1424_v34 = vld [vmem:[#allocation2 + $0x98] sm:$0x1] }
 0x1e2   : > { %7247 = vmatpush3.bf16.msra.mxu1 %v8607_v52  ;;  %v1218_v7 = vrot.slane %v1216_v11, 7  ;;  %v1199_v39 = vshrl.u32 %v6529_v58, 16  ;;  %v1202_v15 = vshll.u32 %v6529_v58, 16  ;;  %v2437_v59 = vrot.slane %v2435_v63, 4  ;;  %6713 = vmatprep.subr.bf16.mxu0 %v8685_v0  ;;  %v1417_v12 = vld [vmem:[#allocation2 + $0x8c] sm:$0x1] }
 0x1e3   : > { %7240 = vmatprep.subr.bf16.mxu1 %v8612_v55  ;;  %v1414_v21 = vsel %vm8404_vm7, %v1196_v54, %v1413_v38  ;;  %v2428_v49 = vor.u32 %v2427_v45, %v2424_v10  ;;  %v2441_v51 = vshll.u32 %v8617_v3, 16  ;;  %v748_v52 = vadd.f32 %v8540_v28, %v8396_v2  ;;  %v8703_v22 = vld [vmem:[#allocation2 + $0x40] sm:$0xf]  ;;  %v8705_v58 = vld [vmem:[#allocation2 + $0x44] sm:$0x1]  ;;  %v8713_v45 = vld [vmem:[#allocation9 + $0x38] sm:$0xff]  }
 0x1e4   : > { %1415 = vst [vmem:[#allocation2 + $0x84] sm:$0xf] %v1414_v21  ;;  %v1221_v17 = vor.u32 %v1219_v53, %v1218_v7  ;;  %v1223_v30 = vrot.slane %v1218_v7, 4  ;;  %v1201_v55 = vrot.slane %v1199_v39, 7  ;;  %v2438_v27 = vor.u32 %v2437_v59, %v2433_v32  ;;  %v2762_v59 = vld [vmem:[#allocation2 + $0x48] sm:$0xe] }
 0x1e5   : > { %v2429_v38 = vrot.slane %v2428_v49, 4  ;;  %v2443_v11 = vrot.slane %v2441_v51, 5  ;;  %v796_v10 = vmax.f32 %v748_v52, 0.0  ;;  %v6287_v3 = vrot.slane %v2761_v62, 9  ;;  %6714 = vmatpush3.bf16.msra.mxu0 %v8691_v25  ;;  %v8731_v49 = vld [vmem:[#allocation2 + $0x50] sm:$0x1] }
 0x1e6   : > { %7248 = vmatpush3.bf16.msra.mxu1 %v8627_v20  ;;  %v1222_v28 = vsel %vm8411_vm8, %v1214_v36, %v1221_v17  ;;  %v1425_v53 = vsel %vm8320_vm2, %v1223_v30, %v1424_v34  ;;  %v1204_v63 = vor.u32 %v1202_v15, %v1201_v55  ;;  %v1206_v54 = vrot.slane %v1201_v55, 4  ;;  %6715 = vmatprep.subr.bf16.mxu0 %v8701_v6  ;;  %v8720_v15 = vld [vmem:[#allocation9 + $0x80] sm:$0xff]   ;;  %v8729_v34 = vld [vmem:[#allocation2 + $0x4c] sm:$0xf] }
 0x1e7   : > { %7241 = vmatprep.subr.bf16.mxu1 %v8633_v31  ;;  %1423 = vst [vmem:[#allocation2 + $0x94] sm:$0xf] %v1222_v28  ;;  %1426 = vst [vmem:[#allocation2 + $0x98] sm:$0x1] %v1425_v53  ;;  %v2434_v7 = vsel %vm8569_vm14, %v2429_v38, %v2433_v32  ;;  %v2439_v20 = vrot.slane %v2438_v27, 4  ;;  %v6534_v39 = vpack.c.bf16 %v796_v10, %v796_v10  ;;  %v2851_v36 = vrot.slane %v8703_v22, 5 }
 0x1e8   : > { %v1205_v62 = vsel %vm8411_vm8, %v1197_v9, %v1204_v63  ;;  %v1418_v31 = vsel %vm8320_vm2, %v1206_v54, %v1417_v12  ;;  %v2854_v21 = vrot.slane %v8705_v58, 5  ;;  %v740_v32 = vadd.f32 %v8396_v2, %v8544_v43  ;;  %v8753_v63 = vld [vmem:[#allocation2 + $0x30] sm:$0xf] }
 0x1e9   : > { %1416 = vst [vmem:[#allocation2 + $0x88] sm:$0xf] %v1205_v62  ;;  %1419 = vst [vmem:[#allocation2 + $0x8c] sm:$0x1] %v1418_v31  ;;  %v2444_v51 = vsel %vm8569_vm14, %v2439_v20, %v2443_v11  ;;  %v1242_v52 = vshrl.u32 %v6534_v39, 16  ;;  %v1245_v17 = vshll.u32 %v6534_v39, 16  ;;  %v2852_v9 = vsel %vm8493_vm11, %v6287_v3, %v2851_v36  ;;  %6716 = vmatpush3.bf16.msra.mxu0 %v8713_v45 }
 0x1ea   : > { %7249 = vmatpush3.bf16.msra.mxu1 %v8658_v48  ;;  %v6317_v30 = vcombine.low %v2434_v7, %v2444_v51  ;;  %v2853_v55 = vrot.slane %v2851_v36, 4  ;;  %v794_v12 = vmax.f32 %v740_v32, 0.0  ;;  %v6288_v43 = vrot.slane %v2762_v59, 9  ;;  %7093 = vmatprep.subr.bf16.mxu0 %v8720_v15  ;;  %v1434_v48 = vld [vmem:[#allocation2 + $0xa8] sm:$0xf] }
 0x1eb   : > { %7242 = vmatprep.subr.bf16.mxu1 %v8664_v44  ;;  %v8740_v27 = vrot.slane %v1242_v52, 7  ;;  %v2858_v38 = vrot.slane %v8729_v34, 5  ;;  %v2861_v11 = vrot.slane %v8731_v49, 5  ;;  %v751_v10 = vadd.f32 %v8548_v42, %v8396_v2  ;;  %v1427_v51 = vld [vmem:[#allocation2 + $0x9c] sm:$0xf] }
 0x1ec   : > { %3382 = vmatprep.mubr.bf16.mxu1 %v6317_v30  ;;  %v2855_v3 = vsel %vm8493_vm11, %v2853_v55, %v2854_v21  ;;  %v6532_v28 = vpack.c.bf16 %v794_v12, %v794_v12  ;;  %v743_v44 = vadd.f32 %v8396_v2, %v8553_v26  ;;  %v6301_v53 = vcombine.low %v8647_v23, %v8592_v4 }
 0x1ed   : > { %v1247_v54 = vor.u32 %v1245_v17, %v8740_v27  ;;  %v1248_v42 = vrot.slane %v8740_v27, 4  ;;  %v6335_v7 = vcombine.low %v2852_v9, %v2855_v3  ;;  %v2859_v20 = vsel %vm8493_vm11, %v6288_v43, %v2858_v38  ;;  %v2763_v27 = vld [vmem:[#allocation2 + $0x54] sm:$0xe] }
 0x1ee   : > { %7250 = vmatpush3.bf16.msra.mxu1 %v8676_v61  ;;  %v1225_v39 = vshrl.u32 %v6532_v28, 16  ;;  %v1228_v36 = vshll.u32 %v6532_v28, 16  ;;  %v2860_v59 = vrot.slane %v2858_v38, 4  ;;  %v797_v62 = vmax.f32 %v751_v10, 0.0  ;;  %v1438_v38 = vld [vmem:[#allocation2 + $0xb0] sm:$0x1] }
 0x1ef   : > { %3383 = vmatmul.mubr.bf16.gmra.mrb[8].mxu1 %v6301_v53  ;;  %7243 = vmatprep.subr.bf16.mxu1 %v8685_v0  ;;  %v1435_v4 = vsel %vm8404_vm7, %v1247_v54, %v1434_v48  ;;  %v795_v2 = vmax.f32 %v743_v44, 0.0  ;;  %v2446_v26 = vshrl.u32 %v8753_v63, 16  ;;  %v2449_v23 = vshll.u32 %v8753_v63, 16  ;;  %v1431_v53 = vld [vmem:[#allocation2 + $0xa4] sm:$0x1] }
 0x1f0   : > { %7069 = vmatprep.mubr.bf16.mxu0 %v6335_v7  ;;  %1436 = vst [vmem:[#allocation2 + $0xa8] sm:$0xf] %v1435_v4  ;;  %v1227_v31 = vrot.slane %v1225_v39, 7  ;;  %v2862_v61 = vsel %vm8493_vm11, %v2860_v59, %v2861_v11  ;;  %v6535_v21 = vpack.c.bf16 %v797_v62, %v797_v62  ;;  %v2455_v32 = vshll.u32 %v8630_v8, 16 }
 0x1f1   : > { %v6336_v52 = vcombine.low %v2859_v20, %v2862_v61  ;;  %v6533_v0 = vpack.c.bf16 %v795_v2, %v795_v2  ;;  %v2448_v17 = vrot.slane %v2446_v26, 4  ;;  %v2451_v9 = vrot.slane %v2449_v23, 5  ;;  %v8781_v23 = vld [vmem:[#allocation2 + $0x5c] sm:$0x1] }
 0x1f2   : > { %7251 = vmatpush3.bf16.msra.mxu1 %v8691_v25  ;;  %v1230_v30 = vor.u32 %v1228_v36, %v1227_v31  ;;  %v1231_v55 = vrot.slane %v1227_v31, 4  ;;  %v1250_v12 = vshrl.u32 %v6535_v21, 16  ;;  %v1253_v43 = vshll.u32 %v6535_v21, 16  ;;  %v8778_v36 = vld [vmem:[#allocation2 + $0x58] sm:$0xf] }
 0x1f3   : > { %7244 = vmatprep.subr.bf16.mxu1 %v8701_v6  ;;  %7070 = vmatmul.mubr.bf16.gmra.mrb[40].mxu0 %v6336_v52  ;;  %v1233_v11 = vshrl.u32 %v6533_v0, 16  ;;  %v1236_v10 = vshll.u32 %v6533_v0, 16  ;;  %v2452_v48 = vor.u32 %v2451_v9, %v2448_v17  ;;  %v2457_v3 = vrot.slane %v2455_v32, 5  ;;  %v7705_v6 = vld [vmem:[%s10204_s2] ss:$0 sm:$0xff] }
 0x1f4   : > { %v1428_v28 = vsel %vm8404_vm7, %v1230_v30, %v1427_v51  ;;  %v1252_v44 = vrot.slane %v1250_v12, 7  ;;  %v2459_v25 = vshrl.u32 %v8630_v8, 16  ;;  %v2465_v54 = vshll.u32 %v8624_v47, 16  ;;  %v8790_v52 = vld [vmem:[#allocation2 + $0x64] sm:$0xf] }
 0x1f5   : > { %1429 = vst [vmem:[#allocation2 + $0x9c] sm:$0xf] %v1428_v28  ;;  %v1235_v7 = vrot.slane %v1233_v11, 7  ;;  %v2453_v20 = vrot.slane %v2452_v48, 4  ;;  %v764_v39 = vadd.f32 %v7705_v6, %v8578_v57  ;;  %v6289_v59 = vrot.slane %v2763_v27, 9 }
 0x1f6   : > { %7252 = vmatpush3.bf16.msra.mxu1 %v8713_v45  ;;  %v1255_v62 = vor.u32 %v1253_v43, %v1252_v44  ;;  %v1257_v4 = vrot.slane %v1252_v44, 4  ;;  %v2461_v2 = vrot.slane %v2459_v25, 4  ;;  %v2467_v26 = vrot.slane %v2465_v54, 5  ;;  %v2764_v0 = vld [vmem:[#allocation2 + $0x60] sm:$0xe] }
 0x1f7   : > { %v1238_v47 = vor.u32 %v1236_v10, %v1235_v7  ;;  %v1240_v31 = vrot.slane %v1235_v7, 4  ;;  %v2458_v61 = vsel %vm8569_vm14, %v2453_v20, %v2457_v3  ;;  %v800_v21 = vmax.f32 %v764_v39, 0.0  ;;  %v8797_v12 = vld [vmem:[#allocation2 + $0x68] sm:$0x1]  ;;  %v8808_v54 = vld [vmem:[#allocation2 + $0x3c] sm:$0xf] }
 0x1f8   : > { %v1256_v57 = vsel %vm8411_vm8, %v1248_v42, %v1255_v62  ;;  %v1439_v32 = vsel %vm8320_vm2, %v1257_v4, %v1438_v38  ;;  %v2462_v51 = vor.u32 %v2461_v2, %v2457_v3  ;;  %v2865_v45 = vrot.slane %v8778_v36, 5 }
 0x1f9   : > { %1437 = vst [vmem:[#allocation2 + $0xac] sm:$0xf] %v1256_v57  ;;  %1440 = vst [vmem:[#allocation2 + $0xb0] sm:$0x1] %v1439_v32  ;;  %v1239_v17 = vsel %vm8411_vm8, %v1231_v55, %v1238_v47  ;;  %v1432_v9 = vsel %vm8320_vm2, %v1240_v31, %v1431_v53  ;;  %v6538_v30 = vpack.c.bf16 %v800_v21, %v800_v21  ;;  %v2868_v42 = vrot.slane %v8781_v23, 5 }
 0x1fa   : > { %1430 = vst [vmem:[#allocation2 + $0xa0] sm:$0xf] %v1239_v17  ;;  %1433 = vst [vmem:[#allocation2 + $0xa4] sm:$0x1] %v1432_v9  ;;  %v2463_v43 = vrot.slane %v2462_v51, 4  ;;  %v2866_v27 = vsel %vm8493_vm11, %v6289_v59, %v2865_v45  ;;  %v2867_v38 = vrot.slane %v2865_v45, 4  ;;  %v756_v11 = vadd.f32 %v7705_v6, %v8583_v16 }
 0x1fb   : > { %v1276_v10 = vshrl.u32 %v6538_v30, 16  ;;  %v1279_v48 = vshll.u32 %v6538_v30, 16  ;;  %v6290_v55 = vrot.slane %v2764_v0, 9  ;;  %v2872_v3 = vrot.slane %v8790_v52, 5  ;;  %v1448_v59 = vld [vmem:[#allocation2 + $0xc0] sm:$0xf] }
 0x1fc   : > { %v2468_v28 = vsel %vm8569_vm14, %v2463_v43, %v2467_v26  ;;  %v2869_v44 = vsel %vm8493_vm11, %v2867_v38, %v2868_v42  ;;  %v798_v53 = vmax.f32 %v756_v11, 0.0  ;;  %v2875_v25 = vrot.slane %v8797_v12, 5  ;;  %v1441_v30 = vld [vmem:[#allocation2 + $0xb4] sm:$0xf]  ;;  %v8829_v11 = vld [vmem:[#allocation2 + $0x70] sm:$0xf] }
 0x1fd   : > { %v6318_v7 = vcombine.low %v2458_v61, %v2468_v28  ;;  %v8810_v20 = vrot.slane %v1276_v10, 7  ;;  %v6337_v16 = vcombine.low %v2866_v27, %v2869_v44  ;;  %v2873_v39 = vsel %vm8493_vm11, %v6290_v55, %v2872_v3 }
 0x1fe   : > { %v6536_v62 = vpack.c.bf16 %v798_v53, %v798_v53  ;;  %v2874_v4 = vrot.slane %v2872_v3, 4  ;;  %v767_v2 = vadd.f32 %v7705_v6, %v8588_v35  ;;  %v759_v26 = vadd.f32 %v7705_v6, %v8594_v1  ;;  %v2765_v35 = vld [vmem:[#allocation2 + $0x6c] sm:$0xe]  ;;  %v8831_v53 = vld [vmem:[#allocation2 + $0x74] sm:$0x1] }
 0x1ff   : > { %3390 = vmatprep.mubr.bf16.mxu1 %v6318_v7  ;;  %v1281_v47 = vor.u32 %v1279_v48, %v8810_v20  ;;  %v1282_v31 = vrot.slane %v8810_v20, 4  ;;  %7073 = vmatprep.mubr.bf16.mxu0 %v6337_v16  ;;  %v6302_v61 = vcombine.low %v8753_v63, %v8630_v8  ;;  %v2470_v21 = vshrl.u32 %v8808_v54, 16  ;;  %v7623_v48 = vld [vmem:[#allocation9 + $0x1c0] sm:$0xff]  }
 0x200   : > { %v1259_v57 = vshrl.u32 %v6536_v62, 16  ;;  %v1262_v32 = vshll.u32 %v6536_v62, 16  ;;  %v2876_v51 = vsel %vm8493_vm11, %v2874_v4, %v2875_v25  ;;  %v801_v45 = vmax.f32 %v767_v2, 0.0  ;;  %6837 = vmatprep.subr.bf16.mxu1 %v7623_v48  ;;  %v1452_v2 = vld [vmem:[#allocation2 + $0xc8] sm:$0x1] }
 0x201   : > { %v1449_v1 = vsel %vm8404_vm7, %v1281_v47, %v1448_v59  ;;  %v6338_v6 = vcombine.low %v2873_v39, %v2876_v51  ;;  %v799_v0 = vmax.f32 %v759_v26, 0.0  ;;  %3391 = vmatmul.mubr.bf16.gmra.mrb[12].mxu1 %v6302_v61  ;;  %v2472_v17 = vrot.slane %v2470_v21, 4  ;;  %v2766_v39 = vld [vmem:[#allocation2 + $0x78] sm:$0xe]  ;;  %v1445_v51 = vld [vmem:[#allocation2 + $0xbc] sm:$0x1] }
 0x202   : > { %1450 = vst [vmem:[#allocation2 + $0xc0] sm:$0xf] %v1449_v1  ;;  %v1261_v9 = vrot.slane %v1259_v57, 7  ;;  %v6539_v8 = vpack.c.bf16 %v801_v45, %v801_v45  ;;  %v2473_v63 = vshll.u32 %v8808_v54, 16  ;;  %v2479_v42 = vshll.u32 %v8703_v22, 16 }
 0x203   : > { %7074 = vmatmul.mubr.bf16.gmra.mrb[44].mxu0 %v6338_v6  ;;  %v6537_v43 = vpack.c.bf16 %v799_v0, %v799_v0  ;;  %v2483_v27 = vshrl.u32 %v8703_v22, 16  ;;  %v2489_v38 = vshll.u32 %v8705_v58, 16  ;;  %v6291_v10 = vrot.slane %v2765_v35, 9  ;;  %v8837_v35 = vld [vmem:[#allocation2 + $0x7c] sm:$0xf] }
 0x204   : > { %v1264_v55 = vor.u32 %v1262_v32, %v1261_v9  ;;  %v1265_v3 = vrot.slane %v1261_v9, 4  ;;  %v1284_v28 = vshrl.u32 %v6539_v8, 16  ;;  %v1287_v44 = vshll.u32 %v6539_v8, 16  ;;  %v8854_v48 = vld [vmem:[#allocation2 + $0x48] sm:$0xf] }
 0x205   : > { %v1267_v25 = vshrl.u32 %v6537_v43, 16  ;;  %v1270_v7 = vshll.u32 %v6537_v43, 16  ;;  %v2475_v20 = vrot.slane %v2473_v63, 5  ;;  %v2481_v16 = vrot.slane %v2479_v42, 5 }
 0x206   : > { %v1442_v59 = vsel %vm8404_vm7, %v1264_v55, %v1441_v30  ;;  %v1286_v58 = vrot.slane %v1284_v28, 7  ;;  %v2485_v62 = vrot.slane %v2483_v27, 4  ;;  %v2491_v4 = vrot.slane %v2489_v38, 5  ;;  %v8841_v30 = vld [vmem:[#allocation2 + $0x80] sm:$0x1] }
 0x207   : > { %1443 = vst [vmem:[#allocation2 + $0xb4] sm:$0xf] %v1442_v59  ;;  %v1269_v26 = vrot.slane %v1267_v25, 7  ;;  %v2476_v47 = vor.u32 %v2475_v20, %v2472_v17  ;;  %v2879_v61 = vrot.slane %v8829_v11, 5  ;;  %v2882_v21 = vrot.slane %v8831_v53, 5 }
 0x208   : > { %v1289_v57 = vor.u32 %v1287_v44, %v1286_v58  ;;  %v1291_v32 = vrot.slane %v1286_v58, 4  ;;  %v2486_v45 = vor.u32 %v2485_v62, %v2481_v16  ;;  %v6292_v1 = vrot.slane %v2766_v39, 9  ;;  %v8863_v28 = vld [vmem:[#allocation2 + $0x88] sm:$0xf]  ;;  %v2767_v44 = vld [vmem:[#allocation2 + $0x84] sm:$0xe] }
 0x209   : > { %v1272_v40 = vor.u32 %v1270_v7, %v1269_v26  ;;  %v1274_v6 = vrot.slane %v1269_v26, 4  ;;  %v2477_v0 = vrot.slane %v2476_v47, 4  ;;  %v2880_v9 = vsel %vm8493_vm11, %v6291_v10, %v2879_v61  ;;  %v2768_v39 = vld [vmem:[#allocation2 + $0x90] sm:$0xe]  ;;  %v8878_v47 = vld [vmem:[#allocation2 + $0x8c] sm:$0x1] }
 0x20a   : > { %v1290_v17 = vsel %vm8411_vm8, %v1282_v31, %v1289_v57  ;;  %v1453_v8 = vsel %vm8320_vm2, %v1291_v32, %v1452_v2  ;;  %v2487_v63 = vrot.slane %v2486_v45, 4  ;;  %v2881_v42 = vrot.slane %v2879_v61, 4  ;;  %v8871_v2 = vld [vmem:[#allocation2 + $0x94] sm:$0xf] }
 0x20b   : > { %1451 = vst [vmem:[#allocation2 + $0xc4] sm:$0xf] %v1290_v17  ;;  %1454 = vst [vmem:[#allocation2 + $0xc8] sm:$0x1] %v1453_v8  ;;  %v1273_v43 = vsel %vm8411_vm8, %v1265_v3, %v1272_v40  ;;  %v1446_v27 = vsel %vm8320_vm2, %v1274_v6, %v1445_v51  ;;  %v2482_v38 = vsel %vm8569_vm14, %v2477_v0, %v2481_v16  ;;  %v2886_v10 = vrot.slane %v8837_v35, 5 }
 0x20c   : > { %1444 = vst [vmem:[#allocation2 + $0xb8] sm:$0xf] %v1273_v43  ;;  %1447 = vst [vmem:[#allocation2 + $0xbc] sm:$0x1] %v1446_v27  ;;  %v2492_v31 = vsel %vm8569_vm14, %v2487_v63, %v2491_v4  ;;  %v2883_v55 = vsel %vm8493_vm11, %v2881_v42, %v2882_v21  ;;  %v2889_v60 = vrot.slane %v8841_v30, 5  ;;  %v6303_v3 = vcombine.low %v8808_v54, %v8703_v22 }
 0x20d   : > { %v6319_v25 = vcombine.low %v2482_v38, %v2492_v31  ;;  %v6339_v7 = vcombine.low %v2880_v9, %v2883_v55  ;;  %v2887_v20 = vsel %vm8493_vm11, %v6292_v1, %v2886_v10  ;;  %v2888_v16 = vrot.slane %v2886_v10, 4  ;;  %v8873_v22 = vld [vmem:[#allocation2 + $0x54] sm:$0xf]  ;;  %v8881_v1 = vld [vmem:[#allocation2 + $0x98] sm:$0x1] }
 0x20e   : > { %v2494_v59 = vshrl.u32 %v8854_v48, 16  ;;  %v2497_v58 = vshll.u32 %v8854_v48, 16  ;;  %v2503_v62 = vshll.u32 %v8729_v34, 16  ;;  %v2507_v4 = vshrl.u32 %v8729_v34, 16 }
 0x20f   : > { %3398 = vmatprep.mubr.bf16.mxu1 %v6319_v25  ;;  %7077 = vmatprep.mubr.bf16.mxu0 %v6339_v7  ;;  %v2890_v54 = vsel %vm8493_vm11, %v2888_v16, %v2889_v60  ;;  %v2513_v26 = vshll.u32 %v8731_v49, 16  ;;  %v6293_v61 = vrot.slane %v2767_v44, 9  ;;  %v2893_v21 = vrot.slane %v8863_v28, 5  ;;  %v2770_v16 = vld [vmem:[#allocation2 + $0xa8] sm:$0xe] }
 0x210   : > { %v6340_v57 = vcombine.low %v2887_v20, %v2890_v54  ;;  %3399 = vmatmul.mubr.bf16.gmra.mrb[16].mxu1 %v6303_v3  ;;  %v2496_v32 = vrot.slane %v2494_v59, 4  ;;  %v2499_v51 = vrot.slane %v2497_v58, 5  ;;  %v2505_v45 = vrot.slane %v2503_v62, 5  ;;  %v2769_v20 = vld [vmem:[#allocation2 + $0x9c] sm:$0xe] }
 0x211   : > { %v2509_v40 = vrot.slane %v2507_v4, 4  ;;  %v2515_v6 = vrot.slane %v2513_v26, 5  ;;  %v2894_v0 = vsel %vm8493_vm11, %v6293_v61, %v2893_v21  ;;  %v2895_v9 = vrot.slane %v2893_v21, 4  ;;  %v8902_v58 = vld [vmem:[#allocation2 + $0xa0] sm:$0xf] }
 0x212   : > { %7078 = vmatmul.mubr.bf16.gmra.mrb[48].mxu0 %v6340_v57  ;;  %v2500_v49 = vor.u32 %v2499_v51, %v2496_v32  ;;  %v2896_v17 = vrot.slane %v8878_v47, 5  ;;  %v6294_v8 = vrot.slane %v2768_v39, 9  ;;  %v2900_v63 = vrot.slane %v8871_v2, 5  ;;  %v8904_v62 = vld [vmem:[#allocation2 + $0xa4] sm:$0x1] }
 0x213   : > { %v2510_v42 = vor.u32 %v2509_v40, %v2505_v45  ;;  %v2903_v43 = vrot.slane %v8881_v1, 5  ;;  %v6304_v27 = vcombine.low %v8854_v48, %v8729_v34  ;;  %v2518_v38 = vshrl.u32 %v8873_v22, 16  ;;  %v8909_v21 = vld [vmem:[#allocation2 + $0xac] sm:$0xf]  ;;  %v8911_v57 = vld [vmem:[#allocation2 + $0xb0] sm:$0x1] }
 0x214   : > { %v2501_v10 = vrot.slane %v2500_v49, 4  ;;  %v2897_v31 = vsel %vm8493_vm11, %v2895_v9, %v2896_v17  ;;  %v2901_v55 = vsel %vm8493_vm11, %v6294_v8, %v2900_v63  ;;  %v2902_v60 = vrot.slane %v2900_v63, 4 }
 0x215   : > { %v2511_v3 = vrot.slane %v2510_v42, 4  ;;  %v6341_v44 = vcombine.low %v2894_v0, %v2897_v31  ;;  %v2520_v25 = vrot.slane %v2518_v38, 4  ;;  %v2521_v7 = vshll.u32 %v8873_v22, 16 }
 0x216   : > { %v2506_v34 = vsel %vm8569_vm14, %v2501_v10, %v2505_v45  ;;  %v2904_v48 = vsel %vm8493_vm11, %v2902_v60, %v2903_v43  ;;  %v2527_v39 = vshll.u32 %v8778_v36, 16  ;;  %v2531_v59 = vshrl.u32 %v8778_v36, 16 }
 0x217   : > { %v2516_v4 = vsel %vm8569_vm14, %v2511_v3, %v2515_v6  ;;  %7081 = vmatprep.mubr.bf16.mxu0 %v6341_v44  ;;  %v6342_v54 = vcombine.low %v2901_v55, %v2904_v48  ;;  %v2523_v26 = vrot.slane %v2521_v7, 5  ;;  %v2537_v61 = vshll.u32 %v8781_v23, 16  ;;  %v8915_v6 = vld [vmem:[#allocation2 + $0x60] sm:$0xf] }
 0x218   : > { %v6320_v32 = vcombine.low %v2506_v34, %v2516_v4  ;;  %v2529_v51 = vrot.slane %v2527_v39, 5  ;;  %v2533_v45 = vrot.slane %v2531_v59, 4  ;;  %v6295_v40 = vrot.slane %v2769_v20, 9  ;;  %v8932_v34 = vld [vmem:[#allocation2 + $0xb8] sm:$0xf] }
 0x219   : > { %v2524_v0 = vor.u32 %v2523_v26, %v2520_v25  ;;  %v2539_v9 = vrot.slane %v2537_v61, 5  ;;  %v2907_v49 = vrot.slane %v8902_v58, 5  ;;  %v2910_v17 = vrot.slane %v8904_v62, 5  ;;  %v2772_v25 = vld [vmem:[#allocation2 + $0xc0] sm:$0xe] }
 0x21a   : > { %3406 = vmatprep.mubr.bf16.mxu1 %v6320_v32  ;;  %7082 = vmatmul.mubr.bf16.gmra.mrb[52].mxu0 %v6342_v54  ;;  %v2534_v8 = vor.u32 %v2533_v45, %v2529_v51  ;;  %v6296_v23 = vrot.slane %v2770_v16, 9  ;;  %v2914_v63 = vrot.slane %v8909_v21, 5  ;;  %v2917_v42 = vrot.slane %v8911_v57, 5  ;;  %v8938_v4 = vld [vmem:[#allocation2 + $0xbc] sm:$0x1] }
 0x21b   : > { %3407 = vmatmul.mubr.bf16.gmra.mrb[20].mxu1 %v6304_v27  ;;  %v2525_v43 = vrot.slane %v2524_v0, 4  ;;  %v2908_v38 = vsel %vm8493_vm11, %v6295_v40, %v2907_v49  ;;  %v2909_v10 = vrot.slane %v2907_v49, 4  ;;  %v6305_v31 = vcombine.low %v8873_v22, %v8778_v36  ;;  %v2771_v36 = vld [vmem:[#allocation2 + $0xb4] sm:$0xe]  ;;  %v8940_v54 = vld [vmem:[#allocation2 + $0xc4] sm:$0xf] }
 0x21c   : > { %v2535_v55 = vrot.slane %v2534_v8, 4  ;;  %v2915_v60 = vsel %vm8493_vm11, %v6296_v23, %v2914_v63  ;;  %v2916_v3 = vrot.slane %v2914_v63, 4  ;;  %v2542_v44 = vshrl.u32 %v8915_v6, 16  ;;  %v8945_v49 = vld [vmem:[#allocation2 + $0xc8] sm:$0x1] }
 0x21d   : > { %v2530_v7 = vsel %vm8569_vm14, %v2525_v43, %v2529_v51  ;;  %v2911_v27 = vsel %vm8493_vm11, %v2909_v10, %v2910_v17  ;;  %v2545_v20 = vshll.u32 %v8915_v6, 16  ;;  %v2551_v16 = vshll.u32 %v8790_v52, 16 }
 0x21e   : > { %v2540_v22 = vsel %vm8569_vm14, %v2535_v55, %v2539_v9  ;;  %v6343_v48 = vcombine.low %v2908_v38, %v2911_v27  ;;  %v2918_v39 = vsel %vm8493_vm11, %v2916_v3, %v2917_v42  ;;  %v2544_v59 = vrot.slane %v2542_v44, 4  ;;  %v8949_v42 = vld [vmem:[#allocation2 + $0x6c] sm:$0xf] }
 0x21f   : > { %v6321_v26 = vcombine.low %v2530_v7, %v2540_v22  ;;  %v6344_v61 = vcombine.low %v2915_v60, %v2918_v39  ;;  %v2547_v32 = vrot.slane %v2545_v20, 5  ;;  %v2553_v51 = vrot.slane %v2551_v16, 5  ;;  %v812_v16 = vld [vmem:[#allocation2] sm:$0x1]  ;;  %v868_v39 = vld [vmem:[#allocation2 + $0x8] sm:$0x1] }
 0x220   : > { %7085 = vmatprep.mubr.bf16.mxu0 %v6343_v48  ;;  %v2555_v45 = vshrl.u32 %v8790_v52, 16  ;;  %v2561_v40 = vshll.u32 %v8797_v12, 16  ;;  %v6297_v0 = vrot.slane %v2771_v36, 9  ;;  %v2921_v9 = vrot.slane %v8932_v34, 5 }
 0x221   : > { %3414 = vmatprep.mubr.bf16.mxu1 %v6321_v26  ;;  %v2548_v17 = vor.u32 %v2547_v32, %v2544_v59  ;;  %v2924_v8 = vrot.slane %v8938_v4, 5  ;;  %v6298_v23 = vrot.slane %v2772_v25, 9  ;;  %v2928_v63 = vrot.slane %v8940_v54, 5  ;;  %v8966_v59 = vld [vmem:[#allocation2 + $0x4] sm:$0xf] }
 0x222   : > { %7086 = vmatmul.mubr.bf16.gmra.mrb[56].mxu0 %v6344_v61  ;;  %v2557_v43 = vrot.slane %v2555_v45, 4  ;;  %v2563_v38 = vrot.slane %v2561_v40, 5  ;;  %v2922_v12 = vsel %vm8493_vm11, %v6297_v0, %v2921_v9  ;;  %v2923_v10 = vrot.slane %v2921_v9, 4  ;;  %v8973_v0 = vld [vmem:[#allocation2 + $0xc] sm:$0xf] }
 0x223   : > { %3415 = vmatmul.mubr.bf16.gmra.mrb[24].mxu1 %v6305_v31  ;;  %v2549_v55 = vrot.slane %v2548_v17, 4  ;;  %v2929_v60 = vsel %vm8493_vm11, %v6298_v23, %v2928_v63  ;;  %v2930_v3 = vrot.slane %v2928_v63, 4  ;;  %v2931_v44 = vrot.slane %v8945_v49, 5  ;;  %v8980_v63 = vld [vmem:[#allocation2 + $0x10] sm:$0xf] }
 0x224   : > { %v2558_v25 = vor.u32 %v2557_v43, %v2553_v51  ;;  %v2925_v7 = vsel %vm8493_vm11, %v2923_v10, %v2924_v8  ;;  %v6306_v27 = vcombine.low %v8915_v6, %v8790_v52  ;;  %v2566_v20 = vshrl.u32 %v8949_v42, 16 }
 0x225   : > { %v2554_v31 = vsel %vm8569_vm14, %v2549_v55, %v2553_v51  ;;  %v6345_v36 = vcombine.low %v2922_v12, %v2925_v7  ;;  %v2932_v22 = vsel %vm8493_vm11, %v2930_v3, %v2931_v44  ;;  %v2569_v48 = vshll.u32 %v8949_v42, 16  ;;  %v8982_v55 = vld [vmem:[#allocation2 + $0x14] sm:$0x1] }
 0x226   : > { %v2559_v26 = vrot.slane %v2558_v25, 4  ;;  %v6346_v61 = vcombine.low %v2929_v60, %v2932_v22  ;;  %v2568_v32 = vrot.slane %v2566_v20, 4  ;;  %v2575_v52 = vshll.u32 %v8829_v11, 16 }
 0x227   : > { %7089 = vmatprep.mubr.bf16.mxu0 %v6345_v36  ;;  %v2571_v6 = vrot.slane %v2569_v48, 5  ;;  %v2579_v45 = vshrl.u32 %v8829_v11, 16  ;;  %v2585_v51 = vshll.u32 %v8831_v53, 16  ;;  %v813_v40 = vsel %vm8320_vm2, 0, %v812_v16 }
 0x228   : > { %v2564_v9 = vsel %vm8569_vm14, %v2559_v26, %v2563_v38  ;;  %v2577_v17 = vrot.slane %v2575_v52, 5  ;;  %814 = vst [vmem:[#allocation2] sm:$0x1] %v813_v40  ;;  %v869_v8 = vsel %vm8327_vm4, 0, %v868_v39  ;;  %v1516_v23 = vshll.u32 %v8966_v59, 16 }
 0x229   : > { %v6322_v43 = vcombine.low %v2554_v31, %v2564_v9  ;;  %v2572_v12 = vor.u32 %v2571_v6, %v2568_v32  ;;  %v2581_v53 = vrot.slane %v2579_v45, 4  ;;  %v2587_v10 = vrot.slane %v2585_v51, 5  ;;  %870 = vst [vmem:[#allocation2 + $0x8] sm:$0x1] %v869_v8  ;;  %v8992_v39 = vld [vmem:[#allocation2 + $0x78] sm:$0xf] }
 0x22a   : > { %7090 = vmatmul.mubr.bf16.gmra.mrb[60].mxu0 %v6346_v61  ;;  %v8984_v60 = vrot.slane %v1516_v23, 5  ;;  %v1520_v38 = vshrl.u32 %v8966_v59, 16  ;;  %v1531_v3 = vshrl.u32 %v8973_v0, 16  ;;  %v1534_v44 = vshll.u32 %v8973_v0, 16 }
 0x22b   : > { %3422 = vmatprep.mubr.bf16.mxu1 %v6322_v43  ;;  %v2573_v25 = vrot.slane %v2572_v12, 4  ;;  %v2582_v7 = vor.u32 %v2581_v53, %v2577_v17  ;;  %v1540_v20 = vshll.u32 %v8980_v63, 16  ;;  %v1544_v16 = vshrl.u32 %v8980_v63, 16 }
 0x22c   : > { %3423 = vmatmul.mubr.bf16.gmra.mrb[28].mxu1 %v6306_v27  ;;  %v1522_v31 = vrot.slane %v1520_v38, 4  ;;  %v1533_v36 = vrot.slane %v1531_v3, 4  ;;  %v1536_v22 = vrot.slane %v1534_v44, 5  ;;  %v1550_v48 = vshll.u32 %v8982_v55, 16 }
 0x22d   : > { %v2578_v26 = vsel %vm8569_vm14, %v2573_v25, %v2577_v17  ;;  %v2583_v61 = vrot.slane %v2582_v7, 4  ;;  %v1542_v32 = vrot.slane %v1540_v20, 5  ;;  %v1546_v52 = vrot.slane %v1544_v16, 4 }
 0x22e   : > { %v1523_v6 = vor.u32 %v1522_v31, %v8984_v60  ;;  %v1537_v45 = vor.u32 %v1536_v22, %v1533_v36  ;;  %v1552_v51 = vrot.slane %v1550_v48, 5  ;;  %v6307_v23 = vcombine.low %v8949_v42, %v8829_v11 }
 0x22f   : > { %v2588_v27 = vsel %vm8569_vm14, %v2583_v61, %v2587_v10  ;;  %v1455_v9 = vld [vmem:[#allocation2] sm:$0xf]  ;;  %v1547_v8 = vor.u32 %v1546_v52, %v1542_v32  ;;  %v2590_v43 = vshrl.u32 %v8992_v39, 16  ;;  %v2593_v11 = vshll.u32 %v8992_v39, 16 }
 0x230   : > { %v6323_v17 = vcombine.low %v2578_v26, %v2588_v27  ;;  %v9003_v12 = vld [vmem:[#allocation2 + $0x8] sm:$0x1]  ;;  %v1507_v53 = vshrl.u32 %v1455_v9, 16  ;;  %v1510_v38 = vshll.u32 %v1455_v9, 16  ;;  %v1524_v3 = vrot.slane %v1523_v6, 4 }
 0x231   : > { %v1526_v44 = vshll.u32 %v9003_v12, 16  ;;  %v6235_v25 = vcombine.low %v1455_v9, %v8966_v59  ;;  %v1538_v7 = vrot.slane %v1537_v45, 4  ;;  %v1548_v20 = vrot.slane %v1547_v8, 4  ;;  %v9013_v26 = vld [vmem:[#allocation2 + $0x18] sm:$0xf] }
 0x232   : > { %3430 = vmatprep.mubr.bf16.mxu1 %v6323_v17  ;;  %v1509_v10 = vrot.slane %v1507_v53, 4  ;;  %v1512_v16 = vrot.slane %v1510_v38, 5  ;;  %v2592_v31 = vrot.slane %v2590_v43, 4  ;;  %v2599_v48 = vshll.u32 %v8837_v35, 16  ;;  %v9016_v45 = vld [vmem:[#allocation2 + $0x1c] sm:$0xf] }
 0x233   : > { %v1528_v42 = vrot.slane %v1526_v44, 5  ;;  %v1543_v36 = vsel %vm8569_vm14, %v1538_v7, %v1542_v32  ;;  %v1553_v22 = vsel %vm8569_vm14, %v1548_v20, %v1552_v51  ;;  %v2595_v52 = vrot.slane %v2593_v11, 5  ;;  %v9024_v38 = vld [vmem:[#allocation2 + $0x20] sm:$0x1] }
 0x234   : > { %v1513_v59 = vor.u32 %v1512_v16, %v1509_v10  ;;  %v6252_v61 = vcombine.low %v1543_v36, %v1553_v22  ;;  %3431 = vmatmul.mubr.bf16.gmra.mrb[32].mxu1 %v6307_v23  ;;  %v2603_v6 = vshrl.u32 %v8837_v35, 16  ;;  %v2601_v9 = vrot.slane %v2599_v48, 5 }
 0x235   : > { %v1529_v27 = vsel %vm8569_vm14, %v1524_v3, %v1528_v42  ;;  %v2609_v32 = vshll.u32 %v8841_v30, 16  ;;  %v6236_v51 = vcombine.low %v8973_v0, %v8980_v63  ;;  %v2596_v43 = vor.u32 %v2595_v52, %v2592_v31  ;;  %v9032_v31 = vld [vmem:[#allocation2 + $0x84] sm:$0xf] }
 0x236   : > { %v1514_v8 = vrot.slane %v1513_v59, 4  ;;  %v2605_v17 = vrot.slane %v2603_v6, 4  ;;  %v1555_v53 = vshrl.u32 %v9013_v26, 16  ;;  %v1558_v44 = vshll.u32 %v9013_v26, 16 }
 0x237   : > { %v2611_v23 = vrot.slane %v2609_v32, 5  ;;  %v1564_v7 = vshll.u32 %v9016_v45, 16  ;;  %v1568_v3 = vshrl.u32 %v9016_v45, 16  ;;  %v2597_v20 = vrot.slane %v2596_v43, 4  ;;  %v7611_v32 = vld [vmem:[#allocation9 + $0x88] sm:$0xff]  }
 0x238   : > { %v1519_v30 = vsel %vm8569_vm14, %v1514_v8, %v8984_v60  ;;  %v2606_v10 = vor.u32 %v2605_v17, %v2601_v9  ;;  %v1557_v16 = vrot.slane %v1555_v53, 4  ;;  %v1560_v42 = vrot.slane %v1558_v44, 5 }
 0x239   : > { %v6251_v11 = vcombine.low %v1519_v30, %v1529_v27  ;;  %v1566_v36 = vrot.slane %v1564_v7, 5  ;;  %v1570_v22 = vrot.slane %v1568_v3, 4  ;;  %v2602_v48 = vsel %vm8569_vm14, %v2597_v20, %v2601_v9  ;;  %v9045_v7 = vld [vmem:[#allocation2 + $0x24] sm:$0xf]  ;;  %v9047_v20 = vld [vmem:[#allocation2 + $0x28] sm:$0xf] }
 0x23a   : > { %v2607_v59 = vrot.slane %v2606_v10, 4  ;;  %v1574_v52 = vshll.u32 %v9024_v38, 16  ;;  %v6308_v6 = vcombine.low %v8992_v39, %v8837_v35  ;;  %v1561_v60 = vor.u32 %v1560_v42, %v1557_v16 }
 0x23b   : > { %3832 = vmatprep.mubr.bf16.mxu0 %v6251_v11  ;;  %v1571_v8 = vor.u32 %v1570_v22, %v1566_v36  ;;  %v2614_v43 = vshrl.u32 %v9032_v31, 16  ;;  %v2617_v27 = vshll.u32 %v9032_v31, 16  ;;  %v2623_v9 = vshll.u32 %v8863_v28, 16  ;;  %v7615_v11 = vld [vmem:[#allocation9 + $0x90] sm:$0xff]  }
 0x23c   : > { %3833 = vmatmul.mubr.bf16.vlgmr.msra.gmra.mrb[64].mxu0 %v6235_v25  ;;  %v2612_v17 = vsel %vm8569_vm14, %v2607_v59, %v2611_v23  ;;  %v1576_v53 = vrot.slane %v1574_v52, 5  ;;  %v2627_v44 = vshrl.u32 %v8863_v28, 16  ;;  %v1562_v39 = vrot.slane %v1561_v60, 4 }
 0x23d   : > { %3840 = vmatprep.mubr.bf16.mxu0 %v6252_v61  ;;  %v6324_v35 = vcombine.low %v2602_v48, %v2612_v17  ;;  %v1572_v3 = vrot.slane %v1571_v8, 4  ;;  %v2616_v30 = vrot.slane %v2614_v43, 4  ;;  %7094 = vmatpush3.bf16.msra.mxu0 %v8720_v15  ;;  %v2619_v25 = vrot.slane %v2617_v27, 5  ;;  %v9057_v48 = vld [vmem:[#allocation2 + $0x2c] sm:$0x1] }
 0x23e   : > { %v2625_v10 = vrot.slane %v2623_v9, 5  ;;  %v2629_v16 = vrot.slane %v2627_v44, 4  ;;  %v2633_v23 = vshll.u32 %v8878_v47, 16  ;;  %7095 = vmatprep.subr.bf16.mxu0 %v7611_v32  ;;  %v1567_v42 = vsel %vm8569_vm14, %v1562_v39, %v1566_v36  ;;  %v9060_v8 = vld [vmem:[#allocation2 + $0x90] sm:$0xf] }
 0x23f   : > { %3438 = vmatprep.mubr.bf16.mxu1 %v6324_v35  ;;  %v1577_v61 = vsel %vm8569_vm14, %v1572_v3, %v1576_v53  ;;  %v6237_v22 = vcombine.low %v9013_v26, %v9016_v45  ;;  %v1579_v15 = vshrl.u32 %v9045_v7, 16  ;;  %v2620_v52 = vor.u32 %v2619_v25, %v2616_v30  ;;  %v7619_v35 = vld [vmem:[#allocation9 + $0x98] sm:$0xff]  }
 0x240   : > { %v6253_v59 = vcombine.low %v1567_v42, %v1577_v61  ;;  %3439 = vmatmul.mubr.bf16.gmra.mrb[36].mxu1 %v6308_v6  ;;  %v2630_v47 = vor.u32 %v2629_v16, %v2625_v10  ;;  %v2635_v60 = vrot.slane %v2633_v23, 5  ;;  %v1582_v36 = vshll.u32 %v9045_v7, 16 }
 0x241   : > { %v1581_v43 = vrot.slane %v1579_v15, 4  ;;  %v1588_v27 = vshll.u32 %v9047_v20, 16  ;;  %v1592_v17 = vshrl.u32 %v9047_v20, 16  ;;  %7096 = vmatpush3.bf16.msra.mxu0 %v7611_v32  ;;  %v2621_v53 = vrot.slane %v2620_v52, 4 }
 0x242   : > { %v2631_v9 = vrot.slane %v2630_v47, 4  ;;  %v1598_v44 = vshll.u32 %v9057_v48, 16  ;;  %v6309_v6 = vcombine.low %v9032_v31, %v8863_v28  ;;  %7097 = vmatprep.subr.bf16.mxu0 %v7615_v11  ;;  %v1584_v39 = vrot.slane %v1582_v36, 5  ;;  %v9077_v31 = vld [vmem:[#allocation2 + $0x30] sm:$0xf] }
 0x243   : > { %v1590_v3 = vrot.slane %v1588_v27, 5  ;;  %v1594_v30 = vrot.slane %v1592_v17, 4  ;;  %v2638_v25 = vshrl.u32 %v9060_v8, 16  ;;  %v2626_v32 = vsel %vm8569_vm14, %v2621_v53, %v2625_v10  ;;  %v7622_v10 = vld [vmem:[#allocation9 + $0xa0] sm:$0xff]   ;;  %v9084_v27 = vld [vmem:[#allocation2 + $0x34] sm:$0xf] }
 0x244   : > { %3841 = vmatmul.mubr.bf16.gmra.mrb[68].mxu0 %v6236_v51  ;;  %v2636_v16 = vsel %vm8569_vm14, %v2631_v9, %v2635_v60  ;;  %v1600_v23 = vrot.slane %v1598_v44, 5  ;;  %v2641_v28 = vshll.u32 %v9060_v8, 16  ;;  %v1585_v61 = vor.u32 %v1584_v39, %v1581_v43  ;;  %v9087_v44 = vld [vmem:[#allocation2 + $0x38] sm:$0x1] }
 0x245   : > { %3848 = vmatprep.mubr.bf16.mxu0 %v6253_v59  ;;  %v6325_v42 = vcombine.low %v2626_v32, %v2636_v16  ;;  %v1595_v15 = vor.u32 %v1594_v30, %v1590_v3  ;;  %v2640_v52 = vrot.slane %v2638_v25, 4  ;;  %7098 = vmatpush3.bf16.msra.mxu0 %v7615_v11  ;;  %v2647_v0 = vshll.u32 %v8871_v2, 16  ;;  %v9094_v32 = vld [vmem:[#allocation2 + $0x9c] sm:$0xf] }
 0x246   : > { %v2643_v47 = vrot.slane %v2641_v28, 5  ;;  %v2651_v63 = vshrl.u32 %v8871_v2, 16  ;;  %v2657_v51 = vshll.u32 %v8881_v1, 16  ;;  %7099 = vmatprep.subr.bf16.mxu0 %v7619_v35  ;;  %v1586_v60 = vrot.slane %v1585_v61, 4  ;;  %v7630_v61 = vld [vmem:[#allocation9 + $0xa8] sm:$0xff]  }
 0x247   : > { %3446 = vmatprep.mubr.bf16.mxu1 %v6325_v42  ;;  %v1596_v36 = vrot.slane %v1595_v15, 4  ;;  %v6238_v59 = vcombine.low %v9045_v7, %v9047_v20  ;;  %v1603_v43 = vshrl.u32 %v9077_v31, 16  ;;  %v2649_v17 = vrot.slane %v2647_v0, 5 }
 0x248   : > { %3447 = vmatmul.mubr.bf16.gmra.mrb[40].mxu1 %v6309_v6  ;;  %v2644_v11 = vor.u32 %v2643_v47, %v2640_v52  ;;  %v2653_v53 = vrot.slane %v2651_v63, 4  ;;  %v2659_v9 = vrot.slane %v2657_v51, 5  ;;  %v1591_v1 = vsel %vm8569_vm14, %v1586_v60, %v1590_v3 }
 0x249   : > { %v1601_v39 = vsel %vm8569_vm14, %v1596_v36, %v1600_v23  ;;  %v1605_v30 = vrot.slane %v1603_v43, 4  ;;  %v1606_v25 = vshll.u32 %v9077_v31, 16  ;;  %7100 = vmatpush3.bf16.msra.mxu0 %v7619_v35  ;;  %v1612_v42 = vshll.u32 %v9084_v27, 16 }
 0x24a   : > { %v6254_v16 = vcombine.low %v1591_v1, %v1601_v39  ;;  %v2645_v6 = vrot.slane %v2644_v11, 4  ;;  %v2654_v28 = vor.u32 %v2653_v53, %v2649_v17  ;;  %7101 = vmatprep.subr.bf16.mxu0 %v7622_v10  ;;  %v1616_v52 = vshrl.u32 %v9084_v27, 16  ;;  %v9112_v11 = vld [vmem:[#allocation2 + $0x3c] sm:$0xf] }
 0x24b   : > { %v1608_v15 = vrot.slane %v1606_v25, 5  ;;  %v1622_v3 = vshll.u32 %v9087_v44, 16  ;;  %v6310_v23 = vcombine.low %v9060_v8, %v8871_v2  ;;  %v1614_v0 = vrot.slane %v1612_v42, 5  ;;  %v9114_v25 = vld [vmem:[#allocation2 + $0x40] sm:$0xf] }
 0x24c   : > { %3849 = vmatmul.mubr.bf16.gmra.mrb[72].mxu0 %v6237_v22  ;;  %v2650_v35 = vsel %vm8569_vm14, %v2645_v6, %v2649_v17  ;;  %v2655_v47 = vrot.slane %v2654_v28, 4  ;;  %v2662_v63 = vshrl.u32 %v9094_v32, 16  ;;  %v1618_v60 = vrot.slane %v1616_v52, 4  ;;  %v7634_v17 = vld [vmem:[#allocation9 + $0xb0] sm:$0xff]  }
 0x24d   : > { %3856 = vmatprep.mubr.bf16.mxu0 %v6254_v16  ;;  %v1609_v51 = vor.u32 %v1608_v15, %v1605_v30  ;;  %v1624_v36 = vrot.slane %v1622_v3, 5  ;;  %v2665_v43 = vshll.u32 %v9094_v32, 16  ;;  %7102 = vmatpush3.bf16.msra.mxu0 %v7622_v10  ;;  %v2671_v26 = vshll.u32 %v8902_v58, 16 }
 0x24e   : > { %v2660_v2 = vsel %vm8569_vm14, %v2655_v47, %v2659_v9  ;;  %v2664_v8 = vrot.slane %v2662_v63, 4  ;;  %v2675_v22 = vshrl.u32 %v8902_v58, 16  ;;  %7103 = vmatprep.subr.bf16.mxu0 %v7630_v61  ;;  %v1619_v39 = vor.u32 %v1618_v60, %v1614_v0  ;;  %v9122_v47 = vld [vmem:[#allocation2 + $0x44] sm:$0x1] }
 0x24f   : > { %v6326_v53 = vcombine.low %v2650_v35, %v2660_v2  ;;  %v1610_v1 = vrot.slane %v1609_v51, 4  ;;  %v2667_v30 = vrot.slane %v2665_v43, 5  ;;  %v2673_v16 = vrot.slane %v2671_v26, 5  ;;  %v7638_v51 = vld [vmem:[#allocation9 + $0xb8] sm:$0xff]  }
 0x250   : > { %v2677_v10 = vrot.slane %v2675_v22, 4  ;;  %v2681_v6 = vshll.u32 %v8904_v62, 16  ;;  %v6239_v9 = vcombine.low %v9077_v31, %v9084_v27  ;;  %v1620_v42 = vrot.slane %v1619_v39, 4 }
 0x251   : > { %3454 = vmatprep.mubr.bf16.mxu1 %v6326_v53  ;;  %v1615_v28 = vsel %vm8569_vm14, %v1610_v1, %v1614_v0  ;;  %v2668_v15 = vor.u32 %v2667_v30, %v2664_v8  ;;  %v1627_v52 = vshrl.u32 %v9112_v11, 16  ;;  %7104 = vmatpush3.bf16.msra.mxu0 %v7630_v61  ;;  %v1630_v63 = vshll.u32 %v9112_v11, 16  ;;  %v9129_v8 = vld [vmem:[#allocation2 + $0xa8] sm:$0xf] }
 0x252   : > { %3455 = vmatmul.mubr.bf16.gmra.mrb[44].mxu1 %v6310_v23  ;;  %v2678_v3 = vor.u32 %v2677_v10, %v2673_v16  ;;  %v2683_v35 = vrot.slane %v2681_v6, 5  ;;  %v1636_v62 = vshll.u32 %v9114_v25, 16  ;;  %7105 = vmatprep.subr.bf16.mxu0 %v7634_v17  ;;  %v1625_v60 = vsel %vm8569_vm14, %v1620_v42, %v1624_v36  ;;  %v9143_v6 = vld [vmem:[#allocation9 + $0x200] sm:$0xff]  }
 0x253   : > { %v2669_v0 = vrot.slane %v2668_v15, 4  ;;  %v1629_v43 = vrot.slane %v1627_v52, 4  ;;  %v1640_v2 = vshrl.u32 %v9114_v25, 16  ;;  %v6255_v61 = vcombine.low %v1615_v28, %v1625_v60  ;;  %v9146_v52 = vld [vmem:[#allocation2 + $0x48] sm:$0xf] }
 0x254   : > { %3857 = vmatmul.mubr.bf16.gmra.mrb[76].mxu0 %v6238_v59  ;;  %v2679_v23 = vrot.slane %v2678_v3, 4  ;;  %v1632_v26 = vrot.slane %v1630_v63, 5  ;;  %v1638_v22 = vrot.slane %v1636_v62, 5  ;;  %v1646_v36 = vshll.u32 %v9122_v47, 16 }
 0x255   : > { %v2674_v53 = vsel %vm8569_vm14, %v2669_v0, %v2673_v16  ;;  %v1642_v1 = vrot.slane %v1640_v2, 4  ;;  %v6311_v39 = vcombine.low %v9094_v32, %v8902_v58  ;;  %7106 = vmatpush3.bf16.msra.mxu0 %v7634_v17  ;;  %3864 = vmatprep.mubr.bf16.mxu0 %v6255_v61  ;;  %v2686_v59 = vshrl.u32 %v9129_v8, 16 }
 0x256   : > { %v2684_v30 = vsel %vm8569_vm14, %v2679_v23, %v2683_v35  ;;  %v1633_v7 = vor.u32 %v1632_v26, %v1629_v43  ;;  %v2689_v10 = vshll.u32 %v9129_v8, 16  ;;  %7107 = vmatprep.subr.bf16.mxu0 %v7638_v51  ;;  %v1648_v42 = vrot.slane %v1646_v36, 5  ;;  %v9149_v35 = vld [vmem:[#allocation2 + $0x4c] sm:$0xf]  ;;  %v9156_v23 = vld [vmem:[#allocation2 + $0x50] sm:$0x1] }
 0x257   : > { %v6327_v16 = vcombine.low %v2674_v53, %v2684_v30  ;;  %v1643_v28 = vor.u32 %v1642_v1, %v1638_v22  ;;  %v2695_v15 = vshll.u32 %v8909_v21, 16  ;;  %v2688_v32 = vrot.slane %v2686_v59, 4 }
 0x258   : > { %v1634_v58 = vrot.slane %v1633_v7, 4  ;;  %v2691_v17 = vrot.slane %v2689_v10, 5  ;;  %v2699_v3 = vshrl.u32 %v8909_v21, 16  ;;  %v2705_v60 = vshll.u32 %v8911_v57, 16 }
 0x259   : > { %3462 = vmatprep.mubr.bf16.mxu1 %v6327_v16  ;;  %v1644_v63 = vrot.slane %v1643_v28, 4  ;;  %v2697_v62 = vrot.slane %v2695_v15, 5  ;;  %v6240_v0 = vcombine.low %v9112_v11, %v9114_v25  ;;  %7108 = vmatpush3.bf16.msra.mxu0 %v7638_v51  ;;  %v1651_v26 = vshrl.u32 %v9146_v52, 16  ;;  %v9164_v51 = vld [vmem:[#allocation2 + $0xb4] sm:$0xf] }
 0x25a   : > { %v1639_v43 = vsel %vm8569_vm14, %v1634_v58, %v1638_v22  ;;  %3463 = vmatmul.mubr.bf16.gmra.mrb[48].mxu1 %v6311_v39  ;;  %v2692_v2 = vor.u32 %v2691_v17, %v2688_v32  ;;  %v2701_v61 = vrot.slane %v2699_v3, 4  ;;  %7141 = vmatprep.subr.bf16.mxu0 %v9143_v6  ;;  %v2707_v57 = vrot.slane %v2705_v60, 5 }
 0x25b   : > { %v1649_v53 = vsel %vm8569_vm14, %v1644_v63, %v1648_v42  ;;  %v1654_v1 = vshll.u32 %v9146_v52, 16  ;;  %v1660_v11 = vshll.u32 %v9149_v35, 16  ;;  %v1653_v30 = vrot.slane %v1651_v26, 4  ;;  %v9183_v26 = vld [vmem:[#allocation2 + $0x58] sm:$0xf] }
 0x25c   : > { %3865 = vmatmul.mubr.bf16.gmra.mrb[80].mxu0 %v6239_v9  ;;  %v6256_v22 = vcombine.low %v1639_v43, %v1649_v53  ;;  %v2693_v36 = vrot.slane %v2692_v2, 4  ;;  %v2702_v39 = vor.u32 %v2701_v61, %v2697_v62  ;;  %v1664_v10 = vshrl.u32 %v9149_v35, 16 }
 0x25d   : > { %v1656_v7 = vrot.slane %v1654_v1, 5  ;;  %v1662_v59 = vrot.slane %v1660_v11, 5  ;;  %v1670_v16 = vshll.u32 %v9156_v23, 16  ;;  %v6312_v15 = vcombine.low %v9129_v8, %v8909_v21 }
 0x25e   : > { %3872 = vmatprep.mubr.bf16.mxu0 %v6256_v22  ;;  %v2698_v28 = vsel %vm8569_vm14, %v2693_v36, %v2697_v62  ;;  %v2703_v42 = vrot.slane %v2702_v39, 4  ;;  %v2710_v31 = vshrl.u32 %v9164_v51, 16  ;;  %v1666_v58 = vrot.slane %v1664_v10, 4  ;;  %v9181_v62 = vld [vmem:[#allocation2 + $0x54] sm:$0xf] }
 0x25f   : > { %v1657_v9 = vor.u32 %v1656_v7, %v1653_v30  ;;  %v1672_v32 = vrot.slane %v1670_v16, 5  ;;  %v2713_v17 = vshll.u32 %v9164_v51, 16  ;;  %v2719_v60 = vshll.u32 %v8932_v34, 16  ;;  %v9191_v16 = vld [vmem:[#allocation2 + $0x5c] sm:$0x1] }
 0x260   : > { %v2708_v3 = vsel %vm8569_vm14, %v2703_v42, %v2707_v57  ;;  %v2712_v63 = vrot.slane %v2710_v31, 4  ;;  %v2723_v43 = vshrl.u32 %v8932_v34, 16  ;;  %v1667_v21 = vor.u32 %v1666_v58, %v1662_v59 }
 0x261   : > { %v6328_v2 = vcombine.low %v2698_v28, %v2708_v3  ;;  %v1658_v61 = vrot.slane %v1657_v9, 4  ;;  %v2715_v8 = vrot.slane %v2713_v17, 5  ;;  %v2721_v53 = vrot.slane %v2719_v60, 5  ;;  %v9198_v9 = vld [vmem:[#allocation2 + $0xc0] sm:$0xf] }
 0x262   : > { %v2725_v1 = vrot.slane %v2723_v43, 4  ;;  %v2729_v11 = vshll.u32 %v8938_v4, 16  ;;  %v6241_v57 = vcombine.low %v9146_v52, %v9149_v35  ;;  %v1668_v36 = vrot.slane %v1667_v21, 4 }
 0x263   : > { %3470 = vmatprep.mubr.bf16.mxu1 %v6328_v2  ;;  %v1663_v22 = vsel %vm8569_vm14, %v1658_v61, %v1662_v59  ;;  %v2716_v39 = vor.u32 %v2715_v8, %v2712_v63  ;;  %v1675_v30 = vshrl.u32 %v9181_v62, 16  ;;  %v1678_v28 = vshll.u32 %v9181_v62, 16 }
 0x264   : > { %3873 = vmatmul.mubr.bf16.gmra.mrb[84].mxu0 %v6240_v0  ;;  %3471 = vmatmul.mubr.bf16.gmra.mrb[52].mxu1 %v6312_v15  ;;  %v2726_v7 = vor.u32 %v2725_v1, %v2721_v53  ;;  %v2731_v10 = vrot.slane %v2729_v11, 5  ;;  %v1684_v4 = vshll.u32 %v9183_v26, 16  ;;  %v1673_v52 = vsel %vm8569_vm14, %v1668_v36, %v1672_v32 }
 0x265   : > { %v2717_v42 = vrot.slane %v2716_v39, 4  ;;  %v1677_v31 = vrot.slane %v1675_v30, 4  ;;  %v1688_v59 = vshrl.u32 %v9183_v26, 16  ;;  %v6257_v58 = vcombine.low %v1663_v22, %v1673_v52  ;;  %v9210_v22 = vld [vmem:[#allocation2 + $0x60] sm:$0xf] }
 0x266   : > { %v2727_v0 = vrot.slane %v2726_v7, 4  ;;  %v1680_v15 = vrot.slane %v1678_v28, 5  ;;  %v1686_v17 = vrot.slane %v1684_v4, 5  ;;  %v1694_v60 = vshll.u32 %v9191_v16, 16 }
 0x267   : > { %v2722_v3 = vsel %vm8569_vm14, %v2717_v42, %v2721_v53  ;;  %v1690_v63 = vrot.slane %v1688_v59, 4  ;;  %v6313_v43 = vcombine.low %v9164_v51, %v8932_v34  ;;  %3880 = vmatprep.mubr.bf16.mxu0 %v6257_v58  ;;  %v2734_v61 = vshrl.u32 %v9198_v9, 16  ;;  %v9213_v51 = vld [vmem:[#allocation2 + $0x64] sm:$0xf]  ;;  %v9220_v59 = vld [vmem:[#allocation2 + $0x68] sm:$0x1] }
 0x268   : > { %v2732_v32 = vsel %vm8569_vm14, %v2727_v0, %v2731_v10  ;;  %v1681_v2 = vor.u32 %v1680_v15, %v1677_v31  ;;  %v2737_v21 = vshll.u32 %v9198_v9, 16  ;;  %v1696_v11 = vrot.slane %v1694_v60, 5 }
 0x269   : > { %v6329_v8 = vcombine.low %v2722_v3, %v2732_v32  ;;  %v1691_v1 = vor.u32 %v1690_v63, %v1686_v17  ;;  %v2743_v53 = vshll.u32 %v8940_v54, 16  ;;  %v2736_v39 = vrot.slane %v2734_v61, 4 }
 0x26a   : > { %v1682_v36 = vrot.slane %v1681_v2, 4  ;;  %v2739_v30 = vrot.slane %v2737_v21, 5  ;;  %v2747_v34 = vshrl.u32 %v8940_v54, 16  ;;  %v2753_v28 = vshll.u32 %v8945_v49, 16  ;;  %v9231_v21 = vld [vmem:[#allocation2 + $0x88] sm:$0xf] }
 0x26b   : > { %3478 = vmatprep.mubr.bf16.mxu1 %v6329_v8  ;;  %v1692_v7 = vrot.slane %v1691_v1, 4  ;;  %v2745_v10 = vrot.slane %v2743_v53, 5  ;;  %v6242_v4 = vcombine.low %v9181_v62, %v9183_v26  ;;  %v1699_v58 = vshrl.u32 %v9210_v22, 16  ;;  %v9227_v62 = vld [vmem:[#allocation2 + $0x84] sm:$0xf] }
 0x26c   : > { %3881 = vmatmul.mubr.bf16.gmra.mrb[88].mxu0 %v6241_v57  ;;  %v1687_v52 = vsel %vm8569_vm14, %v1682_v36, %v1686_v17  ;;  %3479 = vmatmul.mubr.bf16.gmra.mrb[56].mxu1 %v6313_v43  ;;  %v2740_v42 = vor.u32 %v2739_v30, %v2736_v39  ;;  %v2749_v31 = vrot.slane %v2747_v34, 4  ;;  %v2755_v15 = vrot.slane %v2753_v28, 5  ;;  %v9238_v34 = vld [vmem:[#allocation2 + $0x8c] sm:$0x1] }
 0x26d   : > { %v1697_v0 = vsel %vm8569_vm14, %v1692_v7, %v1696_v11  ;;  %v1702_v49 = vshll.u32 %v9210_v22, 16  ;;  %v1708_v3 = vshll.u32 %v9213_v51, 16  ;;  %v1701_v60 = vrot.slane %v1699_v58, 4 }
 0x26e   : > { %v6258_v57 = vcombine.low %v1687_v52, %v1697_v0  ;;  %v2741_v63 = vrot.slane %v2740_v42, 4  ;;  %v2750_v17 = vor.u32 %v2749_v31, %v2745_v10  ;;  %v1712_v2 = vshrl.u32 %v9213_v51, 16  ;;  %v9245_v31 = vld [vmem:[#allocation2 + $0x6c] sm:$0xf] }
 0x26f   : > { %v1704_v43 = vrot.slane %v1702_v49, 5  ;;  %v1710_v32 = vrot.slane %v1708_v3, 5  ;;  %v1718_v61 = vshll.u32 %v9220_v59, 16  ;;  %v6314_v11 = vcombine.low %v9198_v9, %v8940_v54  ;;  %v9247_v49 = vld [vmem:[#allocation2 + $0x70] sm:$0xf] }
 0x270   : > { %3888 = vmatprep.mubr.bf16.mxu0 %v6258_v57  ;;  %v2746_v8 = vsel %vm8569_vm14, %v2741_v63, %v2745_v10  ;;  %v2751_v1 = vrot.slane %v2750_v17, 4  ;;  %v1771_v53 = vshrl.u32 %v9227_v62, 16  ;;  %v1714_v39 = vrot.slane %v1712_v2, 4 }
 0x271   : > { %v1705_v36 = vor.u32 %v1704_v43, %v1701_v60  ;;  %v1720_v30 = vrot.slane %v1718_v61, 5  ;;  %v1774_v7 = vshll.u32 %v9227_v62, 16  ;;  %v1780_v42 = vshll.u32 %v9231_v21, 16 }
 0x272   : > { %v2756_v28 = vsel %vm8569_vm14, %v2751_v1, %v2755_v15  ;;  %v1773_v52 = vrot.slane %v1771_v53, 4  ;;  %v1784_v10 = vshrl.u32 %v9231_v21, 16  ;;  %v1715_v58 = vor.u32 %v1714_v39, %v1710_v32  ;;  %v9255_v1 = vld [vmem:[#allocation2 + $0x74] sm:$0x1] }
 0x273   : > { %v6330_v54 = vcombine.low %v2746_v8, %v2756_v28  ;;  %v1706_v9 = vrot.slane %v1705_v36, 4  ;;  %v1776_v0 = vrot.slane %v1774_v7, 5  ;;  %v1782_v3 = vrot.slane %v1780_v42, 5  ;;  %v9262_v7 = vld [vmem:[#allocation2 + $0x90] sm:$0xf] }
 0x274   : > { %3889 = vmatmul.mubr.bf16.gmra.mrb[92].mxu0 %v6242_v4  ;;  %v1786_v57 = vrot.slane %v1784_v10, 4  ;;  %v1790_v63 = vshll.u32 %v9238_v34, 16  ;;  %v6243_v15 = vcombine.low %v9210_v22, %v9213_v51  ;;  %v1716_v60 = vrot.slane %v1715_v58, 4  ;;  %v9264_v10 = vld [vmem:[#allocation2 + $0x94] sm:$0xf] }
 0x275   : > { %3486 = vmatprep.mubr.bf16.mxu1 %v6330_v54  ;;  %v1711_v17 = vsel %vm8569_vm14, %v1706_v9, %v1710_v32  ;;  %v1777_v43 = vor.u32 %v1776_v0, %v1773_v52  ;;  %v1723_v2 = vshrl.u32 %v9245_v31, 16  ;;  %v1726_v4 = vshll.u32 %v9245_v31, 16 }
 0x276   : > { %3487 = vmatmul.mubr.bf16.gmra.mrb[60].mxu1 %v6314_v11  ;;  %v1787_v61 = vor.u32 %v1786_v57, %v1782_v3  ;;  %v1792_v8 = vrot.slane %v1790_v63, 5  ;;  %v1732_v53 = vshll.u32 %v9247_v49, 16  ;;  %v1721_v22 = vsel %vm8569_vm14, %v1716_v60, %v1720_v30  ;;  %v9273_v63 = vld [vmem:[#allocation2 + $0x98] sm:$0x1] }
 0x277   : > { %v1778_v36 = vrot.slane %v1777_v43, 4  ;;  %v1725_v39 = vrot.slane %v1723_v2, 4  ;;  %v1736_v32 = vshrl.u32 %v9247_v49, 16  ;;  %v6259_v28 = vcombine.low %v1711_v17, %v1721_v22  ;;  %v9277_v43 = vld [vmem:[#allocation2 + $0x78] sm:$0xf] }
 0x278   : > { %v1788_v52 = vrot.slane %v1787_v61, 4  ;;  %v1728_v11 = vrot.slane %v1726_v4, 5  ;;  %v1734_v42 = vrot.slane %v1732_v53, 5  ;;  %v1742_v58 = vshll.u32 %v9255_v1, 16  ;;  %v7625_v4 = vld [vmem:[#allocation9 + $0x180] sm:$0xff]  }
 0x279   : > { %v1783_v54 = vsel %vm8569_vm14, %v1778_v36, %v1782_v3  ;;  %v1738_v9 = vrot.slane %v1736_v32, 4  ;;  %v6246_v30 = vcombine.low %v9227_v62, %v9231_v21  ;;  %3896 = vmatprep.mubr.bf16.mxu0 %v6259_v28  ;;  %v1795_v17 = vshrl.u32 %v9262_v7, 16  ;;  %v9280_v62 = vld [vmem:[#allocation2 + $0x7c] sm:$0xf]  ;;  %v7627_v32 = vld [vmem:[#allocation9 + $0x1c8] sm:$0xff]  }
 0x27a   : > { %v1793_v0 = vsel %vm8569_vm14, %v1788_v52, %v1792_v8  ;;  %v1729_v57 = vor.u32 %v1728_v11, %v1725_v39  ;;  %v1798_v60 = vshll.u32 %v9262_v7, 16  ;;  %v1744_v61 = vrot.slane %v1742_v58, 5 }
 0x27b   : > { %v6262_v3 = vcombine.low %v1783_v54, %v1793_v0  ;;  %v1739_v2 = vor.u32 %v1738_v9, %v1734_v42  ;;  %v1804_v53 = vshll.u32 %v9264_v10, 16  ;;  %v1797_v8 = vrot.slane %v1795_v17, 4  ;;  %v9288_v0 = vld [vmem:[#allocation2 + $0x80] sm:$0x1] }
 0x27c   : > { %3897 = vmatmul.mubr.bf16.gmra.mrb[96].mxu0 %v6243_v15  ;;  %v1730_v22 = vrot.slane %v1729_v57, 4  ;;  %v1800_v36 = vrot.slane %v1798_v60, 5  ;;  %v1808_v39 = vshrl.u32 %v9264_v10, 16  ;;  %v1814_v11 = vshll.u32 %v9273_v63, 16 }
 0x27d   : > { %3920 = vmatprep.mubr.bf16.mxu1 %v6262_v3  ;;  %v1740_v28 = vrot.slane %v1739_v2, 4  ;;  %v1806_v52 = vrot.slane %v1804_v53, 5  ;;  %v6244_v54 = vcombine.low %v9245_v31, %v9247_v49  ;;  %v1747_v57 = vshrl.u32 %v9277_v43, 16  ;;  %v7628_v31 = vld [vmem:[#allocation9 + $0x188] sm:$0xff]   ;;  %v9295_v53 = vld [vmem:[#allocation2 + $0x9c] sm:$0xf] }
 0x27e   : > { %v1735_v9 = vsel %vm8569_vm14, %v1730_v22, %v1734_v42  ;;  %3921 = vmatmul.mubr.bf16.vlgmr.msra.gmra.mrb[64].mxu1 %v6246_v30  ;;  %v1801_v58 = vor.u32 %v1800_v36, %v1797_v8  ;;  %v1810_v15 = vrot.slane %v1808_v39, 4  ;;  %v1816_v60 = vrot.slane %v1814_v11, 5  ;;  %v7631_v36 = vld [vmem:[#allocation9 + $0x1d0] sm:$0xff]  }
 0x27f   : > { %v1745_v17 = vsel %vm8569_vm14, %v1740_v28, %v1744_v61  ;;  %6838 = vmatpush3.bf16.msra.mxu1 %v7625_v4  ;;  %v1750_v3 = vshll.u32 %v9277_v43, 16  ;;  %v1756_v2 = vshll.u32 %v9280_v62, 16  ;;  %v1749_v8 = vrot.slane %v1747_v57, 4  ;;  %v9299_v4 = vld [vmem:[#allocation2 + $0xa0] sm:$0xf] }
 0x280   : > { %v6260_v42 = vcombine.low %v1735_v9, %v1745_v17  ;;  %v1802_v30 = vrot.slane %v1801_v58, 4  ;;  %v1811_v22 = vor.u32 %v1810_v15, %v1806_v52  ;;  %6839 = vmatprep.subr.bf16.mxu1 %v7627_v32  ;;  %v1760_v50 = vshrl.u32 %v9280_v62, 16  ;;  %v9306_v17 = vld [vmem:[#allocation2 + $0xa4] sm:$0x1] }
 0x281   : > { %v1752_v39 = vrot.slane %v1750_v3, 5  ;;  %v1758_v40 = vrot.slane %v1756_v2, 5  ;;  %v1766_v61 = vshll.u32 %v9288_v0, 16  ;;  %v6247_v9 = vcombine.low %v9262_v7, %v9264_v10  ;;  %v7632_v2 = vld [vmem:[#allocation9 + $0x190] sm:$0xff]  }
 0x282   : > { %3904 = vmatprep.mubr.bf16.mxu0 %v6260_v42  ;;  %v1807_v28 = vsel %vm8569_vm14, %v1802_v30, %v1806_v52  ;;  %v1812_v11 = vrot.slane %v1811_v22, 4  ;;  %v1819_v32 = vshrl.u32 %v9295_v53, 16  ;;  %v1762_v15 = vrot.slane %v1760_v50, 4  ;;  %v7635_v22 = vld [vmem:[#allocation9 + $0x1d8] sm:$0xff]  }
 0x283   : > { %v1753_v58 = vor.u32 %v1752_v39, %v1749_v8  ;;  %v1768_v57 = vrot.slane %v1766_v61, 5  ;;  %6840 = vmatpush3.bf16.msra.mxu1 %v7628_v31  ;;  %v1822_v3 = vshll.u32 %v9295_v53, 16  ;;  %v1828_v30 = vshll.u32 %v9299_v4, 16  ;;  %v9313_v61 = vld [vmem:[#allocation2 + $0xa8] sm:$0xf] }
 0x284   : > { %v1817_v42 = vsel %vm8569_vm14, %v1812_v11, %v1816_v60  ;;  %3905 = vmatmul.mubr.bf16.gmra.mrb[100].mxu0 %v6244_v54  ;;  %v1821_v52 = vrot.slane %v1819_v32, 4  ;;  %v1832_v7 = vshrl.u32 %v9299_v4, 16  ;;  %6841 = vmatprep.subr.bf16.mxu1 %v7631_v36  ;;  %v1763_v39 = vor.u32 %v1762_v15, %v1758_v40  ;;  %v9318_v60 = vld [vmem:[#allocation2 + $0xac] sm:$0xf]  ;;  %v7636_v32 = vld [vmem:[#allocation9 + $0x198] sm:$0xff]  }
 0x285   : > { %v6263_v8 = vcombine.low %v1807_v28, %v1817_v42  ;;  %v1754_v50 = vrot.slane %v1753_v58, 4  ;;  %v1824_v31 = vrot.slane %v1822_v3, 5  ;;  %v1830_v46 = vrot.slane %v1828_v30, 5  ;;  %v9324_v42 = vld [vmem:[#allocation2 + $0xb0] sm:$0x1] }
 0x286   : > { %v1834_v41 = vrot.slane %v1832_v7, 4  ;;  %v1838_v37 = vshll.u32 %v9306_v17, 16  ;;  %v6245_v54 = vcombine.low %v9277_v43, %v9280_v62  ;;  %v1764_v11 = vrot.slane %v1763_v39, 4  ;;  %v7639_v7 = vld [vmem:[#allocation9 + $0x1e0] sm:$0xff]  }
 0x287   : > { %3928 = vmatprep.mubr.bf16.mxu1 %v6263_v8  ;;  %v1759_v36 = vsel %vm8569_vm14, %v1754_v50, %v1758_v40  ;;  %v1825_v28 = vor.u32 %v1824_v31, %v1821_v52  ;;  %6842 = vmatpush3.bf16.msra.mxu1 %v7632_v2  ;;  %v6248_v58 = vcombine.low %v9295_v53, %v9299_v4  ;;  %v1843_v43 = vshrl.u32 %v9313_v61, 16  ;;  %v1890_v53 = vld [vmem:[#allocation2] sm:$0xe] }
 0x288   : > { %3929 = vmatmul.mubr.bf16.gmra.mrb[68].mxu1 %v6247_v9  ;;  %v1835_v15 = vor.u32 %v1834_v41, %v1830_v46  ;;  %v1840_v3 = vrot.slane %v1838_v37, 5  ;;  %6843 = vmatprep.subr.bf16.mxu1 %v7635_v22  ;;  %v1846_v30 = vshll.u32 %v9313_v61, 16  ;;  %v1769_v40 = vsel %vm8569_vm14, %v1764_v11, %v1768_v57  ;;  %v7640_v57 = vld [vmem:[#allocation9 + $0x1a0] sm:$0xff]  }
 0x289   : > { %v1826_v52 = vrot.slane %v1825_v28, 4  ;;  %v1852_v2 = vshll.u32 %v9318_v60, 16  ;;  %v1856_v8 = vshrl.u32 %v9318_v60, 16  ;;  %v6261_v9 = vcombine.low %v1759_v36, %v1769_v40  ;;  %v7706_v36 = vld [vmem:[#allocation2 + $0x4] sm:$0xf] }
 0x28a   : > { %v1836_v41 = vrot.slane %v1835_v15, 4  ;;  %v1845_v37 = vrot.slane %v1843_v43, 4  ;;  %v1848_v22 = vrot.slane %v1846_v30, 5  ;;  %v1862_v33 = vshll.u32 %v9324_v42, 16  ;;  %v1892_v43 = vld [vmem:[#allocation2 + $0x18] sm:$0xe] }
 0x28b   : > { %v1831_v50 = vsel %vm8569_vm14, %v1826_v52, %v1830_v46  ;;  %6844 = vmatpush3.bf16.msra.mxu1 %v7636_v32  ;;  %v1854_v39 = vrot.slane %v1852_v2, 5  ;;  %v1858_v31 = vrot.slane %v1856_v8, 4  ;;  %3912 = vmatprep.mubr.bf16.mxu0 %v6261_v9  ;;  %v6219_v24 = vrot.slane %v1890_v53, 9  ;;  %v7642_v30 = vld [vmem:[#allocation9 + $0x1e8] sm:$0xff]  }
 0x28c   : > { %v1841_v11 = vsel %vm8569_vm14, %v1836_v41, %v1840_v3  ;;  %v1849_v28 = vor.u32 %v1848_v22, %v1845_v37  ;;  %v1959_v15 = vrot.slane %v7706_v36, 5  ;;  %6845 = vmatprep.subr.bf16.mxu1 %v7639_v7  ;;  %3913 = vmatmul.mubr.bf16.gmra.mrb[104].mxu0 %v6245_v54  ;;  %v1864_v32 = vrot.slane %v1862_v33, 5  ;;  %v9340_v3 = vld [vmem:[#allocation2 + $0xb4] sm:$0xf]  ;;  %v7707_v41 = vld [vmem:[#allocation2 + $0x10] sm:$0xf] }
 0x28d   : > { %v6264_v40 = vcombine.low %v1831_v50, %v1841_v11  ;;  %v1859_v46 = vor.u32 %v1858_v31, %v1854_v39  ;;  %v1962_v52 = vrot.slane %v9003_v12, 5  ;;  %v6220_v18 = vrot.slane %v1891_v29, 9  ;;  %v7643_v22 = vld [vmem:[#allocation9 + $0x1a8] sm:$0xff]   ;;  %v9350_v50 = vld [vmem:[#allocation2 + $0xb8] sm:$0xf]  ;;  %v7644_v31 = vld [vmem:[#allocation9 + $0x1f0] sm:$0xff]  }
 0x28e   : > { %v1850_v2 = vrot.slane %v1849_v28, 4  ;;  %v1960_v8 = vsel %vm8493_vm11, %v6219_v24, %v1959_v15  ;;  %v1961_v9 = vrot.slane %v1959_v15, 4  ;;  %v1966_v7 = vrot.slane %v7707_v41, 5  ;;  %v9356_v11 = vld [vmem:[#allocation2 + $0xbc] sm:$0x1] }
 0x28f   : > { %3936 = vmatprep.mubr.bf16.mxu1 %v6264_v40  ;;  %v1860_v53 = vrot.slane %v1859_v46, 4  ;;  %6846 = vmatpush3.bf16.msra.mxu1 %v7640_v57  ;;  %v6221_v37 = vrot.slane %v1892_v43, 9  ;;  %v1973_v54 = vrot.slane %v9016_v45, 5  ;;  %v1976_v29 = vrot.slane %v9024_v38, 5  ;;  %v1893_v46 = vld [vmem:[#allocation2 + $0x24] sm:$0xe] }
 0x290   : > { %3937 = vmatmul.mubr.bf16.gmra.mrb[72].mxu1 %v6248_v58  ;;  %v1855_v33 = vsel %vm8569_vm14, %v1850_v2, %v1854_v39  ;;  %v1963_v24 = vsel %vm8493_vm11, %v1961_v9, %v1962_v52  ;;  %v6249_v12 = vcombine.low %v9313_v61, %v9318_v60  ;;  %6847 = vmatprep.subr.bf16.mxu1 %v7642_v30  ;;  %v1968_v39 = vrot.slane %v1966_v7, 4  ;;  %v1894_v9 = vld [vmem:[#allocation2 + $0x30] sm:$0xe] }
 0x291   : > { %v1865_v45 = vsel %vm8569_vm14, %v1860_v53, %v1864_v32  ;;  %v6267_v57 = vcombine.low %v1960_v8, %v1963_v24  ;;  %v1967_v58 = vsel %vm8493_vm11, %v6220_v18, %v1966_v7  ;;  %v1974_v38 = vsel %vm8493_vm11, %v6221_v37, %v1973_v54  ;;  %v7645_v32 = vld [vmem:[#allocation9 + $0x1b0] sm:$0xff]   ;;  %v7647_v53 = vld [vmem:[#allocation9 + $0x1f8] sm:$0xff]  }
 0x292   : > { %v6265_v28 = vcombine.low %v1855_v33, %v1865_v45  ;;  %v1975_v36 = vrot.slane %v1973_v54, 4  ;;  %v1867_v61 = vshrl.u32 %v9340_v3, 16  ;;  %v10264_v15 = vrot.slane %v8982_v55, 5  ;;  %v9371_v33 = vld [vmem:[#allocation2 + $0x18] sm:$0xf] }
 0x293   : > { %7109 = vmatprep.mubr.bf16.mxu0 %v6267_v57  ;;  %v1870_v30 = vshll.u32 %v9340_v3, 16  ;;  %v1876_v18 = vshll.u32 %v9350_v50, 16  ;;  %v1880_v40 = vshrl.u32 %v9350_v50, 16  ;;  %6848 = vmatpush3.bf16.msra.mxu1 %v7643_v22  ;;  %v1886_v55 = vshll.u32 %v9356_v11, 16 }
 0x294   : > { %v1970_v43 = vsel %vm8493_vm11, %v1968_v39, %v10264_v15  ;;  %3944 = vmatprep.mubr.bf16.mxu1 %v6265_v28  ;;  %v1977_v2 = vsel %vm8493_vm11, %v1975_v36, %v1976_v29  ;;  %v1869_v8 = vrot.slane %v1867_v61, 4  ;;  %6849 = vmatprep.subr.bf16.mxu1 %v7644_v31  ;;  %v6222_v24 = vrot.slane %v1893_v46, 9  ;;  %v7652_v29 = vld [vmem:[#allocation9 + $0x208] sm:$0xff]   ;;  %v7648_v36 = vld [vmem:[#allocation9 + $0x1b8] sm:$0xff]  }
 0x295   : > { %v6268_v52 = vcombine.low %v1967_v58, %v1970_v43  ;;  %v6269_v41 = vcombine.low %v1974_v38, %v1977_v2  ;;  %v1872_v7 = vrot.slane %v1870_v30, 5  ;;  %v1878_v37 = vrot.slane %v1876_v18, 5  ;;  %v9376_v38 = vld [vmem:[#allocation2 + $0x1c] sm:$0xf] }
 0x296   : > { %v1882_v54 = vrot.slane %v1880_v40, 4  ;;  %v1888_v22 = vrot.slane %v1886_v55, 5  ;;  %v1980_v45 = vrot.slane %v9047_v20, 5  ;;  %v1983_v57 = vrot.slane %v9057_v48, 5  ;;  %v9385_v40 = vld [vmem:[#allocation2 + $0x20] sm:$0x1] }
 0x297   : > { %7110 = vmatmul.mubr.bf16.vlgmr.msra.gmra.mrb[32].mxu0 %v6268_v52  ;;  %v1873_v58 = vor.u32 %v1872_v7, %v1869_v8  ;;  %v6223_v28 = vrot.slane %v1894_v9, 9  ;;  %v1987_v31 = vrot.slane %v9084_v27, 5  ;;  %6850 = vmatpush3.bf16.msra.mxu1 %v7645_v32  ;;  %v1990_v20 = vrot.slane %v9087_v44, 5  ;;  %v1895_v32 = vld [vmem:[#allocation2 + $0x3c] sm:$0xe]  ;;  %v7654_v9 = vld [vmem:[#allocation9 + $0x210] sm:$0xff]  }
 0x298   : > { %7113 = vmatprep.mubr.bf16.mxu0 %v6269_v41  ;;  %v1883_v39 = vor.u32 %v1882_v54, %v1878_v37  ;;  %3945 = vmatmul.mubr.bf16.gmra.mrb[76].mxu1 %v6249_v12  ;;  %v1981_v61 = vsel %vm8493_vm11, %v6222_v24, %v1980_v45  ;;  %v1982_v15 = vrot.slane %v1980_v45, 4  ;;  %v6250_v48 = vcombine.low %v9340_v3, %v9350_v50  ;;  %v1896_v55 = vld [vmem:[#allocation2 + $0x48] sm:$0xe] }
 0x299   : > { %6851 = vmatprep.subr.bf16.mxu1 %v7647_v53  ;;  %v1874_v43 = vrot.slane %v1873_v58, 4  ;;  %v1988_v27 = vsel %vm8493_vm11, %v6223_v28, %v1987_v31  ;;  %v1989_v18 = vrot.slane %v1987_v31, 4  ;;  %7142 = vmatpush3.bf16.msra.mxu0 %v9143_v6  ;;  %v4172_v46 = vshrl.u32 %v9371_v33, 16  ;;  %v9403_v31 = vld [vmem:[#allocation2 + $0x24] sm:$0xf] }
 0x29a   : > { %v1884_v30 = vrot.slane %v1883_v39, 4  ;;  %v1984_v12 = vsel %vm8493_vm11, %v1982_v15, %v1983_v57  ;;  %v4175_v44 = vshll.u32 %v9371_v33, 16  ;;  %v4181_v3 = vshll.u32 %v9376_v38, 16  ;;  %7143 = vmatprep.subr.bf16.mxu0 %v7652_v29 }
 0x29b   : > { %v1879_v52 = vsel %vm8569_vm14, %v1874_v43, %v1878_v37  ;;  %v6270_v8 = vcombine.low %v1981_v61, %v1984_v12  ;;  %v1991_v6 = vsel %vm8493_vm11, %v1989_v18, %v1990_v20  ;;  %6852 = vmatpush3.bf16.msra.mxu1 %v7648_v36  ;;  %v4174_v7 = vrot.slane %v4172_v46, 4  ;;  %v7656_v36 = vld [vmem:[#allocation9 + $0x218] sm:$0xff]  }
 0x29c   : > { %v1889_v2 = vsel %vm8569_vm14, %v1884_v30, %v1888_v22  ;;  %v6271_v41 = vcombine.low %v1988_v27, %v1991_v6  ;;  %v4177_v54 = vrot.slane %v4175_v44, 5  ;;  %v4183_v24 = vrot.slane %v4181_v3, 5  ;;  %v9407_v30 = vld [vmem:[#allocation2 + $0x28] sm:$0xf] }
 0x29d   : > { %v6266_v53 = vcombine.low %v1879_v52, %v1889_v2  ;;  %v4185_v45 = vshrl.u32 %v9376_v38, 16  ;;  %v4191_v57 = vshll.u32 %v9385_v40, 16  ;;  %v6224_v37 = vrot.slane %v1895_v32, 9  ;;  %7144 = vmatpush3.bf16.msra.mxu0 %v7652_v29  ;;  %v1897_v32 = vld [vmem:[#allocation2 + $0x54] sm:$0xe]  ;;  %v7657_v52 = vld [vmem:[#allocation9 + $0x220] sm:$0xff]  }
 0x29e   : > { %v4178_v22 = vor.u32 %v4177_v54, %v4174_v7  ;;  %v1994_v58 = vrot.slane %v9114_v25, 5  ;;  %v1997_v39 = vrot.slane %v9122_v47, 5  ;;  %v6225_v28 = vrot.slane %v1896_v55, 9  ;;  %7145 = vmatprep.subr.bf16.mxu0 %v7654_v9  ;;  %v1898_v54 = vld [vmem:[#allocation2 + $0x60] sm:$0xe] }
 0x29f   : > { %3952 = vmatprep.mubr.bf16.mxu1 %v6266_v53  ;;  %7114 = vmatmul.mubr.bf16.gmra.mrb[36].mxu0 %v6270_v8  ;;  %v4187_v61 = vrot.slane %v4185_v45, 4  ;;  %v4193_v15 = vrot.slane %v4191_v57, 5  ;;  %v2001_v20 = vrot.slane %v9149_v35, 5  ;;  %v2004_v43 = vrot.slane %v9156_v23, 5  ;;  %v9415_v35 = vld [vmem:[#allocation2 + $0x2c] sm:$0x1] }
 0x2a0   : > { %7117 = vmatprep.mubr.bf16.mxu0 %v6271_v41  ;;  %3953 = vmatmul.mubr.bf16.gmra.mrb[80].mxu1 %v6250_v48  ;;  %v4179_v29 = vrot.slane %v4178_v22, 4  ;;  %v1995_v25 = vsel %vm8493_vm11, %v6224_v37, %v1994_v58  ;;  %v1996_v47 = vrot.slane %v1994_v58, 4  ;;  %v6411_v27 = vcombine.low %v9371_v33, %v9376_v38 }
 0x2a1   : > { %v4188_v18 = vor.u32 %v4187_v61, %v4183_v24  ;;  %v2002_v12 = vsel %vm8493_vm11, %v6225_v28, %v2001_v20  ;;  %v2003_v46 = vrot.slane %v2001_v20, 4  ;;  %v4196_v23 = vshrl.u32 %v9403_v31, 16  ;;  %7146 = vmatpush3.bf16.msra.mxu0 %v7654_v9  ;;  %v7659_v61 = vld [vmem:[#allocation9 + $0x228] sm:$0xff]  }
 0x2a2   : > { %v4184_v48 = vsel %vm8569_vm14, %v4179_v29, %v4183_v24  ;;  %v1998_v44 = vsel %vm8493_vm11, %v1996_v47, %v1997_v39  ;;  %v4199_v3 = vshll.u32 %v9403_v31, 16  ;;  %v4205_v33 = vshll.u32 %v9407_v30, 16  ;;  %7147 = vmatprep.subr.bf16.mxu0 %v7656_v36 }
 0x2a3   : > { %v4189_v2 = vrot.slane %v4188_v18, 4  ;;  %v6272_v8 = vcombine.low %v1995_v25, %v1998_v44  ;;  %v2005_v6 = vsel %vm8493_vm11, %v2003_v46, %v2004_v43  ;;  %v4198_v55 = vrot.slane %v4196_v23, 4  ;;  %v9434_v25 = vld [vmem:[#allocation2 + $0x30] sm:$0xf]  ;;  %v9438_v46 = vld [vmem:[#allocation2 + $0x34] sm:$0xf] }
 0x2a4   : > { %v6273_v9 = vcombine.low %v2002_v12, %v2005_v6  ;;  %v4201_v53 = vrot.slane %v4199_v3, 5  ;;  %v4207_v41 = vrot.slane %v4205_v33, 5  ;;  %v4209_v7 = vshrl.u32 %v9407_v30, 16  ;;  %v9449_v33 = vld [vmem:[#allocation2 + $0x38] sm:$0x1] }
 0x2a5   : > { %v4194_v24 = vsel %vm8569_vm14, %v4189_v2, %v4193_v15  ;;  %v4215_v45 = vshll.u32 %v9415_v35, 16  ;;  %v4631_v57 = vrot.slane %v9415_v35, 5  ;;  %v6226_v37 = vrot.slane %v1897_v32, 9  ;;  %7148 = vmatpush3.bf16.msra.mxu0 %v7656_v36  ;;  %v7660_v32 = vld [vmem:[#allocation9 + $0x230] sm:$0xff]  }
 0x2a6   : > { %v6427_v22 = vcombine.low %v4184_v48, %v4194_v24  ;;  %v4202_v58 = vor.u32 %v4201_v53, %v4198_v55  ;;  %v4211_v39 = vrot.slane %v4209_v7, 4  ;;  %v2008_v28 = vrot.slane %v9183_v26, 5  ;;  %7149 = vmatprep.subr.bf16.mxu0 %v7657_v52  ;;  %v1900_v7 = vld [vmem:[#allocation2 + $0x78] sm:$0xe] }
 0x2a7   : > { %7118 = vmatmul.mubr.bf16.gmra.mrb[40].mxu0 %v6272_v8  ;;  %v4217_v20 = vrot.slane %v4215_v45, 5  ;;  %v2011_v43 = vrot.slane %v9191_v16, 5  ;;  %v6227_v29 = vrot.slane %v1898_v54, 9  ;;  %v2015_v15 = vrot.slane %v9213_v51, 5  ;;  %v1899_v8 = vld [vmem:[#allocation2 + $0x6c] sm:$0xe] }
 0x2a8   : > { %7121 = vmatprep.mubr.bf16.mxu0 %v6273_v9  ;;  %5164 = vmatprep.mubr.bf16.mxu1 %v6427_v22  ;;  %v4203_v47 = vrot.slane %v4202_v58, 4  ;;  %v4212_v36 = vor.u32 %v4211_v39, %v4207_v41  ;;  %v2009_v18 = vsel %vm8493_vm11, %v6226_v37, %v2008_v28  ;;  %v2010_v12 = vrot.slane %v2008_v28, 4 }
 0x2a9   : > { %5165 = vmatmul.mubr.bf16.vlgmr.msra.gmra.mrb[84].mxu1 %v6411_v27  ;;  %v2016_v26 = vsel %vm8493_vm11, %v6227_v29, %v2015_v15  ;;  %v2017_v23 = vrot.slane %v2015_v15, 4  ;;  %v2018_v16 = vrot.slane %v9220_v59, 5  ;;  %v6412_v51 = vcombine.low %v9403_v31, %v9407_v30  ;;  %7150 = vmatpush3.bf16.msra.mxu0 %v7657_v52  ;;  %v7662_v29 = vld [vmem:[#allocation9 + $0x238] sm:$0xff]  }
 0x2aa   : > { %v4208_v48 = vsel %vm8569_vm14, %v4203_v47, %v4207_v41  ;;  %v4213_v44 = vrot.slane %v4212_v36, 4  ;;  %v2012_v3 = vsel %vm8493_vm11, %v2010_v12, %v2011_v43  ;;  %v4220_v27 = vshrl.u32 %v9434_v25, 16  ;;  %7151 = vmatprep.subr.bf16.mxu0 %v7659_v61  ;;  %v9471_v12 = vld [vmem:[#allocation2 + $0x3c] sm:$0xf] }
 0x2ab   : > { %v6274_v2 = vcombine.low %v2009_v18, %v2012_v3  ;;  %v2019_v59 = vsel %vm8493_vm11, %v2017_v23, %v2018_v16  ;;  %v4223_v31 = vshll.u32 %v9434_v25, 16  ;;  %v4229_v52 = vshll.u32 %v9438_v46, 16  ;;  %v9476_v16 = vld [vmem:[#allocation2 + $0x40] sm:$0xf] }
 0x2ac   : > { %v9456_v6 = vpop.f32.mrb[0].mxu1  ;;  %v4218_v55 = vsel %vm8569_vm14, %v4213_v44, %v4217_v20  ;;  %v6275_v9 = vcombine.low %v2016_v26, %v2019_v59  ;;  %v4222_v53 = vrot.slane %v4220_v27, 4  ;;  %v4233_v41 = vshrl.u32 %v9438_v46, 16  ;;  %v9484_v59 = vld [vmem:[#allocation2 + $0x44] sm:$0x1] }
 0x2ad   : > { %v9461_v54 = vpop.f32.mrb[1].mxu1  ;;  %v6428_v24 = vcombine.low %v4208_v48, %v4218_v55  ;;  %v4225_v45 = vrot.slane %v4223_v31, 5  ;;  %v4231_v37 = vrot.slane %v4229_v52, 5  ;;  %v4239_v22 = vshll.u32 %v9449_v33, 16  ;;  %7152 = vmatpush3.bf16.msra.mxu0 %v7659_v61 }
 0x2ae   : > { %v9464_v58 = vpop.f32.mrb[2].mxu1  ;;  %v4235_v39 = vrot.slane %v4233_v41, 4  ;;  %v6228_v28 = vrot.slane %v1899_v8, 9  ;;  %v2022_v20 = vrot.slane %v9247_v49, 5  ;;  %v2025_v43 = vrot.slane %v9255_v1, 5  ;;  %7153 = vmatprep.subr.bf16.mxu0 %v7660_v32 }
 0x2af   : > { %7122 = vmatmul.mubr.bf16.gmra.mrb[44].mxu0 %v6274_v2  ;;  %v9468_v15 = vpop.f32.mrb[3].mxu1  ;;  %5172 = vmatprep.mubr.bf16.mxu1 %v6428_v24  ;;  %v4226_v47 = vor.u32 %v4225_v45, %v4222_v53  ;;  %v4241_v36 = vrot.slane %v4239_v22, 5  ;;  %v6229_v18 = vrot.slane %v1900_v7, 9  ;;  %v2029_v61 = vrot.slane %v9280_v62, 5  ;;  %v1902_v24 = vld [vmem:[#allocation2 + $0x90] sm:$0xe] }
 0x2b0   : > { %7125 = vmatprep.mubr.bf16.mxu0 %v6275_v9  ;;  %v4236_v26 = vor.u32 %v4235_v39, %v4231_v37  ;;  %v2023_v23 = vsel %vm8493_vm11, %v6228_v28, %v2022_v20  ;;  %v2024_v49 = vrot.slane %v2022_v20, 4  ;;  %v2032_v1 = vrot.slane %v9288_v0, 5 }
 0x2b1   : > { %5173 = vmatmul.mubr.bf16.gmra.mrb[88].mxu1 %v6412_v51  ;;  %v4227_v48 = vrot.slane %v4226_v47, 4  ;;  %v2030_v44 = vsel %vm8493_vm11, %v6229_v18, %v2029_v61  ;;  %v2031_v3 = vrot.slane %v2029_v61, 4  ;;  %v6413_v62 = vcombine.low %v9434_v25, %v9438_v46  ;;  %7154 = vmatpush3.bf16.msra.mxu0 %v7660_v32  ;;  %v1901_v32 = vld [vmem:[#allocation2 + $0x84] sm:$0xe] }
 0x2b2   : > { %v4237_v27 = vrot.slane %v4236_v26, 4  ;;  %v2026_v2 = vsel %vm8493_vm11, %v2024_v49, %v2025_v43  ;;  %v4244_v0 = vshrl.u32 %v9471_v12, 16  ;;  %v4247_v31 = vshll.u32 %v9471_v12, 16  ;;  %7155 = vmatprep.subr.bf16.mxu0 %v7662_v29 }
 0x2b3   : > { %v4232_v51 = vsel %vm8569_vm14, %v4227_v48, %v4231_v37  ;;  %v6276_v52 = vcombine.low %v2023_v23, %v2026_v2  ;;  %v2033_v8 = vsel %vm8493_vm11, %v2031_v3, %v2032_v1  ;;  %v4253_v25 = vshll.u32 %v9476_v16, 16  ;;  %v9508_v48 = vld [vmem:[#allocation2 + $0x48] sm:$0xf] }
 0x2b4   : > { %v9493_v55 = vpop.f32.mrb[4].mxu1  ;;  %v4242_v9 = vsel %vm8569_vm14, %v4237_v27, %v4241_v36  ;;  %v6277_v53 = vcombine.low %v2030_v44, %v2033_v8  ;;  %v4246_v41 = vrot.slane %v4244_v0, 4  ;;  %v4249_v7 = vrot.slane %v4247_v31, 5  ;;  %v9513_v27 = vld [vmem:[#allocation2 + $0x4c] sm:$0xf] }
 0x2b5   : > { %v9497_v45 = vpop.f32.mrb[5].mxu1  ;;  %v6429_v22 = vcombine.low %v4232_v51, %v4242_v9  ;;  %v4255_v37 = vrot.slane %v4253_v25, 5  ;;  %v4257_v39 = vshrl.u32 %v9476_v16, 16  ;;  %v4263_v28 = vshll.u32 %v9484_v59, 16  ;;  %7156 = vmatpush3.bf16.msra.mxu0 %v7662_v29  ;;  %v1903_v8 = vld [vmem:[#allocation2 + $0x9c] sm:$0xe] }
 0x2b6   : > { %v9501_v20 = vpop.f32.mrb[6].mxu1  ;;  %v4250_v43 = vor.u32 %v4249_v7, %v4246_v41  ;;  %v6230_v47 = vrot.slane %v1901_v32, 9  ;;  %v2036_v36 = vrot.slane %v9231_v21, 5  ;;  %v2039_v18 = vrot.slane %v9238_v34, 5 }
 0x2b7   : > { %7126 = vmatmul.mubr.bf16.gmra.mrb[48].mxu0 %v6276_v52  ;;  %v9505_v61 = vpop.f32.mrb[7].mxu1  ;;  %5180 = vmatprep.mubr.bf16.mxu1 %v6429_v22  ;;  %v4259_v26 = vrot.slane %v4257_v39, 4  ;;  %v4265_v23 = vrot.slane %v4263_v28, 5  ;;  %v6231_v49 = vrot.slane %v1902_v24, 9  ;;  %v2043_v1 = vrot.slane %v9264_v10, 5 }
 0x2b8   : > { %7129 = vmatprep.mubr.bf16.mxu0 %v6277_v53  ;;  %v4251_v29 = vrot.slane %v4250_v43, 4  ;;  %v2037_v44 = vsel %vm8493_vm11, %v6230_v47, %v2036_v36  ;;  %v2038_v3 = vrot.slane %v2036_v36, 4  ;;  %v2046_v21 = vrot.slane %v9273_v63, 5  ;;  %v9523_v52 = vld [vmem:[#allocation2 + $0x50] sm:$0x1] }
 0x2b9   : > { %5181 = vmatmul.mubr.bf16.gmra.mrb[92].mxu1 %v6413_v62  ;;  %v4260_v34 = vor.u32 %v4259_v26, %v4255_v37  ;;  %v2044_v2 = vsel %vm8493_vm11, %v6231_v49, %v2043_v1  ;;  %v2045_v0 = vrot.slane %v2043_v1, 4  ;;  %v6414_v10 = vcombine.low %v9471_v12, %v9476_v16  ;;  %v1904_v22 = vld [vmem:[#allocation2 + $0xa8] sm:$0xe] }
 0x2ba   : > { %v4256_v31 = vsel %vm8569_vm14, %v4251_v29, %v4255_v37  ;;  %v2040_v51 = vsel %vm8493_vm11, %v2038_v3, %v2039_v18  ;;  %v4268_v63 = vshrl.u32 %v9508_v48, 16  ;;  %v4271_v62 = vshll.u32 %v9508_v48, 16  ;;  %v9537_v3 = vld [vmem:[#allocation2 + $0x54] sm:$0xf] }
 0x2bb   : > { %v4261_v25 = vrot.slane %v4260_v34, 4  ;;  %v6278_v32 = vcombine.low %v2037_v44, %v2040_v51  ;;  %v2047_v9 = vsel %vm8493_vm11, %v2045_v0, %v2046_v21  ;;  %v4277_v12 = vshll.u32 %v9513_v27, 16  ;;  %v9541_v0 = vld [vmem:[#allocation2 + $0x58] sm:$0xf] }
 0x2bc   : > { %v6279_v53 = vcombine.low %v2044_v2, %v2047_v9  ;;  %v4270_v41 = vrot.slane %v4268_v63, 4  ;;  %v4273_v7 = vrot.slane %v4271_v62, 5  ;;  %v4281_v24 = vshrl.u32 %v9513_v27, 16 }
 0x2bd   : > { %v4266_v37 = vsel %vm8569_vm14, %v4261_v25, %v4265_v23  ;;  %v4279_v39 = vrot.slane %v4277_v12, 5  ;;  %v4287_v28 = vshll.u32 %v9523_v52, 16  ;;  %v6232_v43 = vrot.slane %v1903_v8, 9  ;;  %v9554_v25 = vld [vmem:[#allocation2 + $0x5c] sm:$0x1] }
 0x2be   : > { %v6430_v47 = vcombine.low %v4256_v31, %v4266_v37  ;;  %v4274_v36 = vor.u32 %v4273_v7, %v4270_v41  ;;  %v4283_v18 = vrot.slane %v4281_v24, 4  ;;  %v2050_v26 = vrot.slane %v9299_v4, 5 }
 0x2bf   : > { %7130 = vmatmul.mubr.bf16.gmra.mrb[52].mxu0 %v6278_v32  ;;  %v4289_v49 = vrot.slane %v4287_v28, 5  ;;  %v2053_v1 = vrot.slane %v9306_v17, 5  ;;  %v6233_v29 = vrot.slane %v1904_v22, 9  ;;  %v2057_v44 = vrot.slane %v9318_v60, 5 }
 0x2c0   : > { %7133 = vmatprep.mubr.bf16.mxu0 %v6279_v53  ;;  %5188 = vmatprep.mubr.bf16.mxu1 %v6430_v47  ;;  %v4275_v23 = vrot.slane %v4274_v36, 4  ;;  %v4284_v21 = vor.u32 %v4283_v18, %v4279_v39  ;;  %v2051_v34 = vsel %vm8493_vm11, %v6232_v43, %v2050_v26  ;;  %v2052_v2 = vrot.slane %v2050_v26, 4  ;;  %v1905_v53 = vld [vmem:[#allocation2 + $0xb4] sm:$0xe] }
 0x2c1   : > { %5189 = vmatmul.mubr.bf16.gmra.mrb[96].mxu1 %v6414_v10  ;;  %v2058_v4 = vsel %vm8493_vm11, %v6233_v29, %v2057_v44  ;;  %v2059_v31 = vrot.slane %v2057_v44, 4  ;;  %v2060_v17 = vrot.slane %v9324_v42, 5  ;;  %v6415_v60 = vcombine.low %v9508_v48, %v9513_v27 }
 0x2c2   : > { %v9548_v51 = vpop.f32.mrb[8].mxu1  ;;  %v4280_v63 = vsel %vm8569_vm14, %v4275_v23, %v4279_v39  ;;  %v4285_v62 = vrot.slane %v4284_v21, 4  ;;  %v2054_v8 = vsel %vm8493_vm11, %v2052_v2, %v2053_v1  ;;  %v4292_v10 = vshrl.u32 %v9537_v3, 16  ;;  %v4555_v39 = vld [vmem:[#allocation2 + $0x18] sm:$0xe] }
 0x2c3   : > { %v9557_v32 = vpop.f32.mrb[9].mxu1  ;;  %v6280_v9 = vcombine.low %v2051_v34, %v2054_v8  ;;  %v2061_v42 = vsel %vm8493_vm11, %v2059_v31, %v2060_v17  ;;  %v4295_v48 = vshll.u32 %v9537_v3, 16  ;;  %v4301_v12 = vshll.u32 %v9541_v0, 16  ;;  %v9574_v2 = vld [vmem:[#allocation2 + $0x60] sm:$0xf] }
 0x2c4   : > { %v9563_v41 = vpop.f32.mrb[10].mxu1  ;;  %v4290_v7 = vsel %vm8569_vm14, %v4285_v62, %v4289_v49  ;;  %v6281_v24 = vcombine.low %v2058_v4, %v2061_v42  ;;  %v4294_v22 = vrot.slane %v4292_v10, 4  ;;  %v4305_v37 = vshrl.u32 %v9541_v0, 16  ;;  %v9579_v62 = vld [vmem:[#allocation2 + $0x64] sm:$0xf] }
 0x2c5   : > { %v9568_v28 = vpop.f32.mrb[11].mxu1  ;;  %v6431_v43 = vcombine.low %v4280_v63, %v4290_v7  ;;  %v4297_v47 = vrot.slane %v4295_v48, 5  ;;  %v4303_v36 = vrot.slane %v4301_v12, 5  ;;  %v4311_v18 = vshll.u32 %v9554_v25, 16  ;;  %v9587_v42 = vld [vmem:[#allocation2 + $0x68] sm:$0x1] }
 0x2c6   : > { %v4307_v26 = vrot.slane %v4305_v37, 4  ;;  %v6234_v1 = vrot.slane %v1905_v53, 9  ;;  %v2064_v29 = vrot.slane %v9350_v50, 5  ;;  %v2067_v44 = vrot.slane %v9356_v11, 5 }
 0x2c7   : > { %7134 = vmatmul.mubr.bf16.gmra.mrb[56].mxu0 %v6280_v9  ;;  %5196 = vmatprep.mubr.bf16.mxu1 %v6431_v43  ;;  %v4298_v49 = vor.u32 %v4297_v47, %v4294_v22  ;;  %v4313_v23 = vrot.slane %v4311_v18, 5  ;;  %v6395_v21 = vrot.slane %v4555_v39, 9  ;;  %v4621_v34 = vrot.slane %v9376_v38, 5  ;;  %v4557_v43 = vld [vmem:[#allocation2 + $0x30] sm:$0xe] }
 0x2c8   : > { %7137 = vmatprep.mubr.bf16.mxu0 %v6281_v24  ;;  %v4308_v4 = vor.u32 %v4307_v26, %v4303_v36  ;;  %v2065_v31 = vsel %vm8493_vm11, %v6234_v1, %v2064_v29  ;;  %v2066_v17 = vrot.slane %v2064_v29, 4  ;;  %v4624_v63 = vrot.slane %v9385_v40, 5 }
 0x2c9   : > { %5197 = vmatmul.mubr.bf16.gmra.mrb[100].mxu1 %v6415_v60  ;;  %v4299_v50 = vrot.slane %v4298_v49, 4  ;;  %v4622_v11 = vsel %vm8493_vm11, %v6395_v21, %v4621_v34  ;;  %v4623_v8 = vrot.slane %v4621_v34, 4  ;;  %v6416_v38 = vcombine.low %v9537_v3, %v9541_v0  ;;  %v4556_v3 = vld [vmem:[#allocation2 + $0x24] sm:$0xe] }
 0x2ca   : > { %v4309_v10 = vrot.slane %v4308_v4, 4  ;;  %v2068_v9 = vsel %vm8493_vm11, %v2066_v17, %v2067_v44  ;;  %v4316_v48 = vshrl.u32 %v9574_v2, 16  ;;  %v4319_v40 = vshll.u32 %v9574_v2, 16 }
 0x2cb   : > { %v4304_v60 = vsel %vm8569_vm14, %v4299_v50, %v4303_v36  ;;  %v6282_v12 = vcombine.low %v2065_v31, %v2068_v9  ;;  %v4625_v53 = vsel %vm8493_vm11, %v4623_v8, %v4624_v63  ;;  %v4325_v7 = vshll.u32 %v9579_v62, 16  ;;  %v9606_v31 = vld [vmem:[#allocation2 + $0x6c] sm:$0xf]  ;;  %v9627_v9 = vld [vmem:[#allocation2 + $0x74] sm:$0x1] }
 0x2cc   : > { %v4314_v24 = vsel %vm8569_vm14, %v4309_v10, %v4313_v23  ;;  %v6443_v22 = vcombine.low %v4622_v11, %v4625_v53  ;;  %v4318_v37 = vrot.slane %v4316_v48, 4  ;;  %v4321_v39 = vrot.slane %v4319_v40, 5 }
 0x2cd   : > { %v6432_v47 = vcombine.low %v4304_v60, %v4314_v24  ;;  %v4327_v18 = vrot.slane %v4325_v7, 5  ;;  %v4329_v26 = vshrl.u32 %v9579_v62, 16  ;;  %v4335_v36 = vshll.u32 %v9587_v42, 16 }
 0x2ce   : > { %v4322_v1 = vor.u32 %v4321_v39, %v4318_v37  ;;  %v9602_v29 = vadd.f32 %v9461_v54, %v9456_v6  ;;  %v6396_v44 = vrot.slane %v4556_v3, 9  ;;  %v4628_v49 = vrot.slane %v9407_v30, 5  ;;  %v4559_v39 = vld [vmem:[#allocation2 + $0x48] sm:$0xe] }
 0x2cf   : > { %7138 = vmatmul.mubr.bf16.gmra.mrb[60].mxu0 %v6282_v12  ;;  %5204 = vmatprep.mubr.bf16.mxu1 %v6432_v47  ;;  %v4331_v23 = vrot.slane %v4329_v26, 4  ;;  %v4337_v21 = vrot.slane %v4335_v36, 5  ;;  %v6397_v34 = vrot.slane %v4557_v43, 9  ;;  %v4635_v4 = vrot.slane %v9438_v46, 5  ;;  %v9617_v46 = vld [vmem:[#allocation2 + $0x70] sm:$0xf] }
 0x2d0   : > { %7157 = vmatprep.mubr.bf16.mxu0 %v6443_v22  ;;  %v4323_v17 = vrot.slane %v4322_v1, 4  ;;  %v4629_v63 = vsel %vm8493_vm11, %v6396_v44, %v4628_v49  ;;  %v4630_v50 = vrot.slane %v4628_v49, 4  ;;  %v4638_v6 = vrot.slane %v9449_v33, 5  ;;  %v4558_v12 = vld [vmem:[#allocation2 + $0x3c] sm:$0xe] }
 0x2d1   : > { %5205 = vmatmul.mubr.bf16.gmra.mrb[104].mxu1 %v6416_v38  ;;  %v4332_v54 = vor.u32 %v4331_v23, %v4327_v18  ;;  %v4636_v30 = vsel %vm8493_vm11, %v6397_v34, %v4635_v4  ;;  %v4637_v11 = vrot.slane %v4635_v4, 4  ;;  %v9615_v8 = vadd.f32 %v9468_v15, %v9464_v58 }
 0x2d2   : > { %v4328_v10 = vsel %vm8569_vm14, %v4323_v17, %v4327_v18  ;;  %v4632_v33 = vsel %vm8493_vm11, %v4630_v50, %v4631_v57  ;;  %v6417_v38 = vcombine.low %v9574_v2, %v9579_v62  ;;  %v4340_v48 = vshrl.u32 %v9606_v31, 16 }
 0x2d3   : > { %v4333_v40 = vrot.slane %v4332_v54, 4  ;;  %v6444_v58 = vcombine.low %v4629_v63, %v4632_v33  ;;  %v4639_v15 = vsel %vm8493_vm11, %v4637_v11, %v4638_v6  ;;  %v4343_v60 = vshll.u32 %v9606_v31, 16  ;;  %v9654_v63 = vld [vmem:[#allocation2 + $0x78] sm:$0xf] }
 0x2d4   : > { %v6445_v53 = vcombine.low %v4636_v30, %v4639_v15  ;;  %v4342_v35 = vrot.slane %v4340_v48, 4  ;;  %v4349_v7 = vshll.u32 %v9617_v46, 16  ;;  %v4353_v57 = vshrl.u32 %v9617_v46, 16  ;;  %v9635_v3 = vpop.f32.mrb[12].mxu1  ;;  %v4560_v15 = vld [vmem:[#allocation2 + $0x54] sm:$0xe] }
 0x2d5   : > { %v4338_v2 = vsel %vm8569_vm14, %v4333_v40, %v4337_v21  ;;  %v4345_v24 = vrot.slane %v4343_v60, 5  ;;  %v4359_v22 = vshll.u32 %v9627_v9, 16  ;;  %v9642_v37 = vadd.f32 %v9497_v45, %v9493_v55  ;;  %v9644_v43 = vpop.f32.mrb[13].mxu1 }
 0x2d6   : > { %v6433_v47 = vcombine.low %v4328_v10, %v4338_v2  ;;  %v4351_v18 = vrot.slane %v4349_v7, 5  ;;  %v4355_v26 = vrot.slane %v4353_v57, 4  ;;  %v6398_v36 = vrot.slane %v4558_v12, 9  ;;  %v9646_v1 = vpop.f32.mrb[14].mxu1  ;;  %v4561_v7 = vld [vmem:[#allocation2 + $0x60] sm:$0xe] }
 0x2d7   : > { %7158 = vmatmul.mubr.bf16.vlgmr.msra.gmra.mrb[32].mxu0 %v6444_v58  ;;  %v4346_v44 = vor.u32 %v4345_v24, %v4342_v35  ;;  %v4361_v49 = vrot.slane %v4359_v22, 5  ;;  %v4642_v23 = vrot.slane %v9476_v16, 5  ;;  %v4645_v21 = vrot.slane %v9484_v59, 5  ;;  %v9650_v34 = vpop.f32.mrb[15].mxu1  ;;  %v9662_v59 = vld [vmem:[#allocation2 + $0x7c] sm:$0xf] }
 0x2d8   : > { %7161 = vmatprep.mubr.bf16.mxu0 %v6445_v53  ;;  %5212 = vmatprep.mubr.bf16.mxu1 %v6433_v47  ;;  %v4356_v55 = vor.u32 %v4355_v26, %v4351_v18  ;;  %v6399_v45 = vrot.slane %v4559_v39, 9  ;;  %v4649_v4 = vrot.slane %v9513_v27, 5  ;;  %v4652_v17 = vrot.slane %v9523_v52, 5 }
 0x2d9   : > { %5213 = vmatmul.mubr.bf16.gmra.mrb[108].mxu1 %v6417_v38  ;;  %v4347_v50 = vrot.slane %v4346_v44, 4  ;;  %v4643_v6 = vsel %vm8493_vm11, %v6398_v36, %v4642_v23  ;;  %v4644_v54 = vrot.slane %v4642_v23, 4  ;;  %v9660_v16 = vadd.f32 %v9505_v61, %v9501_v20  ;;  %v9672_v38 = vld [vmem:[#allocation2 + $0x80] sm:$0x1] }
 0x2da   : > { %v4357_v30 = vrot.slane %v4356_v55, 4  ;;  %v4650_v27 = vsel %vm8493_vm11, %v6399_v45, %v4649_v4  ;;  %v4651_v11 = vrot.slane %v4649_v4, 4  ;;  %v6418_v52 = vcombine.low %v9606_v31, %v9617_v46 }
 0x2db   : > { %v4352_v10 = vsel %vm8569_vm14, %v4347_v50, %v4351_v18  ;;  %v4646_v33 = vsel %vm8493_vm11, %v4644_v54, %v4645_v21  ;;  %v4364_v20 = vshrl.u32 %v9654_v63, 16  ;;  %v4367_v61 = vshll.u32 %v9654_v63, 16  ;;  %v9690_v21 = vld [vmem:[#allocation2 + $0x84] sm:$0xf]  ;;  %v9709_v54 = vld [vmem:[#allocation2 + $0x8c] sm:$0x1] }
 0x2dc   : > { %v4362_v48 = vsel %vm8569_vm14, %v4357_v30, %v4361_v49  ;;  %v6446_v40 = vcombine.low %v4643_v6, %v4646_v33  ;;  %v4653_v58 = vsel %vm8493_vm11, %v4651_v11, %v4652_v17  ;;  %v4373_v31 = vshll.u32 %v9662_v59, 16 }
 0x2dd   : > { %v6434_v60 = vcombine.low %v4352_v10, %v4362_v48  ;;  %v6447_v12 = vcombine.low %v4650_v27, %v4653_v58  ;;  %v4366_v53 = vrot.slane %v4364_v20, 4  ;;  %v4369_v35 = vrot.slane %v4367_v61, 5  ;;  %v4562_v10 = vld [vmem:[#allocation2 + $0x6c] sm:$0xe] }
 0x2de   : > { %v4375_v57 = vrot.slane %v4373_v31, 5  ;;  %v4377_v2 = vshrl.u32 %v9662_v59, 16  ;;  %v4383_v24 = vshll.u32 %v9672_v38, 16  ;;  %v9685_v22 = vadd.f32 %v9557_v32, %v9548_v51 }
 0x2df   : > { %7162 = vmatmul.mubr.bf16.gmra.mrb[36].mxu0 %v6446_v40  ;;  %5220 = vmatprep.mubr.bf16.mxu1 %v6434_v60  ;;  %v4370_v39 = vor.u32 %v4369_v35, %v4366_v53  ;;  %v6400_v47 = vrot.slane %v4560_v15, 9  ;;  %v4656_v18 = vrot.slane %v9541_v0, 5  ;;  %v4659_v26 = vrot.slane %v9554_v25, 5 }
 0x2e0   : > { %7165 = vmatprep.mubr.bf16.mxu0 %v6447_v12  ;;  %v4379_v36 = vrot.slane %v4377_v2, 4  ;;  %v4385_v44 = vrot.slane %v4383_v24, 5  ;;  %v6401_v49 = vrot.slane %v4561_v7, 9  ;;  %v4663_v23 = vrot.slane %v9579_v62, 5  ;;  %v9701_v62 = vld [vmem:[#allocation2 + $0x88] sm:$0xf] }
 0x2e1   : > { %5221 = vmatmul.mubr.bf16.gmra.mrb[112].mxu1 %v6418_v52  ;;  %v4371_v55 = vrot.slane %v4370_v39, 4  ;;  %v4657_v51 = vsel %vm8493_vm11, %v6400_v47, %v4656_v18  ;;  %v4658_v32 = vrot.slane %v4656_v18, 4  ;;  %v4666_v45 = vrot.slane %v9587_v42, 5  ;;  %v4563_v12 = vld [vmem:[#allocation2 + $0x78] sm:$0xe] }
 0x2e2   : > { %v4380_v4 = vor.u32 %v4379_v36, %v4375_v57  ;;  %v4664_v0 = vsel %vm8493_vm11, %v6401_v49, %v4663_v23  ;;  %v4665_v25 = vrot.slane %v4663_v23, 4  ;;  %v9699_v17 = vadd.f32 %v9568_v28, %v9563_v41 }
 0x2e3   : > { %v4376_v50 = vsel %vm8569_vm14, %v4371_v55, %v4375_v57  ;;  %v4660_v6 = vsel %vm8493_vm11, %v4658_v32, %v4659_v26  ;;  %v6419_v42 = vcombine.low %v9654_v63, %v9662_v59  ;;  %v4388_v30 = vshrl.u32 %v9690_v21, 16  ;;  %v9712_v27 = vpop.f32.mrb[16].mxu1 }
 0x2e4   : > { %v4381_v11 = vrot.slane %v4380_v4, 4  ;;  %v6448_v41 = vcombine.low %v4657_v51, %v4660_v6  ;;  %v4667_v28 = vsel %vm8493_vm11, %v4665_v25, %v4666_v45  ;;  %v4391_v52 = vshll.u32 %v9690_v21, 16  ;;  %v6606_v33 = vpop.f32.mrb[17].mxu1 }
 0x2e5   : > { %v6449_v20 = vcombine.low %v4664_v0, %v4667_v28  ;;  %v4390_v61 = vrot.slane %v4388_v30, 4  ;;  %v4397_v48 = vshll.u32 %v9701_v62, 16  ;;  %v4401_v63 = vshrl.u32 %v9701_v62, 16  ;;  %v9719_v40 = vpop.f32.mrb[18].mxu1  ;;  %v4165_v0 = vld [vmem:[#allocation2 + $0x98] sm:$0x1] }
 0x2e6   : > { %v4386_v58 = vsel %vm8569_vm14, %v4381_v11, %v4385_v44  ;;  %v4393_v31 = vrot.slane %v4391_v52, 5  ;;  %v4407_v15 = vshll.u32 %v9709_v54, 16  ;;  %v9726_v60 = vadd.f32 %v9644_v43, %v9635_v3  ;;  %v9728_v53 = vpop.f32.mrb[19].mxu1  ;;  %v9734_v44 = vld [vmem:[#allocation2 + $0x90] sm:$0xf] }
 0x2e7   : > { %7166 = vmatmul.mubr.bf16.gmra.mrb[40].mxu0 %v6448_v41  ;;  %v6435_v35 = vcombine.low %v4376_v50, %v4386_v58  ;;  %v4399_v7 = vrot.slane %v4397_v48, 5  ;;  %v4403_v57 = vrot.slane %v4401_v63, 4  ;;  %v6402_v2 = vrot.slane %v4562_v10, 9  ;;  %v4565_v52 = vld [vmem:[#allocation2 + $0x90] sm:$0xe] }
 0x2e8   : > { %7169 = vmatprep.mubr.bf16.mxu0 %v6449_v20  ;;  %v4394_v24 = vor.u32 %v4393_v31, %v4390_v61  ;;  %v4409_v39 = vrot.slane %v4407_v15, 5  ;;  %v4670_v47 = vrot.slane %v9617_v46, 5  ;;  %v4673_v18 = vrot.slane %v9627_v9, 5  ;;  %v9742_v9 = vld [vmem:[#allocation2 + $0x94] sm:$0xf] }
 0x2e9   : > { %5228 = vmatprep.mubr.bf16.mxu1 %v6435_v35  ;;  %v4404_v26 = vor.u32 %v4403_v57, %v4399_v7  ;;  %v6403_v36 = vrot.slane %v4563_v12, 9  ;;  %v4677_v3 = vrot.slane %v9662_v59, 5  ;;  %v4680_v43 = vrot.slane %v9672_v38, 5 }
 0x2ea   : > { %5229 = vmatmul.mubr.bf16.gmra.mrb[116].mxu1 %v6419_v42  ;;  %v4395_v49 = vrot.slane %v4394_v24, 4  ;;  %v4671_v23 = vsel %vm8493_vm11, %v6402_v2, %v4670_v47  ;;  %v4672_v55 = vrot.slane %v4670_v47, 4  ;;  %v9740_v46 = vadd.f32 %v9650_v34, %v9646_v1  ;;  %v4564_v42 = vld [vmem:[#allocation2 + $0x84] sm:$0xe] }
 0x2eb   : > { %v4405_v51 = vrot.slane %v4404_v26, 4  ;;  %v4678_v59 = vsel %vm8493_vm11, %v6403_v36, %v4677_v3  ;;  %v4679_v32 = vrot.slane %v4677_v3, 4  ;;  %v6420_v38 = vcombine.low %v9690_v21, %v9701_v62 }
 0x2ec   : > { %v4400_v45 = vsel %vm8569_vm14, %v4395_v49, %v4399_v7  ;;  %v4674_v4 = vsel %vm8493_vm11, %v4672_v55, %v4673_v18  ;;  %v4412_v1 = vshrl.u32 %v9734_v44, 16  ;;  %v4415_v34 = vshll.u32 %v9734_v44, 16  ;;  %v9765_v7 = vld [vmem:[#allocation2 + $0x9c] sm:$0xf]  ;;  %v9776_v49 = vld [vmem:[#allocation2 + $0xa0] sm:$0xf] }
 0x2ed   : > { %v4410_v25 = vsel %vm8569_vm14, %v4405_v51, %v4409_v39  ;;  %v6450_v50 = vcombine.low %v4671_v23, %v4674_v4  ;;  %v4681_v6 = vsel %vm8493_vm11, %v4679_v32, %v4680_v43  ;;  %v4421_v21 = vshll.u32 %v9742_v9, 16  ;;  %v4566_v4 = vld [vmem:[#allocation2 + $0x9c] sm:$0xe] }
 0x2ee   : > { %v6436_v30 = vcombine.low %v4400_v45, %v4410_v25  ;;  %v6451_v11 = vcombine.low %v4678_v59, %v4681_v6  ;;  %v4414_v41 = vrot.slane %v4412_v1, 4  ;;  %v4417_v28 = vrot.slane %v4415_v34, 5  ;;  %v6611_v10 = vpop.f32.mrb[20].mxu1  ;;  %v4166_v59 = vld [vmem:[#allocation2 + $0xa4] sm:$0x1] }
 0x2ef   : > { %7170 = vmatmul.mubr.bf16.gmra.mrb[44].mxu0 %v6450_v50  ;;  %v4423_v20 = vrot.slane %v4421_v21, 5  ;;  %v4425_v61 = vshrl.u32 %v9742_v9, 16  ;;  %v4431_v48 = vshll.u32 %v4165_v0, 16  ;;  %v9761_v63 = vadd.f32 %v6606_v33, %v9712_v27  ;;  %v6612_v58 = vpop.f32.mrb[21].mxu1  ;;  %v9790_v50 = vld [vmem:[#allocation2 + $0xb0] sm:$0x1] }
 0x2f0   : > { %5236 = vmatprep.mubr.bf16.mxu1 %v6436_v30  ;;  %7173 = vmatprep.mubr.bf16.mxu0 %v6451_v11  ;;  %v4418_v31 = vor.u32 %v4417_v28, %v4414_v41  ;;  %v6404_v15 = vrot.slane %v4564_v42, 9  ;;  %v4684_v12 = vrot.slane %v9701_v62, 5  ;;  %v4687_v35 = vrot.slane %v9709_v54, 5  ;;  %v6614_v57 = vpop.f32.mrb[22].mxu1  ;;  %v4567_v30 = vld [vmem:[#allocation2 + $0xa8] sm:$0xe] }
 0x2f1   : > { %v4427_v2 = vrot.slane %v4425_v61, 4  ;;  %v4433_v24 = vrot.slane %v4431_v48, 5  ;;  %v6405_v39 = vrot.slane %v4565_v52, 9  ;;  %v4691_v47 = vrot.slane %v9742_v9, 5  ;;  %v6615_v18 = vpop.f32.mrb[23].mxu1 }
 0x2f2   : > { %5237 = vmatmul.mubr.bf16.gmra.mrb[120].mxu1 %v6420_v38  ;;  %v4419_v27 = vrot.slane %v4418_v31, 4  ;;  %v4685_v33 = vsel %vm8493_vm11, %v6404_v15, %v4684_v12  ;;  %v4686_v26 = vrot.slane %v4684_v12, 4  ;;  %v4694_v36 = vrot.slane %v4165_v0, 5  ;;  %v9796_v61 = vld [vmem:[#allocation2 + $0xac] sm:$0xf] }
 0x2f3   : > { %v4428_v3 = vor.u32 %v4427_v2, %v4423_v20  ;;  %v4692_v62 = vsel %vm8493_vm11, %v6405_v39, %v4691_v47  ;;  %v4693_v54 = vrot.slane %v4691_v47, 4  ;;  %v9774_v43 = vadd.f32 %v9728_v53, %v9719_v40 }
 0x2f4   : > { %v4424_v23 = vsel %vm8569_vm14, %v4419_v27, %v4423_v20  ;;  %v4688_v55 = vsel %vm8493_vm11, %v4686_v26, %v4687_v35  ;;  %v6421_v51 = vcombine.low %v9734_v44, %v9742_v9  ;;  %v4436_v32 = vshrl.u32 %v9765_v7, 16  ;;  %v9805_v27 = vld [vmem:[#allocation2 + $0xa8] sm:$0xf] }
 0x2f5   : > { %v4429_v38 = vrot.slane %v4428_v3, 4  ;;  %v6452_v45 = vcombine.low %v4685_v33, %v4688_v55  ;;  %v4695_v40 = vsel %vm8493_vm11, %v4693_v54, %v4694_v36  ;;  %v4439_v53 = vshll.u32 %v9765_v7, 16 }
 0x2f6   : > { %v6453_v0 = vcombine.low %v4692_v62, %v4695_v40  ;;  %v4438_v1 = vrot.slane %v4436_v32, 4  ;;  %v4445_v34 = vshll.u32 %v9776_v49, 16  ;;  %v4449_v25 = vshrl.u32 %v9776_v49, 16  ;;  %v6617_v44 = vpop.f32.mrb[24].mxu1  ;;  %v9828_v40 = vld [vmem:[#allocation2 + $0xbc] sm:$0x1] }
 0x2f7   : > { %v4434_v9 = vsel %vm8569_vm14, %v4429_v38, %v4433_v24  ;;  %7174 = vmatmul.mubr.bf16.gmra.mrb[48].mxu0 %v6452_v45  ;;  %v4441_v6 = vrot.slane %v4439_v53, 5  ;;  %v4455_v21 = vshll.u32 %v4166_v59, 16  ;;  %v9794_v42 = vadd.f32 %v6612_v58, %v6611_v10  ;;  %v6618_v11 = vpop.f32.mrb[25].mxu1  ;;  %v7673_v10 = vld [vmem:[#allocation10] sm:$0xff]   ;;  %v4568_v53 = vld [vmem:[#allocation2 + $0xb4] sm:$0xe] }
 0x2f8   : > { %v6437_v41 = vcombine.low %v4424_v23, %v4434_v9  ;;  %7177 = vmatprep.mubr.bf16.mxu0 %v6453_v0  ;;  %v4447_v28 = vrot.slane %v4445_v34, 5  ;;  %v4451_v52 = vrot.slane %v4449_v25, 4  ;;  %v6406_v20 = vrot.slane %v4566_v4, 9  ;;  %v9798_v48 = vpop.f32.mrb[26].mxu1  ;;  %7189 = vmatprep.subr.bf16.mxu1 %v7673_v10  ;;  %v9830_v25 = vld [vmem:[#allocation2 + $0xc4] sm:$0xf] }
 0x2f9   : > { %v4442_v31 = vor.u32 %v4441_v6, %v4438_v1  ;;  %v4457_v15 = vrot.slane %v4455_v21, 5  ;;  %v4698_v12 = vrot.slane %v9776_v49, 5  ;;  %v4701_v35 = vrot.slane %v4166_v59, 5  ;;  %v9801_v2 = vpop.f32.mrb[27].mxu1  ;;  %7190 = vmatpush3.bf16.msra.mxu1 %v7673_v10  ;;  %v4569_v9 = vld [vmem:[#allocation2 + $0xc0] sm:$0xe] }
 0x2fa   : > { %5244 = vmatprep.mubr.bf16.mxu1 %v6437_v41  ;;  %v4452_v58 = vor.u32 %v4451_v52, %v4447_v28  ;;  %v6407_v24 = vrot.slane %v4567_v30, 9  ;;  %v4705_v39 = vrot.slane %v9796_v61, 5  ;;  %v4708_v47 = vrot.slane %v9790_v50, 5  ;;  %v9836_v52 = vld [vmem:[#allocation2 + $0xc8] sm:$0x1] }
 0x2fb   : > { %5245 = vmatmul.mubr.bf16.gmra.mrb[124].mxu1 %v6421_v51  ;;  %v4443_v33 = vrot.slane %v4442_v31, 4  ;;  %v4699_v26 = vsel %vm8493_vm11, %v6406_v20, %v4698_v12  ;;  %v4700_v36 = vrot.slane %v4698_v12, 4  ;;  %v9809_v3 = vadd.f32 %v6615_v18, %v6614_v57  ;;  %v9840_v10 = vld [vmem:[#allocation2 + $0xb4] sm:$0xf] }
 0x2fc   : > { %v4453_v62 = vrot.slane %v4452_v58, 4  ;;  %v4706_v54 = vsel %vm8493_vm11, %v6407_v24, %v4705_v39  ;;  %v4707_v23 = vrot.slane %v4705_v39, 4  ;;  %v6422_v55 = vcombine.low %v9765_v7, %v9776_v49  ;;  %v9826_v49 = vld [vmem:[#allocation2 + $0xb8] sm:$0xf] }
 0x2fd   : > { %v4448_v51 = vsel %vm8569_vm14, %v4443_v33, %v4447_v28  ;;  %v4702_v59 = vsel %vm8493_vm11, %v4700_v36, %v4701_v35  ;;  %v4460_v32 = vshrl.u32 %v9805_v27, 16  ;;  %v4463_v57 = vshll.u32 %v9805_v27, 16 }
 0x2fe   : > { %v4458_v18 = vsel %vm8569_vm14, %v4453_v62, %v4457_v15  ;;  %v6454_v38 = vcombine.low %v4699_v26, %v4702_v59  ;;  %v4709_v45 = vsel %vm8493_vm11, %v4707_v23, %v4708_v47  ;;  %v4469_v7 = vshll.u32 %v9796_v61, 16 }
 0x2ff   : > { %v6438_v4 = vcombine.low %v4448_v51, %v4458_v18  ;;  %v6455_v0 = vcombine.low %v4706_v54, %v4709_v45  ;;  %v4462_v1 = vrot.slane %v4460_v32, 4  ;;  %v4465_v34 = vrot.slane %v4463_v57, 5  ;;  %v6623_v6 = vpop.f32.mrb[28].mxu1 }
 0x300   : > { %7178 = vmatmul.mubr.bf16.gmra.mrb[52].mxu0 %v6454_v38  ;;  %v4471_v21 = vrot.slane %v4469_v7, 5  ;;  %v4473_v30 = vshrl.u32 %v9796_v61, 16  ;;  %v4479_v41 = vshll.u32 %v9790_v50, 16  ;;  %v9834_v28 = vadd.f32 %v6618_v11, %v6617_v44  ;;  %v6624_v20 = vpop.f32.mrb[29].mxu1  ;;  %v863_v7 = vld [vmem:[#allocation2 + $0xcc] sm:$0x1] }
 0x301   : > { %5252 = vmatprep.mubr.bf16.mxu1 %v6438_v4  ;;  %7181 = vmatprep.mubr.bf16.mxu0 %v6455_v0  ;;  %v4466_v31 = vor.u32 %v4465_v34, %v4462_v1  ;;  %v6408_v15 = vrot.slane %v4568_v53, 9  ;;  %v4712_v12 = vrot.slane %v9826_v49, 5  ;;  %v4715_v35 = vrot.slane %v9828_v40, 5  ;;  %v6626_v58 = vpop.f32.mrb[30].mxu1  ;;  %v919_v0 = vld [vmem:[#allocation2 + $0xd4] sm:$0x1] }
 0x302   : > { %v4475_v24 = vrot.slane %v4473_v30, 4  ;;  %v4481_v39 = vrot.slane %v4479_v41, 5  ;;  %v6409_v47 = vrot.slane %v4569_v9, 9  ;;  %v4719_v50 = vrot.slane %v9830_v25, 5  ;;  %v6627_v44 = vpop.f32.mrb[31].mxu1 }
 0x303   : > { %5253 = vmatmul.mubr.bf16.gmra.mrb[128].mxu1 %v6422_v55  ;;  %v4467_v11 = vrot.slane %v4466_v31, 4  ;;  %v4713_v33 = vsel %vm8493_vm11, %v6408_v15, %v4712_v12  ;;  %v4714_v26 = vrot.slane %v4712_v12, 4  ;;  %v4722_v36 = vrot.slane %v9836_v52, 5  ;;  %v9867_v41 = vld [vmem:[#allocation2 + $0xd0] sm:$0xf]  ;;  %v7674_v15 = vld [vmem:[#allocation10 + $0x8] sm:$0xff]  }
 0x304   : > { %v4476_v62 = vor.u32 %v4475_v24, %v4471_v21  ;;  %v4720_v54 = vsel %vm8493_vm11, %v6409_v47, %v4719_v50  ;;  %v4721_v23 = vrot.slane %v4719_v50, 4  ;;  %v9850_v51 = vadd.f32 %v9801_v2, %v9798_v48  ;;  %v9871_v50 = vld [vmem:[#allocation2 + $0xc0] sm:$0xf]  ;;  %7191 = vmatprep.subr.bf16.mxu1 %v7674_v15 }
 0x305   : > { %v4472_v59 = vsel %vm8569_vm14, %v4467_v11, %v4471_v21  ;;  %v4716_v55 = vsel %vm8493_vm11, %v4714_v26, %v4715_v35  ;;  %v4484_v32 = vshrl.u32 %v9840_v10, 16  ;;  %v4487_v45 = vshll.u32 %v9840_v10, 16  ;;  %7192 = vmatpush3.bf16.msra.mxu1 %v7674_v15 }
 0x306   : > { %v4477_v57 = vrot.slane %v4476_v62, 4  ;;  %v6456_v18 = vcombine.low %v4713_v33, %v4716_v55  ;;  %v4723_v38 = vsel %vm8493_vm11, %v4721_v23, %v4722_v36  ;;  %v4493_v48 = vshll.u32 %v9826_v49, 16 }
 0x307   : > { %v6457_v53 = vcombine.low %v4720_v54, %v4723_v38  ;;  %v4486_v4 = vrot.slane %v4484_v32, 4  ;;  %v4497_v2 = vshrl.u32 %v9826_v49, 16  ;;  %v6629_v1 = vpop.f32.mrb[32].mxu1  ;;  %v4489_v9 = vrot.slane %v4487_v45, 5 }
 0x308   : > { %v4482_v34 = vsel %vm8569_vm14, %v4477_v57, %v4481_v39  ;;  %7182 = vmatmul.mubr.bf16.gmra.mrb[56].mxu0 %v6456_v18  ;;  %v4503_v21 = vshll.u32 %v9828_v40, 16  ;;  %v9865_v30 = vadd.f32 %v6624_v20, %v6623_v6  ;;  %v6630_v31 = vpop.f32.mrb[33].mxu1  ;;  %v4495_v35 = vrot.slane %v4493_v48, 5  ;;  %v4570_v20 = vld [vmem:[#allocation2 + $0xcc] sm:$0xe] }
 0x309   : > { %v6439_v12 = vcombine.low %v4472_v59, %v4482_v34  ;;  %7185 = vmatprep.mubr.bf16.mxu0 %v6457_v53  ;;  %v4499_v24 = vrot.slane %v4497_v2, 4  ;;  %v864_v47 = vsel %vm8320_vm2, 0, %v863_v7  ;;  %v6632_v39 = vpop.f32.mrb[34].mxu1  ;;  %v6423_v11 = vcombine.low %v9805_v27, %v9796_v61 }
 0x30a   : > { %v4490_v40 = vor.u32 %v4489_v9, %v4486_v4  ;;  %865 = vst [vmem:[#allocation2 + $0xcc] sm:$0x1] %v864_v47  ;;  %v920_v6 = vsel %vm8327_vm4, 0, %v919_v0  ;;  %v6633_v33 = vpop.f32.mrb[35].mxu1  ;;  %v4505_v36 = vrot.slane %v4503_v21, 5  ;;  %v4726_v5 = vrot.slane %v9867_v41, 5 }
 0x30b   : > { %5260 = vmatprep.mubr.bf16.mxu1 %v6439_v12  ;;  %v4500_v26 = vor.u32 %v4499_v24, %v4495_v35  ;;  %921 = vst [vmem:[#allocation2 + $0xd4] sm:$0x1] %v920_v6  ;;  %v9878_v62 = vadd.f32 %v6627_v44, %v6626_v58  ;;  %v4508_v61 = vshrl.u32 %v9871_v50, 16  ;;  %v4511_v27 = vshll.u32 %v9871_v50, 16 }
 0x30c   : > { %5261 = vmatmul.mubr.bf16.gmra.mrb[132].mxu1 %v6423_v11  ;;  %v4491_v54 = vrot.slane %v4490_v40, 4  ;;  %v4517_v13 = vshll.u32 %v9830_v25, 16  ;;  %v6410_v59 = vrot.slane %v4570_v20, 9  ;;  %v6424_v55 = vcombine.low %v9840_v10, %v9826_v49 }
 0x30d   : > { %v4501_v23 = vrot.slane %v4500_v26, 4  ;;  %v4521_v32 = vshrl.u32 %v9830_v25, 16  ;;  %v4510_v44 = vrot.slane %v4508_v61, 4  ;;  %v4513_v57 = vrot.slane %v4511_v27, 5 }
 0x30e   : > { %v4496_v58 = vsel %vm8569_vm14, %v4491_v54, %v4495_v35  ;;  %v4519_v18 = vrot.slane %v4517_v13, 5  ;;  %v4527_v53 = vshll.u32 %v9836_v52, 16  ;;  %v9891_v4 = vadd.f32 %v6630_v31, %v6629_v1 }
 0x30f   : > { %v4506_v38 = vsel %vm8569_vm14, %v4501_v23, %v4505_v36  ;;  %v6717_v45 = vpop.f32.mrb[64].mxu0  ;;  %v4523_v7 = vrot.slane %v4521_v32, 4  ;;  %v4728_v2 = vrot.slane %v4726_v5, 4  ;;  %v4514_v10 = vor.u32 %v4513_v57, %v4510_v44 }
 0x310   : > { %v6440_v48 = vcombine.low %v4496_v58, %v4506_v38  ;;  %v6718_v49 = vpop.f32.mrb[65].mxu0  ;;  %v9893_v0 = vadd.f32 %v6633_v33, %v6632_v39  ;;  %v4529_v15 = vrot.slane %v4527_v53, 5  ;;  %v4541_v35 = vshll.u32 %v9867_v41, 16 }
 0x311   : > { %v6719_v34 = vadd.f32 %v6718_v49, %v6717_v45  ;;  %v6720_v9 = vpop.f32.mrb[66].mxu0  ;;  %v4524_v21 = vor.u32 %v4523_v7, %v4519_v18  ;;  %v9895_v12 = vld [vmem:[#allocation2 + $0xcc] sm:$0xf]  ;;  %v4727_v52 = vsel %vm8493_vm11, %v6410_v59, %v4726_v5  ;;  %v4515_v1 = vrot.slane %v4514_v10, 4 }
 0x312   : > { %5268 = vmatprep.mubr.bf16.mxu1 %v6440_v48  ;;  %v4170_v24 = vld [vmem:[#allocation2 + $0xd4] sm:$0x1]  ;;  %v6721_v31 = vpop.f32.mrb[67].mxu0  ;;  %v4532_v47 = vshrl.u32 %v9895_v12, 16  ;;  %v4535_v39 = vshll.u32 %v9895_v12, 16  ;;  %v4543_v61 = vrot.slane %v4541_v35, 5  ;;  %v6425_v49 = vcombine.low %v9871_v50, %v9830_v25 }
 0x313   : > { %v4729_v11 = vrot.slane %v4170_v24, 5  ;;  %v9903_v40 = vadd.f32 %v6719_v34, %v9602_v29  ;;  %v4525_v6 = vrot.slane %v4524_v21, 4  ;;  %v6722_v20 = vadd.f32 %v6721_v31, %v6720_v9  ;;  %v6635_v33 = vpop.f32.mrb[36].mxu1 }
 0x314   : > { %5269 = vmatmul.mubr.bf16.gmra.mrb[136].mxu1 %v6424_v55  ;;  %v4520_v26 = vsel %vm8569_vm14, %v4515_v1, %v4519_v18  ;;  %v6636_v36 = vpop.f32.mrb[37].mxu1  ;;  %v4534_v54 = vrot.slane %v4532_v47, 4  ;;  %v4537_v5 = vrot.slane %v4535_v39, 5  ;;  %v4545_v57 = vshrl.u32 %v9867_v41, 16 }
 0x315   : > { %v4730_v27 = vsel %vm8493_vm11, %v4728_v2, %v4729_v11  ;;  %v4530_v13 = vsel %vm8569_vm14, %v4525_v6, %v4529_v15  ;;  %v9912_v29 = vadd.f32 %v6722_v20, %v9615_v8  ;;  %v9914_v23 = vadd.f32 %v6636_v36, %v6635_v33  ;;  %v6638_v59 = vpop.f32.mrb[38].mxu1  ;;  %v7675_v8 = vld [vmem:[#allocation10 + $0x10] sm:$0xff]  }
 0x316   : > { %v6458_v55 = vcombine.low %v4727_v52, %v4730_v27  ;;  %v6441_v32 = vcombine.low %v4520_v26, %v4530_v13  ;;  %v6639_v58 = vpop.f32.mrb[39].mxu1  ;;  %v4538_v44 = vor.u32 %v4537_v5, %v4534_v54  ;;  %v4551_v19 = vshll.u32 %v4170_v24, 16  ;;  %7193 = vmatprep.subr.bf16.mxu1 %v7675_v8 }
 0x317   : > { %v6723_v18 = vpop.f32.mrb[68].mxu0  ;;  %v9917_v38 = vadd.f32 %v6639_v58, %v6638_v59  ;;  %v4547_v53 = vrot.slane %v4545_v57, 4  ;;  %7194 = vmatpush3.bf16.msra.mxu1 %v7675_v8  ;;  %v6426_v33 = vcombine.low %v9895_v12, %v9867_v41 }
 0x318   : > { %7186 = vmatmul.mubr.bf16.gmra.mrb[60].mxu0 %v6458_v55  ;;  %5276 = vmatprep.mubr.bf16.mxu1 %v6441_v32  ;;  %v6724_v45 = vpop.f32.mrb[69].mxu0  ;;  %v4539_v7 = vrot.slane %v4538_v44, 4  ;;  %v4553_v9 = vrot.slane %v4551_v19, 5 }
 0x319   : > { %v6725_v48 = vadd.f32 %v6724_v45, %v6723_v18  ;;  %v6726_v2 = vpop.f32.mrb[70].mxu0  ;;  %v4548_v34 = vor.u32 %v4547_v53, %v4543_v61 }
 0x31a   : > { %v6727_v10 = vpop.f32.mrb[71].mxu0  ;;  %v4544_v24 = vsel %vm8569_vm14, %v4539_v7, %v4543_v61  ;;  %v7676_v7 = vld [vmem:[#allocation10 + $0x18] sm:$0xff]  }
 0x31b   : > { %v9922_v21 = vadd.f32 %v6725_v48, %v9642_v37  ;;  %v6728_v15 = vadd.f32 %v6727_v10, %v6726_v2  ;;  %v6641_v35 = vpop.f32.mrb[40].mxu1  ;;  %v4549_v52 = vrot.slane %v4548_v34, 4  ;;  %7195 = vmatprep.subr.bf16.mxu1 %v7676_v7 }
 0x31c   : > { %5277 = vmatmul.mubr.bf16.gmra.mrb[140].mxu1 %v6425_v49  ;;  %v6642_v1 = vpop.f32.mrb[41].mxu1 }
 0x31d   : > { %v9927_v31 = vadd.f32 %v6728_v15, %v9660_v16  ;;  %v9929_v25 = vadd.f32 %v6642_v1, %v6641_v35  ;;  %v6644_v50 = vpop.f32.mrb[42].mxu1  ;;  %v4554_v47 = vsel %vm8569_vm14, %v4549_v52, %v4553_v9  ;;  %7196 = vmatpush3.bf16.msra.mxu1 %v7676_v7 }
 0x31e   : > { %v6645_v37 = vpop.f32.mrb[43].mxu1  ;;  %v6442_v11 = vcombine.low %v4544_v24, %v4554_v47 }
 0x31f   : > { %v6729_v39 = vpop.f32.mrb[72].mxu0  ;;  %v9933_v6 = vadd.f32 %v6645_v37, %v6644_v50 }
 0x320   : > { %v6730_v20 = vpop.f32.mrb[73].mxu0  ;;  %5284 = vmatprep.mubr.bf16.mxu1 %v6442_v11 }
 0x321   : > { %v6731_v26 = vadd.f32 %v6730_v20, %v6729_v39  ;;  %v6732_v36 = vpop.f32.mrb[74].mxu0 }
 0x322   : > { %v6733_v16 = vpop.f32.mrb[75].mxu0 }
 0x323   : > { %v9938_v54 = vadd.f32 %v6731_v26, %v9685_v22  ;;  %v6734_v5 = vadd.f32 %v6733_v16, %v6732_v36  ;;  %v7677_v16 = vld [vmem:[#allocation10 + $0x20] sm:$0xff]  }
 0x324   : > { %5285 = vmatmul.mubr.bf16.gmra.mrb[144].mxu1 %v6426_v33  ;;  %7197 = vmatprep.subr.bf16.mxu1 %v7677_v16 }
 0x325   : > { %v9941_v56 = vadd.f32 %v6734_v5, %v9699_v17  ;;  %v6647_v61 = vpop.f32.mrb[44].mxu1  ;;  %7198 = vmatpush3.bf16.msra.mxu1 %v7677_v16 }
 0x326   : > { %v6648_v27 = vpop.f32.mrb[45].mxu1 }
 0x327   : > { %v6735_v13 = vpop.f32.mrb[76].mxu0  ;;  %v9943_v59 = vadd.f32 %v6648_v27, %v6647_v61  ;;  %v6650_v55 = vpop.f32.mrb[46].mxu1 }
 0x328   : > { %v6736_v32 = vpop.f32.mrb[77].mxu0  ;;  %v6651_v41 = vpop.f32.mrb[47].mxu1 }
 0x329   : > { %v6737_v12 = vadd.f32 %v6736_v32, %v6735_v13  ;;  %v6738_v58 = vpop.f32.mrb[78].mxu0  ;;  %v9945_v44 = vadd.f32 %v6651_v41, %v6650_v55 }
 0x32a   : > { %v6739_v57 = vpop.f32.mrb[79].mxu0 }
 0x32b   : > { %v9948_v22 = vadd.f32 %v6737_v12, %v9726_v60  ;;  %v6740_v18 = vadd.f32 %v6739_v57, %v6738_v58 }
 0x32d   : > { %v9951_v17 = vadd.f32 %v6740_v18, %v9740_v46  ;;  %v6653_v19 = vpop.f32.mrb[48].mxu1 }
 0x32e   : > { %v6654_v45 = vpop.f32.mrb[49].mxu1 }
 0x32f   : > { %v6741_v53 = vpop.f32.mrb[80].mxu0  ;;  %v9953_v8 = vadd.f32 %v6654_v45, %v6653_v19  ;;  %v6656_v48 = vpop.f32.mrb[50].mxu1 }
 0x330   : > { %v6742_v2 = vpop.f32.mrb[81].mxu0  ;;  %v6657_v49 = vpop.f32.mrb[51].mxu1 }
 0x331   : > { %v6743_v10 = vadd.f32 %v6742_v2, %v6741_v53  ;;  %v6744_v34 = vpop.f32.mrb[82].mxu0  ;;  %v9955_v9 = vadd.f32 %v6657_v49, %v6656_v48 }
 0x332   : > { %v6745_v60 = vpop.f32.mrb[83].mxu0 }
 0x333   : > { %v9958_v15 = vadd.f32 %v6743_v10, %v9761_v63  ;;  %v6746_v46 = vadd.f32 %v6745_v60, %v6744_v34 }
 0x335   : > { %v9961_v35 = vadd.f32 %v6746_v46, %v9774_v43 }
 0x337   : > { %v6747_v24 = vpop.f32.mrb[84].mxu0  ;;  %v6659_v52 = vpop.f32.mrb[52].mxu1 }
 0x338   : > { %v6748_v1 = vpop.f32.mrb[85].mxu0  ;;  %v6660_v50 = vpop.f32.mrb[53].mxu1 }
 0x339   : > { %v6749_v47 = vadd.f32 %v6748_v1, %v6747_v24  ;;  %v6750_v37 = vpop.f32.mrb[86].mxu0  ;;  %v9963_v39 = vadd.f32 %v6660_v50, %v6659_v52  ;;  %v6662_v11 = vpop.f32.mrb[54].mxu1 }
 0x33a   : > { %v6751_v20 = vpop.f32.mrb[87].mxu0  ;;  %v6663_v33 = vpop.f32.mrb[55].mxu1 }
 0x33b   : > { %v9966_v26 = vadd.f32 %v6749_v47, %v9794_v42  ;;  %v6752_v63 = vadd.f32 %v6751_v20, %v6750_v37  ;;  %v9968_v36 = vadd.f32 %v6663_v33, %v6662_v11 }
 0x33d   : > { %v9971_v43 = vadd.f32 %v6752_v63, %v9809_v3 }
 0x33f   : > { %v6753_v5 = vpop.f32.mrb[88].mxu0  ;;  %v6665_v61 = vpop.f32.mrb[56].mxu1 }
 0x340   : > { %v6754_v27 = vpop.f32.mrb[89].mxu0  ;;  %v6666_v13 = vpop.f32.mrb[57].mxu1 }
 0x341   : > { %v6755_v55 = vadd.f32 %v6754_v27, %v6753_v5  ;;  %v6756_v32 = vpop.f32.mrb[90].mxu0  ;;  %v9973_v41 = vadd.f32 %v6666_v13, %v6665_v61  ;;  %v6668_v12 = vpop.f32.mrb[58].mxu1 }
 0x342   : > { %v6757_v42 = vpop.f32.mrb[91].mxu0  ;;  %v6669_v58 = vpop.f32.mrb[59].mxu1 }
 0x343   : > { %v9976_v57 = vadd.f32 %v6755_v55, %v9834_v28  ;;  %v6758_v18 = vadd.f32 %v6757_v42, %v6756_v32  ;;  %v9978_v3 = vadd.f32 %v6669_v58, %v6668_v12  ;;  %v7678_v55 = vld [vmem:[#allocation10 + $0x28] sm:$0xff]   ;;  %v7679_v32 = vld [vmem:[#allocation10 + $0x30] sm:$0xff]  }
 0x344   : > { %7199 = vmatprep.subr.bf16.mxu1 %v7678_v55 }
 0x345   : > { %v9981_v19 = vadd.f32 %v6758_v18, %v9850_v51  ;;  %7200 = vmatpush3.bf16.msra.mxu1 %v7678_v55 }
 0x346   : > { %7201 = vmatprep.subr.bf16.mxu1 %v7679_v32 }
 0x347   : > { %v6759_v45 = vpop.f32.mrb[92].mxu0 }
 0x348   : > { %v6760_v7 = vpop.f32.mrb[93].mxu0 }
 0x349   : > { %v6761_v53 = vadd.f32 %v6760_v7, %v6759_v45  ;;  %v6762_v48 = vpop.f32.mrb[94].mxu0  ;;  %v6671_v2 = vpop.f32.mrb[60].mxu1  ;;  %7202 = vmatpush3.bf16.msra.mxu1 %v7679_v32 }
 0x34a   : > { %v6763_v49 = vpop.f32.mrb[95].mxu0  ;;  %v6672_v10 = vpop.f32.mrb[61].mxu1 }
 0x34b   : > { %v9984_v34 = vadd.f32 %v6761_v53, %v9865_v30  ;;  %v6764_v60 = vadd.f32 %v6763_v49, %v6762_v48  ;;  %v9986_v46 = vadd.f32 %v6672_v10, %v6671_v2  ;;  %v6674_v28 = vpop.f32.mrb[62].mxu1  ;;  %v7680_v53 = vld [vmem:[#allocation10 + $0x38] sm:$0xff]  }
 0x34c   : > { %v6675_v24 = vpop.f32.mrb[63].mxu1  ;;  %7203 = vmatprep.subr.bf16.mxu1 %v7680_v53 }
 0x34d   : > { %v9989_v52 = vadd.f32 %v6764_v60, %v9878_v62  ;;  %v9991_v51 = vadd.f32 %v6675_v24, %v6674_v28  ;;  %7204 = vmatpush3.bf16.msra.mxu1 %v7680_v53 }
 0x34f   : > { %v6765_v1 = vpop.f32.mrb[96].mxu0 }
 0x350   : > { %v6766_v50 = vpop.f32.mrb[97].mxu0 }
 0x351   : > { %v6767_v47 = vadd.f32 %v6766_v50, %v6765_v1  ;;  %v6768_v37 = vpop.f32.mrb[98].mxu0  ;;  %v6783_v11 = vpop.f32.mrb[64].mxu1 }
 0x352   : > { %v6769_v20 = vpop.f32.mrb[99].mxu0  ;;  %v6784_v33 = vpop.f32.mrb[65].mxu1 }
 0x353   : > { %v9994_v30 = vadd.f32 %v6767_v47, %v9891_v4  ;;  %v6770_v63 = vadd.f32 %v6769_v20, %v6768_v37  ;;  %v6785_v16 = vadd.f32 %v6784_v33, %v6783_v11  ;;  %v6786_v5 = vpop.f32.mrb[66].mxu1 }
 0x354   : > { %v6787_v61 = vpop.f32.mrb[67].mxu1 }
 0x355   : > { %v9997_v27 = vadd.f32 %v6770_v63, %v9893_v0  ;;  %v10000_v62 = vadd.f32 %v6785_v16, %v9943_v59  ;;  %v6788_v13 = vadd.f32 %v6787_v61, %v6786_v5 }
 0x357   : > { %v10003_v12 = vadd.f32 %v6788_v13, %v9945_v44  ;;  %v6771_v42 = vpop.f32.mrb[100].mxu0 }
 0x358   : > { %v6772_v58 = vpop.f32.mrb[101].mxu0 }
 0x359   : > { %v6773_v4 = vadd.f32 %v6772_v58, %v6771_v42  ;;  %v6774_v18 = vpop.f32.mrb[102].mxu0 }
 0x35a   : > { %v6775_v45 = vpop.f32.mrb[103].mxu0 }
 0x35b   : > { %v10006_v0 = vadd.f32 %v6773_v4, %v9914_v23  ;;  %v6776_v7 = vadd.f32 %v6775_v45, %v6774_v18  ;;  %v6789_v59 = vpop.f32.mrb[68].mxu1 }
 0x35c   : > { %v6790_v48 = vpop.f32.mrb[69].mxu1 }
 0x35d   : > { %v10009_v2 = vadd.f32 %v6776_v7, %v9917_v38  ;;  %v6791_v44 = vadd.f32 %v6790_v48, %v6789_v59  ;;  %v6792_v49 = vpop.f32.mrb[70].mxu1 }
 0x35e   : > { %v6793_v10 = vpop.f32.mrb[71].mxu1 }
 0x35f   : > { %v10012_v60 = vadd.f32 %v6791_v44, %v9953_v8  ;;  %v6794_v28 = vadd.f32 %v6793_v10, %v6792_v49  ;;  %v6777_v24 = vpop.f32.mrb[104].mxu0 }
 0x360   : > { %v6778_v1 = vpop.f32.mrb[105].mxu0 }
 0x361   : > { %v10015_v23 = vadd.f32 %v6794_v28, %v9955_v9  ;;  %v6779_v50 = vadd.f32 %v6778_v1, %v6777_v24  ;;  %v6780_v47 = vpop.f32.mrb[106].mxu0 }
 0x362   : > { %v6781_v37 = vpop.f32.mrb[107].mxu0 }
 0x363   : > { %v6795_v38 = vpop.f32.mrb[72].mxu1  ;;  %v10018_v11 = vadd.f32 %v6779_v50, %v9929_v25  ;;  %v6782_v20 = vadd.f32 %v6781_v37, %v6780_v47 }
 0x364   : > { %v6796_v33 = vpop.f32.mrb[73].mxu1 }
 0x365   : > { %v6797_v63 = vadd.f32 %v6796_v33, %v6795_v38  ;;  %v6798_v16 = vpop.f32.mrb[74].mxu1  ;;  %v10021_v8 = vadd.f32 %v6782_v20, %v9933_v6  ;;  %v10043_v33 = vld [vmem:[#allocation12] sm:$0xff]  }
 0x366   : > { %v6799_v5 = vpop.f32.mrb[75].mxu1  ;;  %7213 = vmatprep.subr.bf16.mxu1 %v10043_v33 }
 0x367   : > { %v10024_v9 = vadd.f32 %v6797_v63, %v9963_v39  ;;  %v6800_v61 = vadd.f32 %v6799_v5, %v6798_v16 }
 0x369   : > { %v10027_v13 = vadd.f32 %v6800_v61, %v9968_v36 }
 0x36b   : > { %v6801_v55 = vpop.f32.mrb[76].mxu1 }
 0x36c   : > { %v6802_v32 = vpop.f32.mrb[77].mxu1 }
 0x36d   : > { %v6803_v42 = vadd.f32 %v6802_v32, %v6801_v55  ;;  %v6804_v25 = vpop.f32.mrb[78].mxu1 }
 0x36e   : > { %v6805_v58 = vpop.f32.mrb[79].mxu1 }
 0x36f   : > { %v10030_v4 = vadd.f32 %v6803_v42, %v9973_v41  ;;  %v6806_v18 = vadd.f32 %v6805_v58, %v6804_v25 }
 0x371   : > { %v10033_v6 = vadd.f32 %v6806_v18, %v9978_v3 }
 0x373   : > { %v6807_v45 = vpop.f32.mrb[80].mxu1 }
 0x374   : > { %v6808_v7 = vpop.f32.mrb[81].mxu1 }
 0x375   : > { %v6809_v39 = vadd.f32 %v6808_v7, %v6807_v45  ;;  %v6810_v59 = vpop.f32.mrb[82].mxu1 }
 0x376   : > { %v6811_v53 = vpop.f32.mrb[83].mxu1 }
 0x377   : > { %v10036_v36 = vadd.f32 %v6809_v39, %v9986_v46  ;;  %v6812_v48 = vadd.f32 %v6811_v53, %v6810_v59 }
 0x379   : > { %v10039_v44 = vadd.f32 %v6812_v48, %v9991_v51 }
 0x37c   : > { %v6853_v49 = vpop.f32.mrb[84].mxu1 }
 0x37d   : > { %v6854_v10 = vpop.f32.mrb[85].mxu1 }
 0x37e   : > { %v6855_v41 = vadd.f32 %v6854_v10, %v6853_v49  ;;  %v6856_v28 = vpop.f32.mrb[86].mxu1 }
 0x37f   : > { %v6857_v24 = vpop.f32.mrb[87].mxu1 }
 0x380   : > { %v6858_v1 = vadd.f32 %v6857_v24, %v6856_v28  ;;  %v7257_v3 = vadd.f32 %v9903_v40, %v6855_v41 }
 0x382   : > { %v7263_v50 = vadd.f32 %v9912_v29, %v6858_v1 }
 0x384   : > { %v6859_v47 = vpop.f32.mrb[88].mxu1 }
 0x385   : > { %v6860_v37 = vpop.f32.mrb[89].mxu1 }
 0x386   : > { %v6861_v38 = vadd.f32 %v6860_v37, %v6859_v47  ;;  %v6862_v20 = vpop.f32.mrb[90].mxu1 }
 0x387   : > { %v6863_v46 = vpop.f32.mrb[91].mxu1 }
 0x388   : > { %v6864_v63 = vadd.f32 %v6863_v46, %v6862_v20  ;;  %v7254_v51 = vadd.f32 %v9922_v21, %v6861_v38  ;;  %v10064_v46 = vld [vmem:[%s10206_s4] ss:$0 sm:$0xff] }
 0x38a   : > { %v7260_v16 = vadd.f32 %v9927_v31, %v6864_v63 }
 0x38c   : > { %v6865_v5 = vpop.f32.mrb[92].mxu1 }
 0x38d   : > { %v6866_v61 = vpop.f32.mrb[93].mxu1 }
 0x38e   : > { %v6867_v55 = vadd.f32 %v6866_v61, %v6865_v5  ;;  %v6868_v40 = vpop.f32.mrb[94].mxu1 }
 0x38f   : > { %v6869_v32 = vpop.f32.mrb[95].mxu1 }
 0x390   : > { %v6870_v29 = vadd.f32 %v6869_v32, %v6868_v40  ;;  %v7269_v42 = vadd.f32 %v9938_v54, %v6867_v55 }
 0x392   : > { %v10050_v25 = vadd.f32 %v9941_v56, %v6870_v29 }
 0x394   : > { %v6871_v58 = vpop.f32.mrb[96].mxu1 }
 0x395   : > { %v6872_v18 = vpop.f32.mrb[97].mxu1 }
 0x396   : > { %v6873_v45 = vadd.f32 %v6872_v18, %v6871_v58  ;;  %v6874_v7 = vpop.f32.mrb[98].mxu1 }
 0x397   : > { %v6875_v21 = vpop.f32.mrb[99].mxu1 }
 0x398   : > { %v6876_v39 = vadd.f32 %v6875_v21, %v6874_v7  ;;  %v7266_v59 = vadd.f32 %v9948_v22, %v6873_v45 }
 0x39a   : > { %v7272_v31 = vadd.f32 %v9951_v17, %v6876_v39 }
 0x39c   : > { %v6877_v53 = vpop.f32.mrb[100].mxu1 }
 0x39d   : > { %v6878_v48 = vpop.f32.mrb[101].mxu1 }
 0x39e   : > { %v6879_v49 = vadd.f32 %v6878_v48, %v6877_v53  ;;  %v6880_v10 = vpop.f32.mrb[102].mxu1 }
 0x39f   : > { %v6881_v41 = vpop.f32.mrb[103].mxu1 }
 0x3a0   : > { %v6882_v28 = vadd.f32 %v6881_v41, %v6880_v10  ;;  %v10055_v54 = vadd.f32 %v9958_v15, %v6879_v49 }
 0x3a2   : > { %v10058_v56 = vadd.f32 %v9961_v35, %v6882_v28 }
 0x3a4   : > { %v6883_v24 = vpop.f32.mrb[104].mxu1 }
 0x3a5   : > { %v6884_v1 = vpop.f32.mrb[105].mxu1 }
 0x3a6   : > { %v6885_v47 = vadd.f32 %v6884_v1, %v6883_v24  ;;  %v6886_v37 = vpop.f32.mrb[106].mxu1 }
 0x3a7   : > { %v6887_v38 = vpop.f32.mrb[107].mxu1 }
 0x3a8   : > { %v6888_v22 = vadd.f32 %v6887_v38, %v6886_v37  ;;  %v7278_v17 = vadd.f32 %v9966_v26, %v6885_v47 }
 0x3aa   : > { %v7159_v20 = vpop.f32.mrb[32].mxu0  ;;  %v7284_v5 = vadd.f32 %v9971_v43, %v6888_v22 }
 0x3ab   : > { %v7255_v63 = vadd.f32 %v7254_v51, %v7159_v20  ;;  %v5327_v15 = vpop.f32.mrb[33].mxu0 }
 0x3ac   : > { %v7258_v35 = vadd.f32 %v7257_v3, %v5327_v15  ;;  %v7160_v61 = vpop.f32.mrb[34].mxu0  ;;  %v6889_v29 = vpop.f32.mrb[108].mxu1 }
 0x3ad   : > { %v5495_v55 = vadd.f32 %v7255_v63, %v10064_v46  ;;  %v7261_v40 = vadd.f32 %v7260_v16, %v7160_v61  ;;  %v5330_v32 = vpop.f32.mrb[35].mxu0  ;;  %v6890_v18 = vpop.f32.mrb[109].mxu1 }
 0x3ae   : > { %v5493_v58 = vadd.f32 %v7258_v35, %v10064_v46  ;;  %v7264_v26 = vadd.f32 %v7263_v50, %v5330_v32  ;;  %v6891_v21 = vadd.f32 %v6890_v18, %v6889_v29  ;;  %v6892_v39 = vpop.f32.mrb[110].mxu1 }
 0x3af   : > { %v5527_v45 = vmax.f32 %v5495_v55, 0.0  ;;  %v5496_v7 = vadd.f32 %v7261_v40, %v10064_v46  ;;  %v6893_v43 = vpop.f32.mrb[111].mxu1 }
 0x3b0   : > { %v5525_v51 = vmax.f32 %v5493_v58, 0.0  ;;  %v5494_v53 = vadd.f32 %v7264_v26, %v10064_v46  ;;  %v6894_v48 = vadd.f32 %v6893_v43, %v6892_v39  ;;  %v10072_v49 = vadd.f32 %v9976_v57, %v6891_v21 }
 0x3b1   : > { %v5528_v3 = vmax.f32 %v5496_v7, 0.0 }
 0x3b2   : > { %v5557_v16 = vadd.f32 %v5527_v45, %v5525_v51  ;;  %v5526_v10 = vmax.f32 %v5494_v53, 0.0  ;;  %v7163_v41 = vpop.f32.mrb[36].mxu0  ;;  %v10075_v24 = vadd.f32 %v9981_v19, %v6894_v48 }
 0x3b3   : > { %v7267_v28 = vadd.f32 %v7266_v59, %v7163_v41  ;;  %v5343_v50 = vpop.f32.mrb[37].mxu0 }
 0x3b4   : > { %5573 = vst [vmem:[#allocation3] sm:$0xff] %v5557_v16  ;;  %v5558_v1 = vadd.f32 %v5528_v3, %v5526_v10  ;;  %v7270_v47 = vadd.f32 %v7269_v42, %v5343_v50  ;;  %v7164_v37 = vpop.f32.mrb[38].mxu0  ;;  %v6895_v63 = vpop.f32.mrb[112].mxu1 }
 0x3b5   : > { %v5499_v38 = vadd.f32 %v7267_v28, %v10064_v46  ;;  %v7273_v22 = vadd.f32 %v7272_v31, %v7164_v37  ;;  %v5346_v20 = vpop.f32.mrb[39].mxu0  ;;  %v6896_v35 = vpop.f32.mrb[113].mxu1 }
 0x3b6   : > { %5574 = vst [vmem:[#allocation3 + $0x8] sm:$0xff] %v5558_v1  ;;  %v5497_v57 = vadd.f32 %v7270_v47, %v10064_v46  ;;  %v7276_v15 = vadd.f32 %v10050_v25, %v5346_v20  ;;  %v6897_v19 = vadd.f32 %v6896_v35, %v6895_v63  ;;  %v6898_v55 = vpop.f32.mrb[114].mxu1 }
 0x3b7   : > { %v5531_v59 = vmax.f32 %v5499_v38, 0.0  ;;  %v5500_v61 = vadd.f32 %v7273_v22, %v10064_v46  ;;  %v6899_v32 = vpop.f32.mrb[115].mxu1 }
 0x3b8   : > { %v5529_v40 = vmax.f32 %v5497_v57, 0.0  ;;  %v5498_v42 = vadd.f32 %v7276_v15, %v10064_v46  ;;  %v6900_v58 = vadd.f32 %v6899_v32, %v6898_v55  ;;  %v7290_v31 = vadd.f32 %v9984_v34, %v6897_v19 }
 0x3b9   : > { %v5532_v29 = vmax.f32 %v5500_v61, 0.0 }
 0x3ba   : > { %v5559_v26 = vadd.f32 %v5531_v59, %v5529_v40  ;;  %v5530_v18 = vmax.f32 %v5498_v42, 0.0  ;;  %v7167_v45 = vpop.f32.mrb[40].mxu0  ;;  %v7296_v25 = vadd.f32 %v9989_v52, %v6900_v58  ;;  %v10265_v52 = vld [vmem:[#allocation20_spill] sm:$0xff] }
 0x3bb   : > { %v7279_v7 = vadd.f32 %v7278_v17, %v7167_v45  ;;  %v5359_v21 = vpop.f32.mrb[41].mxu0  ;;  %v10266_v45 = vld [vmem:[#allocation21_spill] sm:$0xff] }
 0x3bc   : > { %5575 = vst [vmem:[#allocation3 + $0x10] sm:$0xff] %v5559_v26  ;;  %v5560_v39 = vadd.f32 %v5532_v29, %v5530_v18  ;;  %v7282_v51 = vadd.f32 %v10055_v54, %v5359_v21  ;;  %v7168_v53 = vpop.f32.mrb[42].mxu0 }
 0x3bd   : > { %v5503_v43 = vadd.f32 %v7279_v7, %v10064_v46  ;;  %v7285_v3 = vadd.f32 %v7284_v5, %v7168_v53  ;;  %v5362_v48 = vpop.f32.mrb[43].mxu0  ;;  %v5589_v16 = vld [vmem:[#allocation3] ss:$2 sm:$0xff]  ;;  %v5605_v10 = vld [vmem:[#allocation3 + $0x1] ss:$2 sm:$0xff]  ;;  %v6901_v17 = vpop.f32.mrb[116].mxu1 }
 0x3be   : > { %5576 = vst [vmem:[#allocation3 + $0x18] sm:$0xff] %v5560_v39  ;;  %v5501_v34 = vadd.f32 %v7282_v51, %v10064_v46  ;;  %v7288_v41 = vadd.f32 %v10058_v56, %v5362_v48  ;;  %5816 = vst [vmem:[#allocation3] sm:$0xff] %v8244_v14  ;;  %v6902_v50 = vpop.f32.mrb[117].mxu1  ;;  %v5620_v18 = vadd.f32 %v5605_v10, %v5589_v16  ;;  %v10267_v7 = vld [vmem:[#allocation22_spill] sm:$0xff] }
 0x3bf   : > { %5817 = vst [vmem:[#allocation3 + $0x8] sm:$0xff] %v10265_v52  ;;  %v5535_v28 = vmax.f32 %v5503_v43, 0.0  ;;  %v5504_v54 = vadd.f32 %v7285_v3, %v10064_v46  ;;  %v6903_v47 = vadd.f32 %v6902_v50, %v6901_v17  ;;  %v6904_v37 = vpop.f32.mrb[118].mxu1 }
 0x3c0   : > { %v5533_v1 = vmax.f32 %v5501_v34, 0.0  ;;  %v5502_v5 = vadd.f32 %v7288_v41, %v10064_v46  ;;  %v6905_v22 = vpop.f32.mrb[119].mxu1 }
 0x3c1   : > { %v5536_v38 = vmax.f32 %v5504_v54, 0.0  ;;  %v6906_v57 = vadd.f32 %v6905_v22, %v6904_v37  ;;  %v7305_v56 = vadd.f32 %v9994_v30, %v6903_v47  ;;  %v10269_v22 = vld [vmem:[#allocation24_spill] sm:$0xff] }
 0x3c2   : > { %v5561_v20 = vadd.f32 %v5535_v28, %v5533_v1  ;;  %v5534_v63 = vmax.f32 %v5502_v5, 0.0  ;;  %v7171_v15 = vpop.f32.mrb[44].mxu0 }
 0x3c3   : > { %v7291_v35 = vadd.f32 %v7290_v31, %v7171_v15  ;;  %v5375_v59 = vpop.f32.mrb[45].mxu0  ;;  %v7311_v61 = vadd.f32 %v9997_v27, %v6906_v57 }
 0x3c4   : > { %5577 = vst [vmem:[#allocation3 + $0x20] sm:$0xff] %v5561_v20  ;;  %v5562_v14 = vadd.f32 %v5536_v38, %v5534_v63  ;;  %v7294_v19 = vadd.f32 %v10072_v49, %v5375_v59  ;;  %v7172_v55 = vpop.f32.mrb[46].mxu0  ;;  %v10268_v38 = vld [vmem:[#allocation23_spill] sm:$0xff] }
 0x3c5   : > { %v5591_v40 = vld [vmem:[#allocation3 + $0x10] ss:$2 sm:$0xff]  ;;  %v5607_v42 = vld [vmem:[#allocation3 + $0x11] ss:$2 sm:$0xff]  ;;  %v5507_v32 = vadd.f32 %v7291_v35, %v10064_v46  ;;  %v7297_v29 = vadd.f32 %v7296_v25, %v7172_v55  ;;  %v5378_v58 = vpop.f32.mrb[47].mxu0  ;;  %v6907_v26 = vpop.f32.mrb[120].mxu1 }
 0x3c6   : > { %5578 = vst [vmem:[#allocation3 + $0x28] sm:$0xff] %v5562_v14  ;;  %v5621_v30 = vadd.f32 %v5607_v42, %v5591_v40  ;;  %5818 = vst [vmem:[#allocation3 + $0x10] sm:$0xff] %v10266_v45  ;;  %v5505_v31 = vadd.f32 %v7294_v19, %v10064_v46  ;;  %v7300_v27 = vadd.f32 %v10075_v24, %v5378_v58  ;;  %v6908_v49 = vpop.f32.mrb[121].mxu1 }
 0x3c7   : > { %5819 = vst [vmem:[#allocation3 + $0x18] sm:$0xff] %v10267_v7  ;;  %v5539_v21 = vmax.f32 %v5507_v32, 0.0  ;;  %v5508_v39 = vadd.f32 %v7297_v29, %v10064_v46  ;;  %v6909_v51 = vadd.f32 %v6908_v49, %v6907_v26  ;;  %v6910_v53 = vpop.f32.mrb[122].mxu1 }
 0x3c8   : > { %v5628_v43 = vpack.c.bf16 %v5621_v30, %v5620_v18  ;;  %v5537_v25 = vmax.f32 %v5505_v31, 0.0  ;;  %v5506_v3 = vadd.f32 %v7300_v27, %v10064_v46  ;;  %v6911_v48 = vpop.f32.mrb[123].mxu1 }
 0x3c9   : > { %v5540_v16 = vmax.f32 %v5508_v39, 0.0  ;;  %v6912_v10 = vadd.f32 %v6911_v48, %v6910_v53  ;;  %v7302_v34 = vadd.f32 %v10006_v0, %v6909_v51  ;;  %v10270_v39 = vld [vmem:[#allocation25_spill] sm:$0xff]  ;;  %v10271_v51 = vld [vmem:[#allocation26_spill] sm:$0xff] }
 0x3ca   : > { %7205 = vmatprep.mubr.bf16.mxu1 %v5628_v43  ;;  %v5563_v41 = vadd.f32 %v5539_v21, %v5537_v25  ;;  %v5538_v17 = vmax.f32 %v5506_v3, 0.0  ;;  %v7175_v52 = vpop.f32.mrb[48].mxu0 }
 0x3cb   : > { %v7303_v24 = vadd.f32 %v7302_v34, %v7175_v52  ;;  %v5391_v28 = vpop.f32.mrb[49].mxu0  ;;  %v7308_v54 = vadd.f32 %v10009_v2, %v6912_v10 }
 0x3cc   : > { %5579 = vst [vmem:[#allocation3 + $0x30] sm:$0xff] %v5563_v41  ;;  %v5564_v5 = vadd.f32 %v5540_v16, %v5538_v17  ;;  %v7306_v47 = vadd.f32 %v7305_v56, %v5391_v28  ;;  %v7176_v37 = vpop.f32.mrb[50].mxu0  ;;  %v7682_v41 = vld [vmem:[#allocation12 + $0x8] sm:$0xff]  }
 0x3cd   : > { %v5593_v50 = vld [vmem:[#allocation3 + $0x20] ss:$2 sm:$0xff]  ;;  %v5609_v1 = vld [vmem:[#allocation3 + $0x21] ss:$2 sm:$0xff]  ;;  %v5511_v0 = vadd.f32 %v7303_v24, %v10064_v46  ;;  %v7309_v20 = vadd.f32 %v7308_v54, %v7176_v37  ;;  %v5394_v63 = vpop.f32.mrb[51].mxu0 }
 0x3ce   : > { %5820 = vst [vmem:[#allocation3 + $0x20] sm:$0xff] %v10268_v38  ;;  %5821 = vst [vmem:[#allocation3 + $0x28] sm:$0xff] %v10269_v22  ;;  %v5509_v57 = vadd.f32 %v7306_v47, %v10064_v46  ;;  %v7312_v15 = vadd.f32 %v7311_v61, %v5394_v63  ;;  %v6913_v14 = vpop.f32.mrb[124].mxu1  ;;  %v5622_v25 = vadd.f32 %v5609_v1, %v5593_v50  ;;  %v10272_v63 = vld [vmem:[#allocation27_spill] sm:$0xff] }
 0x3cf   : > { %5580 = vst [vmem:[#allocation3 + $0x38] sm:$0xff] %v5564_v5  ;;  %v5543_v2 = vmax.f32 %v5511_v0, 0.0  ;;  %v5512_v35 = vadd.f32 %v7309_v20, %v10064_v46  ;;  %v6914_v59 = vpop.f32.mrb[125].mxu1  ;;  %v7683_v5 = vld [vmem:[#allocation12 + $0x10] sm:$0xff]  }
 0x3d0   : > { %v5541_v19 = vmax.f32 %v5509_v57, 0.0  ;;  %v5510_v56 = vadd.f32 %v7312_v15, %v10064_v46  ;;  %v6915_v55 = vadd.f32 %v6914_v59, %v6913_v14  ;;  %v6916_v40 = vpop.f32.mrb[126].mxu1 }
 0x3d1   : > { %v5544_v42 = vmax.f32 %v5512_v35, 0.0  ;;  %v6917_v32 = vpop.f32.mrb[127].mxu1  ;;  %v7684_v35 = vld [vmem:[#allocation12 + $0x18] sm:$0xff]  }
 0x3d2   : > { %v5565_v29 = vadd.f32 %v5543_v2, %v5541_v19  ;;  %v5542_v58 = vmax.f32 %v5510_v56, 0.0  ;;  %v6918_v26 = vadd.f32 %v6917_v32, %v6916_v40  ;;  %v7317_v18 = vadd.f32 %v10018_v11, %v6915_v55 }
 0x3d3   : > { %v7179_v30 = vpop.f32.mrb[52].mxu0 }
 0x3d4   : > { %5581 = vst [vmem:[#allocation3 + $0x40] sm:$0xff] %v5565_v29  ;;  %v5566_v61 = vadd.f32 %v5544_v42, %v5542_v58  ;;  %v5407_v45 = vpop.f32.mrb[53].mxu0  ;;  %v7323_v7 = vadd.f32 %v10021_v8, %v6918_v26  ;;  %v7685_v26 = vld [vmem:[#allocation12 + $0x20] sm:$0xff]  }
 0x3d5   : > { %v7318_v49 = vadd.f32 %v7317_v18, %v5407_v45  ;;  %v7180_v21 = vpop.f32.mrb[54].mxu0 }
 0x3d6   : > { %v5595_v31 = vld [vmem:[#allocation3 + $0x30] ss:$2 sm:$0xff]  ;;  %v5611_v27 = vld [vmem:[#allocation3 + $0x31] ss:$2 sm:$0xff]  ;;  %5582 = vst [vmem:[#allocation3 + $0x48] sm:$0xff] %v5566_v61  ;;  %v5410_v53 = vpop.f32.mrb[55].mxu0 }
 0x3d7   : > { %5822 = vst [vmem:[#allocation3 + $0x30] sm:$0xff] %v10270_v39  ;;  %5823 = vst [vmem:[#allocation3 + $0x38] sm:$0xff] %v10271_v51  ;;  %v6919_v43 = vpop.f32.mrb[128].mxu1  ;;  %v5623_v3 = vadd.f32 %v5611_v27, %v5595_v31  ;;  %v7324_v11 = vadd.f32 %v7323_v7, %v5410_v53  ;;  %v5513_v28 = vadd.f32 %v7318_v49, %v10064_v46  ;;  %v7686_v31 = vld [vmem:[#allocation12 + $0x28] sm:$0xff]  }
 0x3d8   : > { %v6920_v48 = vpop.f32.mrb[129].mxu1 }
 0x3d9   : > { %v6921_v16 = vadd.f32 %v6920_v48, %v6919_v43  ;;  %v6922_v10 = vpop.f32.mrb[130].mxu1  ;;  %v5629_v34 = vpack.c.bf16 %v5623_v3, %v5622_v25  ;;  %v5514_v22 = vadd.f32 %v7324_v11, %v10064_v46  ;;  %v5545_v15 = vmax.f32 %v5513_v28, 0.0  ;;  %v7687_v43 = vld [vmem:[#allocation12 + $0x30] sm:$0xff]  }
 0x3da   : > { %v6923_v8 = vpop.f32.mrb[131].mxu1 }
 0x3db   : > { %v7314_v17 = vadd.f32 %v10000_v62, %v6921_v16  ;;  %v6924_v52 = vadd.f32 %v6923_v8, %v6922_v10  ;;  %7206 = vmatmul.mubr.bf16.vlgmr.msra.gmra.mrb[148].mxu1 %v5629_v34  ;;  %v7183_v24 = vpop.f32.mrb[56].mxu0  ;;  %v5546_v56 = vmax.f32 %v5514_v22, 0.0 }
 0x3dc   : > { %7214 = vmatpush3.bf16.msra.mxu1 %v10043_v33  ;;  %v5423_v1 = vpop.f32.mrb[57].mxu0  ;;  %v10273_v33 = vld [vmem:[#allocation28_spill] sm:$0xff] }
 0x3dd   : > { %v7315_v54 = vadd.f32 %v7314_v17, %v7179_v30  ;;  %v7320_v50 = vadd.f32 %v10003_v12, %v6924_v52  ;;  %7215 = vmatprep.subr.bf16.mxu1 %v7682_v41  ;;  %v7184_v47 = vpop.f32.mrb[58].mxu0  ;;  %v5597_v37 = vld [vmem:[#allocation3 + $0x40] ss:$2 sm:$0xff]  ;;  %v5613_v38 = vld [vmem:[#allocation3 + $0x41] ss:$2 sm:$0xff] }
 0x3de   : > { %v5426_v20 = vpop.f32.mrb[59].mxu0  ;;  %5824 = vst [vmem:[#allocation3 + $0x40] sm:$0xff] %v10272_v63  ;;  %5825 = vst [vmem:[#allocation3 + $0x48] sm:$0xff] %v10273_v33  ;;  %v10274_v17 = vld [vmem:[#allocation29_spill] sm:$0xff] }
 0x3df   : > { %v5515_v62 = vadd.f32 %v7315_v54, %v10064_v46  ;;  %v7321_v0 = vadd.f32 %v7320_v50, %v7180_v21  ;;  %v6925_v57 = vpop.f32.mrb[132].mxu1 }
 0x3e0   : > { %7216 = vmatpush3.bf16.msra.mxu1 %v7682_v41  ;;  %v6926_v2 = vpop.f32.mrb[133].mxu1  ;;  %v5624_v41 = vadd.f32 %v5613_v38, %v5597_v37 }
 0x3e1   : > { %v5547_v12 = vmax.f32 %v5515_v62, 0.0  ;;  %v5516_v14 = vadd.f32 %v7321_v0, %v10064_v46  ;;  %7217 = vmatprep.subr.bf16.mxu1 %v7683_v5  ;;  %v6927_v59 = vadd.f32 %v6926_v2, %v6925_v57  ;;  %v6928_v19 = vpop.f32.mrb[134].mxu1 }
 0x3e2   : > { %v6929_v42 = vpop.f32.mrb[135].mxu1 }
 0x3e3   : > { %v5567_v55 = vadd.f32 %v5547_v12, %v5545_v15  ;;  %v5548_v40 = vmax.f32 %v5516_v14, 0.0  ;;  %v7329_v32 = vadd.f32 %v10012_v60, %v6927_v59  ;;  %v6930_v29 = vadd.f32 %v6929_v42, %v6928_v19 }
 0x3e4   : > { %7218 = vmatpush3.bf16.msra.mxu1 %v7683_v5 }
 0x3e5   : > { %5583 = vst [vmem:[#allocation3 + $0x50] sm:$0xff] %v5567_v55  ;;  %v5568_v58 = vadd.f32 %v5548_v40, %v5546_v56  ;;  %7219 = vmatprep.subr.bf16.mxu1 %v7684_v35  ;;  %v7330_v18 = vadd.f32 %v7329_v32, %v5423_v1  ;;  %v7335_v30 = vadd.f32 %v10015_v23, %v6930_v29 }
 0x3e7   : > { %5584 = vst [vmem:[#allocation3 + $0x58] sm:$0xff] %v5568_v58  ;;  %v7336_v61 = vadd.f32 %v7335_v30, %v5426_v20  ;;  %v6931_v45 = vpop.f32.mrb[136].mxu1  ;;  %v5517_v23 = vadd.f32 %v7330_v18, %v10064_v46  ;;  %v10276_v30 = vld [vmem:[#allocation31_spill] sm:$0xff] }
 0x3e8   : > { %7220 = vmatpush3.bf16.msra.mxu1 %v7684_v35  ;;  %v6932_v7 = vpop.f32.mrb[137].mxu1 }
 0x3e9   : > { %7221 = vmatprep.subr.bf16.mxu1 %v7685_v26  ;;  %v6933_v27 = vadd.f32 %v6932_v7, %v6931_v45  ;;  %v6934_v49 = vpop.f32.mrb[138].mxu1  ;;  %v5518_v10 = vadd.f32 %v7336_v61, %v10064_v46  ;;  %v5549_v1 = vmax.f32 %v5517_v23, 0.0  ;;  %v10277_v61 = vld [vmem:[#allocation32_spill] sm:$0xff] }
 0x3ea   : > { %v6935_v21 = vpop.f32.mrb[139].mxu1 }
 0x3eb   : > { %v7187_v60 = vpop.f32.mrb[60].mxu0  ;;  %v7326_v39 = vadd.f32 %v10024_v9, %v6933_v27  ;;  %v6936_v51 = vadd.f32 %v6935_v21, %v6934_v49  ;;  %v10275_v9 = vld [vmem:[#allocation30_spill] sm:$0xff]  ;;  %v5550_v38 = vmax.f32 %v5518_v10, 0.0  ;;  %v5832_v21 = vld [vmem:[#allocation3] ss:$2 sm:$0xff] }
 0x3ec   : > { %7222 = vmatpush3.bf16.msra.mxu1 %v7685_v26  ;;  %v5439_v53 = vpop.f32.mrb[61].mxu0  ;;  %v5842_v10 = vld [vmem:[#allocation3 + $0x21] ss:$2 sm:$0xff] }
 0x3ed   : > { %7223 = vmatprep.subr.bf16.mxu1 %v7686_v31  ;;  %v7188_v25 = vpop.f32.mrb[62].mxu0  ;;  %v7327_v3 = vadd.f32 %v7326_v39, %v7183_v24  ;;  %v7332_v11 = vadd.f32 %v10027_v13, %v6936_v51  ;;  %v7688_v13 = vld [vmem:[#allocation12 + $0x38] sm:$0xff]   ;;  %v5840_v39 = vld [vmem:[#allocation3 + $0x1] ss:$2 sm:$0xff] }
 0x3ee   : > { %v5599_v48 = vld [vmem:[#allocation3 + $0x50] ss:$2 sm:$0xff]  ;;  %v5615_v16 = vld [vmem:[#allocation3 + $0x51] ss:$2 sm:$0xff]  ;;  %v5442_v34 = vpop.f32.mrb[63].mxu0 }
 0x3ef   : > { %v5625_v8 = vadd.f32 %v5615_v16, %v5599_v48  ;;  %5826 = vst [vmem:[#allocation3 + $0x50] sm:$0xff] %v10274_v17  ;;  %5827 = vst [vmem:[#allocation3 + $0x58] sm:$0xff] %v10275_v9  ;;  %v5519_v52 = vadd.f32 %v7327_v3, %v10064_v46  ;;  %v7333_v28 = vadd.f32 %v7332_v11, %v7184_v47  ;;  %v6937_v54 = vpop.f32.mrb[140].mxu1  ;;  %v5841_v51 = vld [vmem:[#allocation3 + $0x11] ss:$2 sm:$0xff]  ;;  %v10278_v48 = vld [vmem:[#allocation33_spill] sm:$0xff] }
 0x3f0   : > { %7224 = vmatpush3.bf16.msra.mxu1 %v7686_v31  ;;  %v6938_v50 = vpop.f32.mrb[141].mxu1  ;;  %v10279_v16 = vld [vmem:[#allocation34_spill] sm:$0xff]  ;;  %v5836_v17 = vld [vmem:[#allocation3 + $0x40] ss:$2 sm:$0xff] }
 0x3f1   : > { %v5630_v24 = vpack.c.bf16 %v5625_v8, %v5624_v41  ;;  %7225 = vmatprep.subr.bf16.mxu1 %v7687_v43  ;;  %v5551_v5 = vmax.f32 %v5519_v52, 0.0  ;;  %v5520_v22 = vadd.f32 %v7333_v28, %v10064_v46  ;;  %v6939_v62 = vadd.f32 %v6938_v50, %v6937_v54  ;;  %v6940_v37 = vpop.f32.mrb[142].mxu1  ;;  %v5835_v41 = vld [vmem:[#allocation3 + $0x30] ss:$2 sm:$0xff]  ;;  %v5843_v8 = vld [vmem:[#allocation3 + $0x31] ss:$2 sm:$0xff] }
 0x3f2   : > { %v6941_v0 = vpop.f32.mrb[143].mxu1  ;;  %v5844_v28 = vld [vmem:[#allocation3 + $0x41] ss:$2 sm:$0xff] }
 0x3f3   : > { %7209 = vmatprep.mubr.bf16.mxu1 %v5630_v24  ;;  %v5569_v20 = vadd.f32 %v5551_v5, %v5549_v1  ;;  %v5552_v63 = vmax.f32 %v5520_v22, 0.0  ;;  %v7341_v33 = vadd.f32 %v10030_v4, %v6939_v62  ;;  %v6942_v47 = vadd.f32 %v6941_v0, %v6940_v37 }
 0x3f4   : > { %7226 = vmatpush3.bf16.msra.mxu1 %v7687_v43  ;;  %v5851_v24 = vadd.f32 %v5843_v8, %v5835_v41 }
 0x3f5   : > { %7227 = vmatprep.subr.bf16.mxu1 %v7688_v13  ;;  %5585 = vst [vmem:[#allocation3 + $0x60] sm:$0xff] %v5569_v20  ;;  %v5570_v57 = vadd.f32 %v5552_v63, %v5550_v38  ;;  %v7342_v15 = vadd.f32 %v7341_v33, %v5439_v53  ;;  %v7347_v12 = vadd.f32 %v10033_v6, %v6942_v47  ;;  %v6484_v47 = vld [vmem:[%s10208_s6] ss:$0 sm:$0xff] }
 0x3f6   : > { %v5848_v53 = vadd.f32 %v5840_v39, %v5832_v21  ;;  %v5837_v52 = vld [vmem:[#allocation3 + $0x50] ss:$2 sm:$0xff]  ;;  %v5845_v54 = vld [vmem:[#allocation3 + $0x51] ss:$2 sm:$0xff] }
 0x3f7   : > { %5586 = vst [vmem:[#allocation3 + $0x68] sm:$0xff] %v5570_v57  ;;  %v7348_v14 = vadd.f32 %v7347_v12, %v5442_v34  ;;  %v6943_v2 = vpop.f32.mrb[144].mxu1  ;;  %v5521_v4 = vadd.f32 %v7342_v15, %v10064_v46  ;;  %v5853_v1 = vadd.f32 %v5845_v54, %v5837_v52  ;;  %v6493_v57 = vld [vmem:[%s10210_s8] ss:$0 sm:$0xff] }
 0x3f8   : > { %7228 = vmatpush3.bf16.msra.mxu1 %v7688_v13  ;;  %v6944_v35 = vpop.f32.mrb[145].mxu1  ;;  %v5852_v13 = vadd.f32 %v5844_v28, %v5836_v17  ;;  %v7355_v15 = vadd.f32 %v6493_v57, %v6484_v47 }
 0x3f9   : > { %v6945_v59 = vadd.f32 %v6944_v35, %v6943_v2  ;;  %v6946_v19 = vpop.f32.mrb[146].mxu1  ;;  %v5522_v6 = vadd.f32 %v7348_v14, %v10064_v46  ;;  %v5553_v45 = vmax.f32 %v5521_v4, 0.0 }
 0x3fa   : > { %v6947_v56 = vpop.f32.mrb[147].mxu1  ;;  %v5858_v62 = vpack.c.bf16 %v5853_v1, %v5852_v13 }
 0x3fb   : > { %v7338_v55 = vadd.f32 %v10036_v36, %v6945_v59  ;;  %v6948_v40 = vadd.f32 %v6947_v56, %v6946_v19  ;;  %v5554_v31 = vmax.f32 %v5522_v6, 0.0 }
 0x3fd   : > { %v7339_v42 = vadd.f32 %v7338_v55, %v7187_v60  ;;  %v7344_v32 = vadd.f32 %v10039_v44, %v6948_v40  ;;  %v5833_v60 = vld [vmem:[#allocation3 + $0x10] ss:$2 sm:$0xff] }
 0x3fe   : > { %v5601_v29 = vld [vmem:[#allocation3 + $0x60] ss:$2 sm:$0xff]  ;;  %v5617_v58 = vld [vmem:[#allocation3 + $0x61] ss:$2 sm:$0xff]  ;;  %v5849_v43 = vadd.f32 %v5841_v51, %v5833_v60 }
 0x3ff   : > { %v5523_v26 = vadd.f32 %v7339_v42, %v10064_v46  ;;  %v7345_v18 = vadd.f32 %v7344_v32, %v7188_v25  ;;  %5828 = vst [vmem:[#allocation3 + $0x60] sm:$0xff] %v10276_v30  ;;  %5829 = vst [vmem:[#allocation3 + $0x68] sm:$0xff] %v10277_v61  ;;  %v5626_v3 = vadd.f32 %v5617_v58, %v5601_v29 }
 0x400   : > { %v5856_v34 = vpack.c.bf16 %v5849_v43, %v5848_v53 }
 0x401   : > { %v5555_v7 = vmax.f32 %v5523_v26, 0.0  ;;  %v5524_v36 = vadd.f32 %v7345_v18, %v10064_v46  ;;  %v5834_v46 = vld [vmem:[#allocation3 + $0x20] ss:$2 sm:$0xff] }
 0x402   : > { %v5850_v50 = vadd.f32 %v5842_v10, %v5834_v46 }
 0x403   : > { %v5571_v27 = vadd.f32 %v5555_v7, %v5553_v45  ;;  %v5556_v49 = vmax.f32 %v5524_v36, 0.0 }
 0x404   : > { %v5857_v5 = vpack.c.bf16 %v5851_v24, %v5850_v50 }
 0x405   : > { %5587 = vst [vmem:[#allocation3 + $0x70] sm:$0xff] %v5571_v27  ;;  %v5572_v44 = vadd.f32 %v5556_v49, %v5554_v31 }
 0x406   : > { %v5838_v22 = vld [vmem:[#allocation3 + $0x60] ss:$2 sm:$0xff]  ;;  %v5846_v38 = vld [vmem:[#allocation3 + $0x61] ss:$2 sm:$0xff] }
 0x407   : > { %5588 = vst [vmem:[#allocation3 + $0x78] sm:$0xff] %v5572_v44  ;;  %v5854_v20 = vadd.f32 %v5846_v38, %v5838_v22 }
 0x40e   : > { %v5603_v23 = vld [vmem:[#allocation3 + $0x70] ss:$2 sm:$0xff]  ;;  %v5619_v25 = vld [vmem:[#allocation3 + $0x71] ss:$2 sm:$0xff] }
 0x40f   : > { %v5627_v11 = vadd.f32 %v5619_v25, %v5603_v23  ;;  %5830 = vst [vmem:[#allocation3 + $0x70] sm:$0xff] %v10278_v48  ;;  %5831 = vst [vmem:[#allocation3 + $0x78] sm:$0xff] %v10279_v16 }
 0x411   : > { %v5631_v9 = vpack.c.bf16 %v5627_v11, %v5626_v3 }
 0x413   : > { %7210 = vmatmul.mubr.bf16.gmra.mrb[152].mxu1 %v5631_v9 }
 0x414   : > { %7229 = vmatprep.mubr.bf16.mxu1 %v5856_v34 }
 0x416   : > { %v5839_v37 = vld [vmem:[#allocation3 + $0x70] ss:$2 sm:$0xff]  ;;  %v5847_v0 = vld [vmem:[#allocation3 + $0x71] ss:$2 sm:$0xff] }
 0x417   : > { %v5855_v63 = vadd.f32 %v5847_v0, %v5839_v37 }
 0x419   : > { %v5859_v33 = vpack.c.bf16 %v5855_v63, %v5854_v20 }
 0x41b   : > { %7230 = vmatmul.mubr.bf16.vlgmr.msra.gmra.mrb[148].mxu1 %v5857_v5 }
 0x41c   : > { %7233 = vmatprep.mubr.bf16.mxu1 %v5858_v62 }
 0x423   : > { %7234 = vmatmul.mubr.bf16.gmra.mrb[152].mxu1 %v5859_v33 }
 0x4ee   : > { %v7231_v12 = vpop.f32.mrb[148].mxu1 }
 0x4ef   : > { %v7349_v14 = vadd.f32 %v7231_v12, %v6484_v47  ;;  %v5965_v2 = vpop.f32.mrb[149].mxu1 }
 0x4f0   : > { %v7351_v35 = vadd.f32 %v6484_v47, %v5965_v2  ;;  %v7232_v59 = vpop.f32.mrb[150].mxu1 }
 0x4f1   : > { %v7350_v19 = vadd.f32 %v7349_v14, %v6493_v57  ;;  %v7354_v56 = vadd.f32 %v7355_v15, %v7232_v59  ;;  %v5968_v55 = vpop.f32.mrb[151].mxu1 }
 0x4f2   : > { %v7352_v40 = vadd.f32 %v7351_v35, %v6493_v57  ;;  %v7356_v4 = vadd.f32 %v7355_v15, %v5968_v55 }
 0x4f3   : > { %v6006_v42 = vmax.f32 %v7350_v19, 0.0  ;;  %v6007_v32 = vmax.f32 %v7354_v56, 0.0 }
 0x4f4   : > { %v6004_v29 = vmax.f32 %v7352_v40, 0.0  ;;  %v6005_v58 = vmax.f32 %v7356_v4, 0.0 }
 0x4f5   : > { %6014 = vst [vmem:[%s408_s21 + $0x10] sm:$0xff] %v6006_v42  ;;  %6015 = vst [vmem:[%s408_s21 + $0x18] sm:$0xff] %v6007_v32 }
 0x4f6   : > { %6012 = vst [vmem:[%s408_s21] sm:$0xff] %v6004_v29  ;;  %6013 = vst [vmem:[%s408_s21 + $0x8] sm:$0xff] %v6005_v58  ;;  %v7235_v6 = vpop.f32.mrb[152].mxu1 }
 0x4f7   : > { %v7358_v26 = vadd.f32 %v7355_v15, %v7235_v6  ;;  %v5981_v18 = vpop.f32.mrb[153].mxu1 }
 0x4f8   : > { %v7360_v30 = vadd.f32 %v7355_v15, %v5981_v18  ;;  %v7236_v61 = vpop.f32.mrb[154].mxu1 }
 0x4f9   : > { %v6010_v45 = vmax.f32 %v7358_v26, 0.0  ;;  %v7362_v7 = vadd.f32 %v7355_v15, %v7236_v61  ;;  %v5984_v36 = vpop.f32.mrb[155].mxu1 }
 0x4fa   : > { %v6008_v31 = vmax.f32 %v7360_v30, 0.0  ;;  %v7364_v27 = vadd.f32 %v7355_v15, %v5984_v36 }
 0x4fb   : > { %6018 = vst [vmem:[%s408_s21 + $0x30] sm:$0xff] %v6010_v45  ;;  %v6011_v49 = vmax.f32 %v7362_v7, 0.0 }
 0x4fc   : > { %6016 = vst [vmem:[%s408_s21 + $0x20] sm:$0xff] %v6008_v31  ;;  %v6009_v44 = vmax.f32 %v7364_v27, 0.0 }
 0x4fd   : > { %6019 = vst [vmem:[%s408_s21 + $0x38] sm:$0xff] %v6011_v49 }
 0x4fe   : > { %6017 = vst [vmem:[%s408_s21 + $0x28] sm:$0xff] %v6009_v44 }
 0x4ff   : > { %7863 = shalt.err (!%p7860_p13)
}
 0x500   : > { %s7864_s18 = scalar_lea.hbm %s10158_s26, 1024  ;;  %s7868_s21 = scalar_lea.hbm %s10280_s25, 2048 }
 0x501   : > { %p7865_p9 = scmp.ne.s32.totalorder %s10158_s26, %s7864_s18  ;;  %p7869_p4 = scmp.lt.u32.totalorder %s10158_s26, %s10280_s25 }
 0x502   : > { %p7870_p8 = scmp.lt.u32.totalorder %s7868_s21, %s7864_s18  ;;  %p7872_p3 = scmp.lt.u32.totalorder %s7864_s18, %s10158_s26 }
 0x503   : > { %p7866_p0 = pnand %p7865_p9, %p8158_p10 }
 0x504   : > { %p7871_p6 = por %p7870_p8, %p7869_p4 }
 0x505   : > { %p7867_p11 = pneg %p7866_p0 }
 0x506   : > { %p7873_p5 = por %p7872_p3, %p7871_p6 }
 0x508   : > { %p7874_p7 = pnand %p7873_p5, %p7867_p11 }
 0x50a   : > { %7877 = shalt.err (!%p7874_p7)
}
 0x50b   : > { %s7935_s17 = smov 128   ;;  %s7936_s19 = smov 8  }
 0x50c   : > { %7455 = dma.vmem_to_hbm [thread:$0]  (%p8158_p10), %s10153_s24, 1024, %s10158_s26, %s6021_s13, %s7935_s17, %s7935_s17, %s7936_s19  }
 0x50d PF: > { %s10281_s22 = sld [smem:[#allocation18_spill]]  ;;  %s10282_s9 = sld [smem:[#allocation19_spill]] }
 0x50e   : > { %p10284_p1 = scmp.ge.s32.totalorder %s7924_s12, 2 }
 0x513   : > { %s6049_s20 = sand.u32 1, %s10281_s22   ;;  %p10283_p12 = scmp.ne.s32.totalorder %s10282_s9, 0 }
 0x514   : > { %s6050_s18 = scalar_lea.sflag [#allocation6], %s6049_s20 }
 0x515   : > { %p7475_p2 = pnand %p10284_p1, %p10283_p12 }
 0x517   : > { %7907 = dma.done.wait (!%p7475_p2), %s6050_s18, 1024  }
 0x518   : > { %7909 = vsyncadd (!%p7475_p2), %s6050_s18, 4294966272  ;;  %p24_p13 = scmp.ge.s32.totalorder %s8148_s14, 4   ;;  %s10285_s30 = smov %s7916_s10 }
 0x519   : > { %s10286_s10 = smov %s7920_s11  ;;  %s10287_s11 = smov %s8164_s28 }
 0x51a   : > { %s10288_s12 = smov %s8148_s14  ;;  %26 = sbr.rel (!%p24_p13) target bundleno = 9 (0x9), region = 137 }
 0x521   :  { %6055 = vsyncpa [#allocation5], 1 }
 0x522   :  { %6057 = vsyncpa [#allocation5 + $0x1], 1 }
 0x523   :  { %6058 = vsyncpa [#allocation8], 1 }
 0x524   :  { %6059 = vsyncpa [#allocation11], 1 }
 0x525   :  { %6060 = vsyncpa [#allocation6], 1 }
 0x526   :  { %6062 = vsyncpa [#allocation6 + $0x1], 1 }

</bundles_post_ra>
